<compile_context>
chip_gen: v7x
topology: tpu7x:2x2x1
jax: 0.10.0
libtpu: 0.0.40
codegen_flags: <defaults>
</compile_context>

<pallas_src>
import functools

import numpy as np
import jax
import jax.numpy as jnp
from jax.experimental import pallas as pl
from jax.experimental.pallas import tpu as pltpu


# ------------------------------ fused kernel ------------------------------

def _cnn_fused_kernel(x_ref, s1_ref, b1_ref, r1_ref, c1_ref,
                      s2_ref, b2_ref, r2_ref, c2_ref,
                      g1_ref, fb1_ref, w2_ref, fb2_ref, w3_ref, fb3_ref,
                      out_ref, *, block_b):
    f32 = jnp.float32
    bf16 = jnp.bfloat16

    # ---- conv1: 5x5 valid conv as 5 row-shifted GEMMs + bias + ReLU --------
    x = x_ref[...]                                   # [BT*32, 32*Cin]  bf16
    m1 = x.shape[0] - 4
    acc1 = jnp.dot(x[0:m1, :], s1_ref[0], preferred_element_type=f32)
    for dy in range(1, 5):
        acc1 = acc1 + jnp.dot(x[dy:dy + m1, :], s1_ref[dy],
                              preferred_element_type=f32)
    y1 = jnp.maximum(acc1 + b1_ref[...], 0.0).astype(bf16)       # [BT*32-4, 28*6]

    # ---- maxpool1 (2x2, stride 2) via 0/1 selection matmuls + max ----------
    rmax = jnp.maximum(jnp.dot(r1_ref[0], y1, preferred_element_type=f32),
                       jnp.dot(r1_ref[1], y1, preferred_element_type=f32)).astype(bf16)
    p1 = jnp.maximum(jnp.dot(rmax, c1_ref[0], preferred_element_type=f32),
                     jnp.dot(rmax, c1_ref[1], preferred_element_type=f32)).astype(bf16)
    # p1: [BT*14, 14*6]   rows = b*14 + i, cols = j*6 + c

    # ---- conv2 -------------------------------------------------------------
    m2 = p1.shape[0] - 4
    acc2 = jnp.dot(p1[0:m2, :], s2_ref[0], preferred_element_type=f32)
    for dy in range(1, 5):
        acc2 = acc2 + jnp.dot(p1[dy:dy + m2, :], s2_ref[dy],
                              preferred_element_type=f32)
    y2 = jnp.maximum(acc2 + b2_ref[...], 0.0).astype(bf16)       # [BT*14-4, 10*16]

    # ---- maxpool2 (rows reordered to i*BT + b so the flatten is contiguous) -
    rmax2 = jnp.maximum(jnp.dot(r2_ref[0], y2, preferred_element_type=f32),
                        jnp.dot(r2_ref[1], y2, preferred_element_type=f32)).astype(bf16)
    p2 = jnp.maximum(jnp.dot(rmax2, c2_ref[0], preferred_element_type=f32),
                     jnp.dot(rmax2, c2_ref[1], preferred_element_type=f32)).astype(bf16)
    # p2: [5*BT, 5*16]   rows = i*BT + b, cols = j*16 + c

    # ---- fc1 (torch NCHW flatten folded into the g1 row blocks) ------------
    h = jnp.dot(p2[0:block_b, :], g1_ref[0], preferred_element_type=f32)
    for i in range(1, 5):
        h = h + jnp.dot(p2[i * block_b:(i + 1) * block_b, :], g1_ref[i],
                        preferred_element_type=f32)
    h1 = jnp.maximum(h + fb1_ref[...], 0.0).astype(bf16)         # [BT, 120]

    # ---- fc2, fc3 ----------------------------------------------------------
    h2 = jnp.maximum(
        jnp.dot(h1, w2_ref[...], preferred_element_type=f32) + fb2_ref[...],
        0.0).astype(bf16)                                        # [BT, 84]
    out = jnp.dot(h2, w3_ref[...], preferred_element_type=f32) + fb3_ref[...]
    out_ref[...] = out.astype(out_ref.dtype)                     # [BT, num_classes]


# ----------------------- weight-only preprocessing -------------------------

def _conv_row_gemm_weights(w, in_w):
    """w: [Cout, Cin, KH, KW] (PyTorch layout) -> S: [KH, in_w*Cin, out_w*Cout] with
    S[dy, xi*Cin + c, xo*Cout + o] = w[o, c, dy, xi - xo] for 0 <= xi-xo < KW, so a
    valid conv output row is  sum_dy input_row(y+dy) @ S[dy]."""
    cout, cin, kh, kw = w.shape
    out_w = in_w - kw + 1
    sel = np.zeros((kw, in_w, out_w), np.float32)
    for d in range(kw):
        for xo in range(out_w):
            sel[d, xo + d, xo] = 1.0
    s = jnp.einsum("dix,ockd->kicxo", jnp.asarray(sel), w.astype(jnp.float32))
    return s.reshape(kh, in_w * cin, out_w * cout)


def _pool_row_selectors(block_b, in_stride, out_rows, interleave):
    """0/1 matrices picking conv-output rows (b, 2i) / (b, 2i+1); the conv-output row
    grid has `in_stride` rows per image and block_b*in_stride - 4 rows total."""
    m_in = block_b * in_stride - 4
    a = np.zeros((block_b * out_rows, m_in), np.float32)
    b = np.zeros_like(a)
    for bb in range(block_b):
        for i in range(out_rows):
            r = i * block_b + bb if interleave else bb * out_rows + i
            a[r, bb * in_stride + 2 * i] = 1.0
            b[r, bb * in_stride + 2 * i + 1] = 1.0
    return np.stack([a, b])


def _pool_col_selectors(in_w, ch):
    """0/1 matrices picking columns (2j, c) / (2j+1, c) of an (x, channel)-flat row."""
    out_w = in_w // 2
    a = np.zeros((in_w * ch, out_w * ch), np.float32)
    b = np.zeros_like(a)
    for j in range(out_w):
        for c in range(ch):
            a[(2 * j) * ch + c, j * ch + c] = 1.0
            b[(2 * j + 1) * ch + c, j * ch + c] = 1.0
    return np.stack([a, b])


def prepare_params(params, *, block_b=8):
    """One-time, weight-only preprocessing into the kernel operand layout."""
    bf16, f32 = jnp.bfloat16, jnp.float32
    nc = params["fc3_w"].shape[0]
    return {
        "S1": _conv_row_gemm_weights(params["conv1_w"], 32).astype(bf16),      # [5, 32*Cin, 168]
        "b1": jnp.tile(params["conv1_b"], 28).reshape(1, 168).astype(f32),
        "R1": jnp.asarray(_pool_row_selectors(block_b, 32, 14, False), bf16),  # [2, BT*14, BT*32-4]
        "C1": jnp.asarray(_pool_col_selectors(28, 6), bf16),                   # [2, 168, 84]
        "S2": _conv_row_gemm_weights(params["conv2_w"], 14).astype(bf16),      # [5, 84, 160]
        "b2": jnp.tile(params["conv2_b"], 10).reshape(1, 160).astype(f32),
        "R2": jnp.asarray(_pool_row_selectors(block_b, 14, 5, True), bf16),    # [2, 5*BT, BT*14-4]
        "C2": jnp.asarray(_pool_col_selectors(10, 16), bf16),                  # [2, 160, 80]
        # torch flattens NCHW (f = c*25 + i*5 + j): fold into per-row-block fc1 weights.
        "G1": jnp.transpose(params["fc1_w"].reshape(120, 16, 5, 5),
                            (2, 3, 1, 0)).reshape(5, 80, 120).astype(bf16),
        "fb1": params["fc1_b"].reshape(1, 120).astype(f32),
        "W2T": params["fc2_w"].T.astype(bf16),                                 # [120, 84]
        "fb2": params["fc2_b"].reshape(1, 84).astype(f32),
        "W3T": params["fc3_w"].T.astype(bf16),                                 # [84, nc]
        "fb3": params["fc3_b"].reshape(1, nc).astype(f32),
    }


# ------------------------------- forward -----------------------------------

def cnn_cifar_forward(prepared, x_nchw):
    """Mirrors CNNCifar.forward.  x_nchw: [B, Cin, 32, 32] float32."""
    B, cin, H, W = x_nchw.shape
    assert (H, W) == (32, 32), "architecture requires 32x32 inputs"
    block_b = prepared["R1"].shape[1] // 14
    num_classes = prepared["W3T"].shape[1]

    bp = ((B + block_b - 1) // block_b) * block_b
    x = x_nchw.astype(jnp.float32)
    if bp != B:
        x = jnp.pad(x, ((0, bp - B), (0, 0), (0, 0), (0, 0)))
    # NCHW -> 2-D "rows = (image, y), cols = (x, channel)" bf16 matrix.
    xm = jnp.transpose(x, (0, 2, 3, 1)).reshape(bp * H, W * cin).astype(jnp.bfloat16)

    const_names = ("S1", "b1", "R1", "C1", "S2", "b2", "R2", "C2",
                   "G1", "fb1", "W2T", "fb2", "W3T", "fb3")
    consts = [prepared[k] for k in const_names]

    in_specs = [pl.BlockSpec((block_b * H, W * cin), lambda i: (i, 0))]
    for c in consts:  # full-array constant blocks, fetched once (block index never changes)
        in_specs.append(pl.BlockSpec(c.shape, lambda i, n=c.ndim: (0,) * n))

    out = pl.pallas_call(
        functools.partial(_cnn_fused_kernel, block_b=block_b),
        grid=(bp // block_b,),
        in_specs=in_specs,
        out_specs=pl.BlockSpec((block_b, num_classes), lambda i: (i, 0)),
        out_shape=jax.ShapeDtypeStruct((bp, num_classes), jnp.float32),
        compiler_params=pltpu.CompilerParams(dimension_semantics=("parallel",)),
    )(xm, *consts)
    return out[:B]


# ------------------------------ parameters ----------------------------------

def _uniform(key, shape, fan_in):
    bound = 1.0 / np.sqrt(fan_in)
    return jax.random.uniform(key, shape, jnp.float32, -bound, bound)


def init_params(key, num_classes=10, in_channels=3):
    ks = jax.random.split(key, 10)
    return {
        "conv1_w": _uniform(ks[0], (6, in_channels, 5, 5), in_channels * 25),
        "conv1_b": _uniform(ks[1], (6,), in_channels * 25),
        "conv2_w": _uniform(ks[2], (16, 6, 5, 5), 6 * 25),
        "conv2_b": _uniform(ks[3], (16,), 6 * 25),
        "fc1_w": _uniform(ks[4], (120, 400), 400),   # torch [out, in] layout
        "fc1_b": _uniform(ks[5], (120,), 400),
        "fc2_w": _uniform(ks[6], (84, 120), 120),
        "fc2_b": _uniform(ks[7], (84,), 120),
        "fc3_w": _uniform(ks[8], (num_classes, 84), 84),
        "fc3_b": _uniform(ks[9], (num_classes,), 84),
    }


if __name__ == "__main__":
    num_classes = 10
    batch = 16   # two batch tiles of 8 -> exercises the parallel grid
    x = jax.random.normal(jax.random.PRNGKey(0), (batch, 3, 32, 32), jnp.float32)
    params = init_params(jax.random.PRNGKey(1), num_classes=num_classes, in_channels=3)

    prepared = prepare_params(params, block_b=8)   # weight-only, done once
    fwd = jax.jit(cnn_cifar_forward)
    out = jax.block_until_ready(fwd(prepared, x))
    assert out.shape == (batch, num_classes), out.shape
    assert bool(jnp.all(jnp.isfinite(out))), "non-finite output"
    print("KERNEL_OK")
</pallas_src>

<mosaic_0001>
module attributes {stable_mosaic.version = 11 : i64} {
  func.func @_cnn_fused_kernel(%arg0: i32, %arg1: memref<256x96xbf16, #tpu.memory_space<vmem>>, %arg2: memref<5x96x168xbf16, #tpu.memory_space<vmem>>, %arg3: memref<1x168xf32, #tpu.memory_space<vmem>>, %arg4: memref<2x112x252xbf16, #tpu.memory_space<vmem>>, %arg5: memref<2x168x84xbf16, #tpu.memory_space<vmem>>, %arg6: memref<5x84x160xbf16, #tpu.memory_space<vmem>>, %arg7: memref<1x160xf32, #tpu.memory_space<vmem>>, %arg8: memref<2x40x108xbf16, #tpu.memory_space<vmem>>, %arg9: memref<2x160x80xbf16, #tpu.memory_space<vmem>>, %arg10: memref<5x80x120xbf16, #tpu.memory_space<vmem>>, %arg11: memref<1x120xf32, #tpu.memory_space<vmem>>, %arg12: memref<120x84xbf16, #tpu.memory_space<vmem>>, %arg13: memref<1x84xf32, #tpu.memory_space<vmem>>, %arg14: memref<84x10xbf16, #tpu.memory_space<vmem>>, %arg15: memref<1x10xf32, #tpu.memory_space<vmem>>, %arg16: memref<8x10xf32, #tpu.memory_space<vmem>>) attributes {dimension_semantics = [#tpu.dimension_semantics<parallel>], iteration_bounds = array<i64: 2>, scalar_prefetch = 0 : i64, scratch_operands = 0 : i64, tpu.core_type = #tpu.core_type<tc>, window_params = [{transform_indices = @transform_0, window_bounds = array<i64: 256, 96>}, {pipeline_mode = #tpu.pipeline_mode<synchronous>, transform_indices = @transform_1, window_bounds = array<i64: 5, 96, 168>}, {pipeline_mode = #tpu.pipeline_mode<synchronous>, transform_indices = @transform_2, window_bounds = array<i64: 1, 168>}, {pipeline_mode = #tpu.pipeline_mode<synchronous>, transform_indices = @transform_3, window_bounds = array<i64: 2, 112, 252>}, {pipeline_mode = #tpu.pipeline_mode<synchronous>, transform_indices = @transform_4, window_bounds = array<i64: 2, 168, 84>}, {pipeline_mode = #tpu.pipeline_mode<synchronous>, transform_indices = @transform_5, window_bounds = array<i64: 5, 84, 160>}, {pipeline_mode = #tpu.pipeline_mode<synchronous>, transform_indices = @transform_6, window_bounds = array<i64: 1, 160>}, {pipeline_mode = #tpu.pipeline_mode<synchronous>, transform_indices = @transform_7, window_bounds = array<i64: 2, 40, 108>}, {pipeline_mode = #tpu.pipeline_mode<synchronous>, transform_indices = @transform_8, window_bounds = array<i64: 2, 160, 80>}, {pipeline_mode = #tpu.pipeline_mode<synchronous>, transform_indices = @transform_9, window_bounds = array<i64: 5, 80, 120>}, {pipeline_mode = #tpu.pipeline_mode<synchronous>, transform_indices = @transform_10, window_bounds = array<i64: 1, 120>}, {pipeline_mode = #tpu.pipeline_mode<synchronous>, transform_indices = @transform_11, window_bounds = array<i64: 120, 84>}, {pipeline_mode = #tpu.pipeline_mode<synchronous>, transform_indices = @transform_12, window_bounds = array<i64: 1, 84>}, {pipeline_mode = #tpu.pipeline_mode<synchronous>, transform_indices = @transform_13, window_bounds = array<i64: 84, 10>}, {pipeline_mode = #tpu.pipeline_mode<synchronous>, transform_indices = @transform_14, window_bounds = array<i64: 1, 10>}, {transform_indices = @transform_15, window_bounds = array<i64: 8, 10>}]} {
    %c0 = arith.constant 0 : index
    %c0_0 = arith.constant 0 : index
    %0 = vector.load %arg1[%c0, %c0_0] : memref<256x96xbf16, #tpu.memory_space<vmem>>, vector<256x96xbf16>
    %1 = vector.extract_strided_slice %0 {offsets = [0, 0], sizes = [252, 96], strides = [1, 1]} : vector<256x96xbf16> to vector<252x96xbf16>
    %c0_1 = arith.constant 0 : index
    %c0_2 = arith.constant 0 : index
    %c0_3 = arith.constant 0 : index
    %2 = vector.load %arg2[%c0_1, %c0_2, %c0_3] : memref<5x96x168xbf16, #tpu.memory_space<vmem>>, vector<1x96x168xbf16>
    %3 = vector.shape_cast %2 : vector<1x96x168xbf16> to vector<96x168xbf16>
    %cst = arith.constant dense<0.000000e+00> : vector<252x168xf32>
    %4 = tpu.matmul %1, %3, %cst {dimension_numbers = #tpu.dot_dimension_numbers<[1], [0], [0], [1], [0, 0, 1, 1], [], []>} : vector<252x96xbf16>, vector<96x168xbf16>, vector<252x168xf32> -> vector<252x168xf32>
    %5 = vector.extract_strided_slice %0 {offsets = [1, 0], sizes = [252, 96], strides = [1, 1]} : vector<256x96xbf16> to vector<252x96xbf16>
    %c1 = arith.constant 1 : index
    %c0_4 = arith.constant 0 : index
    %c0_5 = arith.constant 0 : index
    %6 = vector.load %arg2[%c1, %c0_4, %c0_5] : memref<5x96x168xbf16, #tpu.memory_space<vmem>>, vector<1x96x168xbf16>
    %7 = vector.shape_cast %6 : vector<1x96x168xbf16> to vector<96x168xbf16>
    %cst_6 = arith.constant dense<0.000000e+00> : vector<252x168xf32>
    %8 = tpu.matmul %5, %7, %cst_6 {dimension_numbers = #tpu.dot_dimension_numbers<[1], [0], [0], [1], [0, 0, 1, 1], [], []>} : vector<252x96xbf16>, vector<96x168xbf16>, vector<252x168xf32> -> vector<252x168xf32>
    %9 = arith.addf %4, %8 : vector<252x168xf32>
    %10 = vector.extract_strided_slice %0 {offsets = [2, 0], sizes = [252, 96], strides = [1, 1]} : vector<256x96xbf16> to vector<252x96xbf16>
    %c2 = arith.constant 2 : index
    %c0_7 = arith.constant 0 : index
    %c0_8 = arith.constant 0 : index
    %11 = vector.load %arg2[%c2, %c0_7, %c0_8] : memref<5x96x168xbf16, #tpu.memory_space<vmem>>, vector<1x96x168xbf16>
    %12 = vector.shape_cast %11 : vector<1x96x168xbf16> to vector<96x168xbf16>
    %cst_9 = arith.constant dense<0.000000e+00> : vector<252x168xf32>
    %13 = tpu.matmul %10, %12, %cst_9 {dimension_numbers = #tpu.dot_dimension_numbers<[1], [0], [0], [1], [0, 0, 1, 1], [], []>} : vector<252x96xbf16>, vector<96x168xbf16>, vector<252x168xf32> -> vector<252x168xf32>
    %14 = arith.addf %9, %13 : vector<252x168xf32>
    %15 = vector.extract_strided_slice %0 {offsets = [3, 0], sizes = [252, 96], strides = [1, 1]} : vector<256x96xbf16> to vector<252x96xbf16>
    %c3 = arith.constant 3 : index
    %c0_10 = arith.constant 0 : index
    %c0_11 = arith.constant 0 : index
    %16 = vector.load %arg2[%c3, %c0_10, %c0_11] : memref<5x96x168xbf16, #tpu.memory_space<vmem>>, vector<1x96x168xbf16>
    %17 = vector.shape_cast %16 : vector<1x96x168xbf16> to vector<96x168xbf16>
    %cst_12 = arith.constant dense<0.000000e+00> : vector<252x168xf32>
    %18 = tpu.matmul %15, %17, %cst_12 {dimension_numbers = #tpu.dot_dimension_numbers<[1], [0], [0], [1], [0, 0, 1, 1], [], []>} : vector<252x96xbf16>, vector<96x168xbf16>, vector<252x168xf32> -> vector<252x168xf32>
    %19 = arith.addf %14, %18 : vector<252x168xf32>
    %20 = vector.extract_strided_slice %0 {offsets = [4, 0], sizes = [252, 96], strides = [1, 1]} : vector<256x96xbf16> to vector<252x96xbf16>
    %c4 = arith.constant 4 : index
    %c0_13 = arith.constant 0 : index
    %c0_14 = arith.constant 0 : index
    %21 = vector.load %arg2[%c4, %c0_13, %c0_14] : memref<5x96x168xbf16, #tpu.memory_space<vmem>>, vector<1x96x168xbf16>
    %22 = vector.shape_cast %21 : vector<1x96x168xbf16> to vector<96x168xbf16>
    %cst_15 = arith.constant dense<0.000000e+00> : vector<252x168xf32>
    %23 = tpu.matmul %20, %22, %cst_15 {dimension_numbers = #tpu.dot_dimension_numbers<[1], [0], [0], [1], [0, 0, 1, 1], [], []>} : vector<252x96xbf16>, vector<96x168xbf16>, vector<252x168xf32> -> vector<252x168xf32>
    %24 = arith.addf %19, %23 : vector<252x168xf32>
    %c0_16 = arith.constant 0 : index
    %c0_17 = arith.constant 0 : index
    %25 = vector.load %arg3[%c0_16, %c0_17] : memref<1x168xf32, #tpu.memory_space<vmem>>, vector<1x168xf32>
    %26 = vector.broadcast %25 : vector<1x168xf32> to vector<252x168xf32>
    %27 = arith.addf %24, %26 : vector<252x168xf32>
    %cst_18 = arith.constant 0.000000e+00 : f32
    %28 = vector.broadcast %cst_18 : f32 to vector<252x168xf32>
    %29 = arith.maximumf %27, %28 : vector<252x168xf32>
    %30 = arith.truncf %29 : vector<252x168xf32> to vector<252x168xbf16>
    %c0_19 = arith.constant 0 : index
    %c0_20 = arith.constant 0 : index
    %c0_21 = arith.constant 0 : index
    %31 = vector.load %arg4[%c0_19, %c0_20, %c0_21] : memref<2x112x252xbf16, #tpu.memory_space<vmem>>, vector<1x112x252xbf16>
    %32 = vector.shape_cast %31 : vector<1x112x252xbf16> to vector<112x252xbf16>
    %cst_22 = arith.constant dense<0.000000e+00> : vector<112x168xf32>
    %33 = tpu.matmul %32, %30, %cst_22 {dimension_numbers = #tpu.dot_dimension_numbers<[1], [0], [0], [1], [0, 0, 1, 1], [], []>} : vector<112x252xbf16>, vector<252x168xbf16>, vector<112x168xf32> -> vector<112x168xf32>
    %c1_23 = arith.constant 1 : index
    %c0_24 = arith.constant 0 : index
    %c0_25 = arith.constant 0 : index
    %34 = vector.load %arg4[%c1_23, %c0_24, %c0_25] : memref<2x112x252xbf16, #tpu.memory_space<vmem>>, vector<1x112x252xbf16>
    %35 = vector.shape_cast %34 : vector<1x112x252xbf16> to vector<112x252xbf16>
    %cst_26 = arith.constant dense<0.000000e+00> : vector<112x168xf32>
    %36 = tpu.matmul %35, %30, %cst_26 {dimension_numbers = #tpu.dot_dimension_numbers<[1], [0], [0], [1], [0, 0, 1, 1], [], []>} : vector<112x252xbf16>, vector<252x168xbf16>, vector<112x168xf32> -> vector<112x168xf32>
    %37 = arith.maximumf %33, %36 : vector<112x168xf32>
    %38 = arith.truncf %37 : vector<112x168xf32> to vector<112x168xbf16>
    %c0_27 = arith.constant 0 : index
    %c0_28 = arith.constant 0 : index
    %c0_29 = arith.constant 0 : index
    %39 = vector.load %arg5[%c0_27, %c0_28, %c0_29] : memref<2x168x84xbf16, #tpu.memory_space<vmem>>, vector<1x168x84xbf16>
    %40 = vector.shape_cast %39 : vector<1x168x84xbf16> to vector<168x84xbf16>
    %cst_30 = arith.constant dense<0.000000e+00> : vector<112x84xf32>
    %41 = tpu.matmul %38, %40, %cst_30 {dimension_numbers = #tpu.dot_dimension_numbers<[1], [0], [0], [1], [0, 0, 1, 1], [], []>} : vector<112x168xbf16>, vector<168x84xbf16>, vector<112x84xf32> -> vector<112x84xf32>
    %c1_31 = arith.constant 1 : index
    %c0_32 = arith.constant 0 : index
    %c0_33 = arith.constant 0 : index
    %42 = vector.load %arg5[%c1_31, %c0_32, %c0_33] : memref<2x168x84xbf16, #tpu.memory_space<vmem>>, vector<1x168x84xbf16>
    %43 = vector.shape_cast %42 : vector<1x168x84xbf16> to vector<168x84xbf16>
    %cst_34 = arith.constant dense<0.000000e+00> : vector<112x84xf32>
    %44 = tpu.matmul %38, %43, %cst_34 {dimension_numbers = #tpu.dot_dimension_numbers<[1], [0], [0], [1], [0, 0, 1, 1], [], []>} : vector<112x168xbf16>, vector<168x84xbf16>, vector<112x84xf32> -> vector<112x84xf32>
    %45 = arith.maximumf %41, %44 : vector<112x84xf32>
    %46 = arith.truncf %45 : vector<112x84xf32> to vector<112x84xbf16>
    %47 = vector.extract_strided_slice %46 {offsets = [0, 0], sizes = [108, 84], strides = [1, 1]} : vector<112x84xbf16> to vector<108x84xbf16>
    %c0_35 = arith.constant 0 : index
    %c0_36 = arith.constant 0 : index
    %c0_37 = arith.constant 0 : index
    %48 = vector.load %arg6[%c0_35, %c0_36, %c0_37] : memref<5x84x160xbf16, #tpu.memory_space<vmem>>, vector<1x84x160xbf16>
    %49 = vector.shape_cast %48 : vector<1x84x160xbf16> to vector<84x160xbf16>
    %cst_38 = arith.constant dense<0.000000e+00> : vector<108x160xf32>
    %50 = tpu.matmul %47, %49, %cst_38 {dimension_numbers = #tpu.dot_dimension_numbers<[1], [0], [0], [1], [0, 0, 1, 1], [], []>} : vector<108x84xbf16>, vector<84x160xbf16>, vector<108x160xf32> -> vector<108x160xf32>
    %51 = vector.extract_strided_slice %46 {offsets = [1, 0], sizes = [108, 84], strides = [1, 1]} : vector<112x84xbf16> to vector<108x84xbf16>
    %c1_39 = arith.constant 1 : index
    %c0_40 = arith.constant 0 : index
    %c0_41 = arith.constant 0 : index
    %52 = vector.load %arg6[%c1_39, %c0_40, %c0_41] : memref<5x84x160xbf16, #tpu.memory_space<vmem>>, vector<1x84x160xbf16>
    %53 = vector.shape_cast %52 : vector<1x84x160xbf16> to vector<84x160xbf16>
    %cst_42 = arith.constant dense<0.000000e+00> : vector<108x160xf32>
    %54 = tpu.matmul %51, %53, %cst_42 {dimension_numbers = #tpu.dot_dimension_numbers<[1], [0], [0], [1], [0, 0, 1, 1], [], []>} : vector<108x84xbf16>, vector<84x160xbf16>, vector<108x160xf32> -> vector<108x160xf32>
    %55 = arith.addf %50, %54 : vector<108x160xf32>
    %56 = vector.extract_strided_slice %46 {offsets = [2, 0], sizes = [108, 84], strides = [1, 1]} : vector<112x84xbf16> to vector<108x84xbf16>
    %c2_43 = arith.constant 2 : index
    %c0_44 = arith.constant 0 : index
    %c0_45 = arith.constant 0 : index
    %57 = vector.load %arg6[%c2_43, %c0_44, %c0_45] : memref<5x84x160xbf16, #tpu.memory_space<vmem>>, vector<1x84x160xbf16>
    %58 = vector.shape_cast %57 : vector<1x84x160xbf16> to vector<84x160xbf16>
    %cst_46 = arith.constant dense<0.000000e+00> : vector<108x160xf32>
    %59 = tpu.matmul %56, %58, %cst_46 {dimension_numbers = #tpu.dot_dimension_numbers<[1], [0], [0], [1], [0, 0, 1, 1], [], []>} : vector<108x84xbf16>, vector<84x160xbf16>, vector<108x160xf32> -> vector<108x160xf32>
    %60 = arith.addf %55, %59 : vector<108x160xf32>
    %61 = vector.extract_strided_slice %46 {offsets = [3, 0], sizes = [108, 84], strides = [1, 1]} : vector<112x84xbf16> to vector<108x84xbf16>
    %c3_47 = arith.constant 3 : index
    %c0_48 = arith.constant 0 : index
    %c0_49 = arith.constant 0 : index
    %62 = vector.load %arg6[%c3_47, %c0_48, %c0_49] : memref<5x84x160xbf16, #tpu.memory_space<vmem>>, vector<1x84x160xbf16>
    %63 = vector.shape_cast %62 : vector<1x84x160xbf16> to vector<84x160xbf16>
    %cst_50 = arith.constant dense<0.000000e+00> : vector<108x160xf32>
    %64 = tpu.matmul %61, %63, %cst_50 {dimension_numbers = #tpu.dot_dimension_numbers<[1], [0], [0], [1], [0, 0, 1, 1], [], []>} : vector<108x84xbf16>, vector<84x160xbf16>, vector<108x160xf32> -> vector<108x160xf32>
    %65 = arith.addf %60, %64 : vector<108x160xf32>
    %66 = vector.extract_strided_slice %46 {offsets = [4, 0], sizes = [108, 84], strides = [1, 1]} : vector<112x84xbf16> to vector<108x84xbf16>
    %c4_51 = arith.constant 4 : index
    %c0_52 = arith.constant 0 : index
    %c0_53 = arith.constant 0 : index
    %67 = vector.load %arg6[%c4_51, %c0_52, %c0_53] : memref<5x84x160xbf16, #tpu.memory_space<vmem>>, vector<1x84x160xbf16>
    %68 = vector.shape_cast %67 : vector<1x84x160xbf16> to vector<84x160xbf16>
    %cst_54 = arith.constant dense<0.000000e+00> : vector<108x160xf32>
    %69 = tpu.matmul %66, %68, %cst_54 {dimension_numbers = #tpu.dot_dimension_numbers<[1], [0], [0], [1], [0, 0, 1, 1], [], []>} : vector<108x84xbf16>, vector<84x160xbf16>, vector<108x160xf32> -> vector<108x160xf32>
    %70 = arith.addf %65, %69 : vector<108x160xf32>
    %c0_55 = arith.constant 0 : index
    %c0_56 = arith.constant 0 : index
    %71 = vector.load %arg7[%c0_55, %c0_56] : memref<1x160xf32, #tpu.memory_space<vmem>>, vector<1x160xf32>
    %72 = vector.broadcast %71 : vector<1x160xf32> to vector<108x160xf32>
    %73 = arith.addf %70, %72 : vector<108x160xf32>
    %cst_57 = arith.constant 0.000000e+00 : f32
    %74 = vector.broadcast %cst_57 : f32 to vector<108x160xf32>
    %75 = arith.maximumf %73, %74 : vector<108x160xf32>
    %76 = arith.truncf %75 : vector<108x160xf32> to vector<108x160xbf16>
    %c0_58 = arith.constant 0 : index
    %c0_59 = arith.constant 0 : index
    %c0_60 = arith.constant 0 : index
    %77 = vector.load %arg8[%c0_58, %c0_59, %c0_60] : memref<2x40x108xbf16, #tpu.memory_space<vmem>>, vector<1x40x108xbf16>
    %78 = vector.shape_cast %77 : vector<1x40x108xbf16> to vector<40x108xbf16>
    %cst_61 = arith.constant dense<0.000000e+00> : vector<40x160xf32>
    %79 = tpu.matmul %78, %76, %cst_61 {dimension_numbers = #tpu.dot_dimension_numbers<[1], [0], [0], [1], [0, 0, 1, 1], [], []>} : vector<40x108xbf16>, vector<108x160xbf16>, vector<40x160xf32> -> vector<40x160xf32>
    %c1_62 = arith.constant 1 : index
    %c0_63 = arith.constant 0 : index
    %c0_64 = arith.constant 0 : index
    %80 = vector.load %arg8[%c1_62, %c0_63, %c0_64] : memref<2x40x108xbf16, #tpu.memory_space<vmem>>, vector<1x40x108xbf16>
    %81 = vector.shape_cast %80 : vector<1x40x108xbf16> to vector<40x108xbf16>
    %cst_65 = arith.constant dense<0.000000e+00> : vector<40x160xf32>
    %82 = tpu.matmul %81, %76, %cst_65 {dimension_numbers = #tpu.dot_dimension_numbers<[1], [0], [0], [1], [0, 0, 1, 1], [], []>} : vector<40x108xbf16>, vector<108x160xbf16>, vector<40x160xf32> -> vector<40x160xf32>
    %83 = arith.maximumf %79, %82 : vector<40x160xf32>
    %84 = arith.truncf %83 : vector<40x160xf32> to vector<40x160xbf16>
    %c0_66 = arith.constant 0 : index
    %c0_67 = arith.constant 0 : index
    %c0_68 = arith.constant 0 : index
    %85 = vector.load %arg9[%c0_66, %c0_67, %c0_68] : memref<2x160x80xbf16, #tpu.memory_space<vmem>>, vector<1x160x80xbf16>
    %86 = vector.shape_cast %85 : vector<1x160x80xbf16> to vector<160x80xbf16>
    %cst_69 = arith.constant dense<0.000000e+00> : vector<40x80xf32>
    %87 = tpu.matmul %84, %86, %cst_69 {dimension_numbers = #tpu.dot_dimension_numbers<[1], [0], [0], [1], [0, 0, 1, 1], [], []>} : vector<40x160xbf16>, vector<160x80xbf16>, vector<40x80xf32> -> vector<40x80xf32>
    %c1_70 = arith.constant 1 : index
    %c0_71 = arith.constant 0 : index
    %c0_72 = arith.constant 0 : index
    %88 = vector.load %arg9[%c1_70, %c0_71, %c0_72] : memref<2x160x80xbf16, #tpu.memory_space<vmem>>, vector<1x160x80xbf16>
    %89 = vector.shape_cast %88 : vector<1x160x80xbf16> to vector<160x80xbf16>
    %cst_73 = arith.constant dense<0.000000e+00> : vector<40x80xf32>
    %90 = tpu.matmul %84, %89, %cst_73 {dimension_numbers = #tpu.dot_dimension_numbers<[1], [0], [0], [1], [0, 0, 1, 1], [], []>} : vector<40x160xbf16>, vector<160x80xbf16>, vector<40x80xf32> -> vector<40x80xf32>
    %91 = arith.maximumf %87, %90 : vector<40x80xf32>
    %92 = arith.truncf %91 : vector<40x80xf32> to vector<40x80xbf16>
    %93 = vector.extract_strided_slice %92 {offsets = [0, 0], sizes = [8, 80], strides = [1, 1]} : vector<40x80xbf16> to vector<8x80xbf16>
    %c0_74 = arith.constant 0 : index
    %c0_75 = arith.constant 0 : index
    %c0_76 = arith.constant 0 : index
    %94 = vector.load %arg10[%c0_74, %c0_75, %c0_76] : memref<5x80x120xbf16, #tpu.memory_space<vmem>>, vector<1x80x120xbf16>
    %95 = vector.shape_cast %94 : vector<1x80x120xbf16> to vector<80x120xbf16>
    %cst_77 = arith.constant dense<0.000000e+00> : vector<8x120xf32>
    %96 = tpu.matmul %93, %95, %cst_77 {dimension_numbers = #tpu.dot_dimension_numbers<[1], [0], [0], [1], [0, 0, 1, 1], [], []>} : vector<8x80xbf16>, vector<80x120xbf16>, vector<8x120xf32> -> vector<8x120xf32>
    %97 = vector.extract_strided_slice %92 {offsets = [8, 0], sizes = [8, 80], strides = [1, 1]} : vector<40x80xbf16> to vector<8x80xbf16>
    %c1_78 = arith.constant 1 : index
    %c0_79 = arith.constant 0 : index
    %c0_80 = arith.constant 0 : index
    %98 = vector.load %arg10[%c1_78, %c0_79, %c0_80] : memref<5x80x120xbf16, #tpu.memory_space<vmem>>, vector<1x80x120xbf16>
    %99 = vector.shape_cast %98 : vector<1x80x120xbf16> to vector<80x120xbf16>
    %cst_81 = arith.constant dense<0.000000e+00> : vector<8x120xf32>
    %100 = tpu.matmul %97, %99, %cst_81 {dimension_numbers = #tpu.dot_dimension_numbers<[1], [0], [0], [1], [0, 0, 1, 1], [], []>} : vector<8x80xbf16>, vector<80x120xbf16>, vector<8x120xf32> -> vector<8x120xf32>
    %101 = arith.addf %96, %100 : vector<8x120xf32>
    %102 = vector.extract_strided_slice %92 {offsets = [16, 0], sizes = [8, 80], strides = [1, 1]} : vector<40x80xbf16> to vector<8x80xbf16>
    %c2_82 = arith.constant 2 : index
    %c0_83 = arith.constant 0 : index
    %c0_84 = arith.constant 0 : index
    %103 = vector.load %arg10[%c2_82, %c0_83, %c0_84] : memref<5x80x120xbf16, #tpu.memory_space<vmem>>, vector<1x80x120xbf16>
    %104 = vector.shape_cast %103 : vector<1x80x120xbf16> to vector<80x120xbf16>
    %cst_85 = arith.constant dense<0.000000e+00> : vector<8x120xf32>
    %105 = tpu.matmul %102, %104, %cst_85 {dimension_numbers = #tpu.dot_dimension_numbers<[1], [0], [0], [1], [0, 0, 1, 1], [], []>} : vector<8x80xbf16>, vector<80x120xbf16>, vector<8x120xf32> -> vector<8x120xf32>
    %106 = arith.addf %101, %105 : vector<8x120xf32>
    %107 = vector.extract_strided_slice %92 {offsets = [24, 0], sizes = [8, 80], strides = [1, 1]} : vector<40x80xbf16> to vector<8x80xbf16>
    %c3_86 = arith.constant 3 : index
    %c0_87 = arith.constant 0 : index
    %c0_88 = arith.constant 0 : index
    %108 = vector.load %arg10[%c3_86, %c0_87, %c0_88] : memref<5x80x120xbf16, #tpu.memory_space<vmem>>, vector<1x80x120xbf16>
    %109 = vector.shape_cast %108 : vector<1x80x120xbf16> to vector<80x120xbf16>
    %cst_89 = arith.constant dense<0.000000e+00> : vector<8x120xf32>
    %110 = tpu.matmul %107, %109, %cst_89 {dimension_numbers = #tpu.dot_dimension_numbers<[1], [0], [0], [1], [0, 0, 1, 1], [], []>} : vector<8x80xbf16>, vector<80x120xbf16>, vector<8x120xf32> -> vector<8x120xf32>
    %111 = arith.addf %106, %110 : vector<8x120xf32>
    %112 = vector.extract_strided_slice %92 {offsets = [32, 0], sizes = [8, 80], strides = [1, 1]} : vector<40x80xbf16> to vector<8x80xbf16>
    %c4_90 = arith.constant 4 : index
    %c0_91 = arith.constant 0 : index
    %c0_92 = arith.constant 0 : index
    %113 = vector.load %arg10[%c4_90, %c0_91, %c0_92] : memref<5x80x120xbf16, #tpu.memory_space<vmem>>, vector<1x80x120xbf16>
    %114 = vector.shape_cast %113 : vector<1x80x120xbf16> to vector<80x120xbf16>
    %cst_93 = arith.constant dense<0.000000e+00> : vector<8x120xf32>
    %115 = tpu.matmul %112, %114, %cst_93 {dimension_numbers = #tpu.dot_dimension_numbers<[1], [0], [0], [1], [0, 0, 1, 1], [], []>} : vector<8x80xbf16>, vector<80x120xbf16>, vector<8x120xf32> -> vector<8x120xf32>
    %116 = arith.addf %111, %115 : vector<8x120xf32>
    %c0_94 = arith.constant 0 : index
    %c0_95 = arith.constant 0 : index
    %117 = vector.load %arg11[%c0_94, %c0_95] : memref<1x120xf32, #tpu.memory_space<vmem>>, vector<1x120xf32>
    %118 = vector.broadcast %117 : vector<1x120xf32> to vector<8x120xf32>
    %119 = arith.addf %116, %118 : vector<8x120xf32>
    %cst_96 = arith.constant 0.000000e+00 : f32
    %120 = vector.broadcast %cst_96 : f32 to vector<8x120xf32>
    %121 = arith.maximumf %119, %120 : vector<8x120xf32>
    %122 = arith.truncf %121 : vector<8x120xf32> to vector<8x120xbf16>
    %c0_97 = arith.constant 0 : index
    %c0_98 = arith.constant 0 : index
    %123 = vector.load %arg12[%c0_97, %c0_98] : memref<120x84xbf16, #tpu.memory_space<vmem>>, vector<120x84xbf16>
    %cst_99 = arith.constant dense<0.000000e+00> : vector<8x84xf32>
    %124 = tpu.matmul %122, %123, %cst_99 {dimension_numbers = #tpu.dot_dimension_numbers<[1], [0], [0], [1], [0, 0, 1, 1], [], []>} : vector<8x120xbf16>, vector<120x84xbf16>, vector<8x84xf32> -> vector<8x84xf32>
    %c0_100 = arith.constant 0 : index
    %c0_101 = arith.constant 0 : index
    %125 = vector.load %arg13[%c0_100, %c0_101] : memref<1x84xf32, #tpu.memory_space<vmem>>, vector<1x84xf32>
    %126 = vector.broadcast %125 : vector<1x84xf32> to vector<8x84xf32>
    %127 = arith.addf %124, %126 : vector<8x84xf32>
    %cst_102 = arith.constant 0.000000e+00 : f32
    %128 = vector.broadcast %cst_102 : f32 to vector<8x84xf32>
    %129 = arith.maximumf %127, %128 : vector<8x84xf32>
    %130 = arith.truncf %129 : vector<8x84xf32> to vector<8x84xbf16>
    %c0_103 = arith.constant 0 : index
    %c0_104 = arith.constant 0 : index
    %131 = vector.load %arg14[%c0_103, %c0_104] : memref<84x10xbf16, #tpu.memory_space<vmem>>, vector<84x10xbf16>
    %cst_105 = arith.constant dense<0.000000e+00> : vector<8x10xf32>
    %132 = tpu.matmul %130, %131, %cst_105 {dimension_numbers = #tpu.dot_dimension_numbers<[1], [0], [0], [1], [0, 0, 1, 1], [], []>} : vector<8x84xbf16>, vector<84x10xbf16>, vector<8x10xf32> -> vector<8x10xf32>
    %c0_106 = arith.constant 0 : index
    %c0_107 = arith.constant 0 : index
    %133 = vector.load %arg15[%c0_106, %c0_107] : memref<1x10xf32, #tpu.memory_space<vmem>>, vector<1x10xf32>
    %134 = vector.broadcast %133 : vector<1x10xf32> to vector<8x10xf32>
    %135 = arith.addf %132, %134 : vector<8x10xf32>
    %c0_108 = arith.constant 0 : index
    %c0_109 = arith.constant 0 : index
    %136 = vector.load %arg16[%c0_108, %c0_109] : memref<8x10xf32, #tpu.memory_space<vmem>>, vector<8x10xf32>
    tpu.vector_store %arg16[%c0_108, %c0_109], %135 {strides = array<i32>} : memref<8x10xf32, #tpu.memory_space<vmem>>, vector<8x10xf32>,
    return
  }
  func.func @transform_0(%arg0: i32) -> (i32, i32) {
    %c0_i32 = arith.constant 0 : i32
    %c0_i32_0 = arith.constant 0 : i32
    return %arg0, %c0_i32 : i32, i32
  }
  func.func @transform_1(%arg0: i32) -> (i32, i32, i32) {
    %c0_i32 = arith.constant 0 : i32
    %c0_i32_0 = arith.constant 0 : i32
    %c0_i32_1 = arith.constant 0 : i32
    %c0_i32_2 = arith.constant 0 : i32
    return %c0_i32, %c0_i32_0, %c0_i32_1 : i32, i32, i32
  }
  func.func @transform_2(%arg0: i32) -> (i32, i32) {
    %c0_i32 = arith.constant 0 : i32
    %c0_i32_0 = arith.constant 0 : i32
    %c0_i32_1 = arith.constant 0 : i32
    return %c0_i32, %c0_i32_0 : i32, i32
  }
  func.func @transform_3(%arg0: i32) -> (i32, i32, i32) {
    %c0_i32 = arith.constant 0 : i32
    %c0_i32_0 = arith.constant 0 : i32
    %c0_i32_1 = arith.constant 0 : i32
    %c0_i32_2 = arith.constant 0 : i32
    return %c0_i32, %c0_i32_0, %c0_i32_1 : i32, i32, i32
  }
  func.func @transform_4(%arg0: i32) -> (i32, i32, i32) {
    %c0_i32 = arith.constant 0 : i32
    %c0_i32_0 = arith.constant 0 : i32
    %c0_i32_1 = arith.constant 0 : i32
    %c0_i32_2 = arith.constant 0 : i32
    return %c0_i32, %c0_i32_0, %c0_i32_1 : i32, i32, i32
  }
  func.func @transform_5(%arg0: i32) -> (i32, i32, i32) {
    %c0_i32 = arith.constant 0 : i32
    %c0_i32_0 = arith.constant 0 : i32
    %c0_i32_1 = arith.constant 0 : i32
    %c0_i32_2 = arith.constant 0 : i32
    return %c0_i32, %c0_i32_0, %c0_i32_1 : i32, i32, i32
  }
  func.func @transform_6(%arg0: i32) -> (i32, i32) {
    %c0_i32 = arith.constant 0 : i32
    %c0_i32_0 = arith.constant 0 : i32
    %c0_i32_1 = arith.constant 0 : i32
    return %c0_i32, %c0_i32_0 : i32, i32
  }
  func.func @transform_7(%arg0: i32) -> (i32, i32, i32) {
    %c0_i32 = arith.constant 0 : i32
    %c0_i32_0 = arith.constant 0 : i32
    %c0_i32_1 = arith.constant 0 : i32
    %c0_i32_2 = arith.constant 0 : i32
    return %c0_i32, %c0_i32_0, %c0_i32_1 : i32, i32, i32
  }
  func.func @transform_8(%arg0: i32) -> (i32, i32, i32) {
    %c0_i32 = arith.constant 0 : i32
    %c0_i32_0 = arith.constant 0 : i32
    %c0_i32_1 = arith.constant 0 : i32
    %c0_i32_2 = arith.constant 0 : i32
    return %c0_i32, %c0_i32_0, %c0_i32_1 : i32, i32, i32
  }
  func.func @transform_9(%arg0: i32) -> (i32, i32, i32) {
    %c0_i32 = arith.constant 0 : i32
    %c0_i32_0 = arith.constant 0 : i32
    %c0_i32_1 = arith.constant 0 : i32
    %c0_i32_2 = arith.constant 0 : i32
    return %c0_i32, %c0_i32_0, %c0_i32_1 : i32, i32, i32
  }
  func.func @transform_10(%arg0: i32) -> (i32, i32) {
    %c0_i32 = arith.constant 0 : i32
    %c0_i32_0 = arith.constant 0 : i32
    %c0_i32_1 = arith.constant 0 : i32
    return %c0_i32, %c0_i32_0 : i32, i32
  }
  func.func @transform_11(%arg0: i32) -> (i32, i32) {
    %c0_i32 = arith.constant 0 : i32
    %c0_i32_0 = arith.constant 0 : i32
    %c0_i32_1 = arith.constant 0 : i32
    return %c0_i32, %c0_i32_0 : i32, i32
  }
  func.func @transform_12(%arg0: i32) -> (i32, i32) {
    %c0_i32 = arith.constant 0 : i32
    %c0_i32_0 = arith.constant 0 : i32
    %c0_i32_1 = arith.constant 0 : i32
    return %c0_i32, %c0_i32_0 : i32, i32
  }
  func.func @transform_13(%arg0: i32) -> (i32, i32) {
    %c0_i32 = arith.constant 0 : i32
    %c0_i32_0 = arith.constant 0 : i32
    %c0_i32_1 = arith.constant 0 : i32
    return %c0_i32, %c0_i32_0 : i32, i32
  }
  func.func @transform_14(%arg0: i32) -> (i32, i32) {
    %c0_i32 = arith.constant 0 : i32
    %c0_i32_0 = arith.constant 0 : i32
    %c0_i32_1 = arith.constant 0 : i32
    return %c0_i32, %c0_i32_0 : i32, i32
  }
  func.func @transform_15(%arg0: i32) -> (i32, i32) {
    %c0_i32 = arith.constant 0 : i32
    %c0_i32_0 = arith.constant 0 : i32
    return %arg0, %c0_i32 : i32, i32
  }
}

</mosaic_0001>

<bundles_post_ra>
// kernel: cnn_cifar_forward.1
= control target key start
LH: loop header
LB: loop body
LE: loop exit
PB: predicated region body
PF: predicated region fallthrough
CT: control target
= control target key end

     0   :  { %20 = vsyncpa [#allocation3], 0  ;;  %s9783_s0 = inlined_call_operand.vmem [shape: bf16[512,96], index: 0, kind: input, shape index: {}]   ;;  %s9784_s1 = inlined_call_operand.vmem [shape: bf16[5,96,168], index: 1, kind: input, shape index: {}]   ;;  %s9785_s2 = inlined_call_operand.vmem [shape: f32[1,168], index: 2, kind: input, shape index: {}]   ;;  %s9786_s3 = inlined_call_operand.vmem [shape: bf16[2,112,252], index: 3, kind: input, shape index: {}]   ;;  %s9787_s4 = inlined_call_operand.vmem [shape: bf16[2,168,84], index: 4, kind: input, shape index: {}]   ;;  %s9788_s5 = inlined_call_operand.vmem [shape: bf16[5,84,160], index: 5, kind: input, shape index: {}]   ;;  %s9789_s6 = inlined_call_operand.vmem [shape: f32[1,160], index: 6, kind: input, shape index: {}]   ;;  %s9790_s7 = inlined_call_operand.vmem [shape: bf16[2,40,108], index: 7, kind: input, shape index: {}]   ;;  %s9791_s8 = inlined_call_operand.vmem [shape: bf16[2,160,80], index: 8, kind: input, shape index: {}]   ;;  %s9792_s9 = inlined_call_operand.vmem [shape: bf16[5,80,120], index: 9, kind: input, shape index: {}]   ;;  %s9793_s10 = inlined_call_operand.vmem [shape: f32[1,120], index: 10, kind: input, shape index: {}]   ;;  %s9794_s11 = inlined_call_operand.vmem [shape: bf16[120,84], index: 11, kind: input, shape index: {}]   ;;  %s9795_s12 = inlined_call_operand.vmem [shape: f32[1,84], index: 12, kind: input, shape index: {}]   ;;  %s9796_s13 = inlined_call_operand.vmem [shape: bf16[84,10], index: 13, kind: input, shape index: {}]   ;;  %s9797_s14 = inlined_call_operand.vmem [shape: f32[1,10], index: 14, kind: input, shape index: {}]   ;;  %s9798_s15 = inlined_call_operand.hbm [shape: f32[16,10], index: 15, kind: output, shape index: {}]  }
   0x1   :  { %22 = vsyncpa [#allocation3 + $0x1], 0  ;;  %s7780_s18 = smov 0   ;;  %s7782_s19 = smov 0  }
   0x2   :  { %s7784_s20 = smov 0   ;;  %s7786_s21 = smov 0  }
   0x3 LB: > { %9804 = sst [smem:[#allocation5_spill]] %s7682_s18  ;;  %s7801_s22 = sadd.s32 4294967295, %s7694_s21   ;;  %s7694_s21 = sphi %s7786_s21, %s9813_s21   ;;  %s7690_s20 = sphi %s7784_s20, %s9815_s20   ;;  %s7686_s19 = sphi %s7782_s19, %s9817_s19   ;;  %s7682_s18 = sphi %s7780_s18, %s9816_s18  }
   0x4   : > { %9805 = sst [smem:[#allocation6_spill]] %s7690_s20  ;;  %s6108_s23 = sadd.s32 4294967294, %s7694_s21  }
   0x5   : > { %s7805_s24 = sadd.s32 1, %s7694_s21   ;;  %s355_s25 = sadd.s32 1, %s7690_s20 }
   0x6   : > { %9806 = sst [smem:[#allocation7_spill]] %s7805_s24  ;;  %s352_s26 = ssub.s32 %s7694_s21, %s7805_s24 }
   0x7   : > { %p365_p0 = scmp.ne.s32.totalorder %s7690_s20, %s7686_s19  ;;  %p353_p1 = scmp.eq.s32.totalorder %s352_s26, 0 }
   0x8   : > { %p366_p2 = scmp.eq.s32.totalorder %s7801_s22, 1  ;;  %p371_p3 = scmp.ne.s32.totalorder %s7686_s19, %s7682_s18 }
   0x9   : > { %p372_p4 = scmp.eq.s32.totalorder %s6108_s23, 1  ;;  %p6111_p7 = scmp.ge.s32.totalorder %s7694_s21, 1 }
   0xa   : > { %s7816_s27 = scalar_select %p353_p1, %s7690_s20, %s355_s25  }
   0xb   : > { %p7818_p5 = por %p366_p2, %p365_p0  ;;  %p7822_p6 = por %p372_p4, %p371_p3 }
   0xc   : > { %9807 = sst [smem:[#allocation8_spill]] %s7816_s27  ;;  %p441_p8 = scmp.lt.s32.totalorder %s7694_s21, 3 }
   0xd   : > { %s9809_s29 = scalar_select %p7822_p6, 1, 0 }
   0xe   : > { %p442_p9 = pnand %p6111_p7, %p441_p8 }
   0xf   : > { %9810 = sst [smem:[#allocation9_spill]] %s9809_s29  ;;  %v7298_v0 = vld [vmem:[%s9784_s1 + $0x64] ss:$8 sps:$4 sm:$0xff] (!%p442_p9)   ;;  %s6113_s17 = sshll.u32 (!%p442_p9), %s7801_s22, 5  ;;  %v7300_v1 = vld [vmem:[%s9784_s1 + $0x60] ss:$8 sps:$4 sm:$0xff] (!%p442_p9)  }
  0x10   : > { %445 = sbr.rel (%p442_p9) target bundleno = 3139 (0xc43), region = 80  ;;  %v7696_v2 = vmov (!%p442_p9), 0   ;;  %p490_p10 = scmp.lt.s32.totalorder (!%p442_p9), %s6113_s17, 63  ;;  %870 = vmatprep.subr.bf16.mxu0 (!%p442_p9), %v7298_v0  ;;  %v7301_v3 = vld [vmem:[%s9784_s1 + $0x74] ss:$8 sps:$4 sm:$0xff] (!%p442_p9)   ;;  %vm821_vm1 = vcmask (!%p442_p9), 785408  }
  0x11   : > { %902 = vmatprep.mubr.bf16.mxu0 (!%p442_p9), %v7696_v2  ;;  %871 = vmatpush1.bf16.msra.mxu0 (!%p442_p9), %v7300_v1  ;;  %v7303_v4 = vld [vmem:[%s9784_s1 + $0x70] ss:$8 sps:$4 sm:$0xff] (!%p442_p9)   ;;  %v7304_v5 = vld [vmem:[%s9784_s1 + $0x84] ss:$8 sps:$4 sm:$0xff] (!%p442_p9)   ;;  %v7306_v6 = vld [vmem:[%s9784_s1 + $0x80] ss:$8 sps:$4 sm:$0xff] (!%p442_p9)  }
  0x12   : > { %872 = vmatprep.subr.bf16.mxu0 (!%p442_p9), %v7301_v3  ;;  %v7307_v7 = vld [vmem:[%s9784_s1 + $0x94] ss:$8 sps:$4 sm:$0xff] (!%p442_p9)   ;;  %v7309_v9 = vld [vmem:[%s9784_s1 + $0x90] ss:$8 sps:$4 sm:$0xff] (!%p442_p9)   ;;  %v7310_v12 = vld [vmem:[%s9784_s1 + $0xa4] ss:$8 sps:$4 sm:$0xff] (!%p442_p9)  }
  0x13   : > { %v7312_v13 = vld [vmem:[%s9784_s1 + $0xa0] ss:$8 sps:$4 sm:$0xff] (!%p442_p9)   ;;  %v7313_v17 = vld [vmem:[%s9784_s1 + $0xb4] ss:$8 sps:$4 sm:$0xff] (!%p442_p9)   ;;  %v7315_v18 = vld [vmem:[%s9784_s1 + $0xb0] ss:$8 sps:$4 sm:$0xff] (!%p442_p9)  }
  0x14   : > { %vm633_vm0 = vsmask.f32 (!%p442_p9), 7424  ;;  %v7320_v22 = vld [vmem:[%s9784_s1 + $0x4] ss:$8 sps:$4 sm:$0xff] (!%p442_p9)   ;;  %v7318_v23 = vld [vmem:[%s9784_s1] ss:$8 sps:$4 sm:$0xff] (!%p442_p9)  }
  0x15   : > { %873 = vmatpush1.bf16.msra.mxu0 (!%p442_p9), %v7303_v4  ;;  %v7326_v27 = vld [vmem:[%s9784_s1 + $0x14] ss:$8 sps:$4 sm:$0xff] (!%p442_p9)   ;;  %v7324_v31 = vld [vmem:[%s9784_s1 + $0x10] ss:$8 sps:$4 sm:$0xff] (!%p442_p9)   ;;  %v7331_v32 = vld [vmem:[%s9784_s1 + $0x24] ss:$8 sps:$4 sm:$0xff] (!%p442_p9)  }
  0x16   : > { %874 = vmatprep.subr.bf16.mxu0 (!%p442_p9), %v7304_v5  ;;  %v7329_v36 = vld [vmem:[%s9784_s1 + $0x20] ss:$8 sps:$4 sm:$0xff] (!%p442_p9)   ;;  %v7337_v37 = vld [vmem:[%s9784_s1 + $0x34] ss:$8 sps:$4 sm:$0xff] (!%p442_p9)   ;;  %v7335_v41 = vld [vmem:[%s9784_s1 + $0x30] ss:$8 sps:$4 sm:$0xff] (!%p442_p9)  }
  0x17   : > { %s9819_s17 = smov (!%p490_p10, %s6113_s17), 63  ;;  %v7343_v42 = vld [vmem:[%s9784_s1 + $0x44] ss:$8 sps:$4 sm:$0xff]   ;;  %v7341_v43 = vld [vmem:[%s9784_s1 + $0x40] ss:$8 sps:$4 sm:$0xff]   ;;  %vm1361_vm3 = vcmask 1046528  }
  0x18   : > { %s6114_s23 = sshll.u32 %s9819_s17, 2  ;;  %v7348_v44 = vld [vmem:[%s9784_s1 + $0x54] ss:$8 sps:$4 sm:$0xff]   ;;  %v7346_v49 = vld [vmem:[%s9784_s1 + $0x50] ss:$8 sps:$4 sm:$0xff]   ;;  %vm2213_vm4 = vcmask 1045504  }
  0x19   : > { %s7848_s18 = scalar_lea.vmem %s9783_s0, %s6114_s23  ;;  %875 = vmatpush1.bf16.msra.mxu0 %v7306_v6  ;;  %v7352_v50 = vld [vmem:[%s9784_s1 + $0xc4] ss:$8 sps:$4 sm:$0xff]   ;;  %vm1771_vm2 = vsmask.f32 6400  ;;  %vm2859_vm5 = vcmask 1014784   ;;  %vm3341_vm6 = vcmask 1043456  }
  0x1a   : > { %v7857_v8 = vld [vmem:[%s7848_s18] sm:$0xff]   ;;  %v7863_v10 = vld [vmem:[%s7848_s18 + $0x8] sm:$0xff]   ;;  %876 = vmatprep.subr.bf16.mxu0 %v7307_v7  ;;  %v7887_v21 = vld [vmem:[%s7848_s18 + $0x10] sm:$0xff]   ;;  %vm3319_vm7 = vcmask 326656   ;;  %vm3787_vm8 = vcmask 1041408   ;;  %vm3765_vm9 = vcmask 687104  }
  0x1b   : > { %v637_v11 = vshll.u32 %v7857_v8, 16  ;;  %v635_v14 = vshrl.u32 %v7857_v8, 16  ;;  %v642_v16 = vshll.u32 %v7863_v10, 16  ;;  %v646_v25 = vshrl.u32 %v7863_v10, 16  ;;  %v7903_v28 = vld [vmem:[%s7848_s18 + $0x18] sm:$0xff]   ;;  %v7929_v39 = vld [vmem:[%s7848_s18 + $0x20] sm:$0xff]  }
  0x1c   : > { %v650_v26 = vshll.u32 %v7887_v21, 16  ;;  %v658_v33 = vshll.u32 %v7903_v28, 16  ;;  %v654_v35 = vshrl.u32 %v7887_v21, 16  ;;  %v662_v46 = vshrl.u32 %v7903_v28, 16  ;;  %v7950_v48 = vld [vmem:[%s7848_s18 + $0x28] sm:$0xff]   ;;  %v7969_v56 = vld [vmem:[%s7848_s18 + $0x30] sm:$0xff]  }
  0x1d   : > { %877 = vmatpush1.bf16.msra.mxu0 %v7309_v9  ;;  %v639_v15 = vrot.slane %v637_v11, 1  ;;  %v644_v20 = vrot.slane %v642_v16, 1  ;;  %v666_v47 = vshll.u32 %v7929_v39, 16  ;;  %v670_v54 = vshrl.u32 %v7929_v39, 16  ;;  %v7977_v59 = vld [vmem:[%s7848_s18 + $0x38] sm:$0xff]   ;;  %v7991_v4 = vld [vmem:[%s7848_s18 + $0x40] sm:$0xff]  }
  0x1e   : > { %878 = vmatprep.subr.bf16.mxu0 %v7310_v12  ;;  %v652_v30 = vrot.slane %v650_v26, 1  ;;  %v660_v38 = vrot.slane %v658_v33, 1  ;;  %v674_v55 = vshll.u32 %v7950_v48, 16  ;;  %v682_v60 = vshll.u32 %v7969_v56, 16  ;;  %s486_s29 = sand.u32 1, %s7686_s19  }
  0x1f   : > { %v640_v19 = vor.u32 %v639_v15, %v635_v14  ;;  %v648_v29 = vor.u32 %v646_v25, %v644_v20  ;;  %v668_v52 = vrot.slane %v666_v47, 1  ;;  %v678_v62 = vshrl.u32 %v7950_v48, 16  ;;  %v8004_v15 = vld [vmem:[%s7848_s18 + $0x48] sm:$0xff]   ;;  %s6112_s16 = sshll.u32 %s486_s29, 3 }
  0x20   : > { %v656_v40 = vor.u32 %v654_v35, %v652_v30  ;;  %v664_v51 = vor.u32 %v662_v46, %v660_v38  ;;  %v676_v58 = vrot.slane %v674_v55, 1  ;;  %v684_v63 = vrot.slane %v682_v60, 1  ;;  %s488_s27 = scalar_lea.vmem [#allocation2], %s6112_s16  ;;  %s7699_s16 = smov [#allocation2]  }
  0x21   : > { %879 = vmatpush1.bf16.msra.mxu0 %v7312_v13  ;;  %v645_v24 = vsel %vm633_vm0, %v640_v19, %v644_v20  ;;  %v653_v34 = vsel %vm633_vm0, %v648_v29, %v652_v30  ;;  %v672_v57 = vor.u32 %v670_v54, %v668_v52  ;;  %v686_v0 = vshrl.u32 %v7969_v56, 16  ;;  %s6049_s26 = sshll.u32 %s488_s27, 4  ;;  %s7636_s23 = sshll.u32 %s7699_s16, 4  ;;  %s9743_s26 = int_to_ptr.vmem [resolvable:$true] %s6049_s26  ;;  %s7637_s23 = int_to_ptr.vmem [resolvable:$false] %s7636_s23 }
  0x22   : > { %880 = vmatprep.subr.bf16.mxu0 %v7313_v17  ;;  %v661_v45 = vsel %vm633_vm0, %v656_v40, %v660_v38  ;;  %v669_v53 = vsel %vm633_vm0, %v664_v51, %v668_v52  ;;  %v690_v1 = vshll.u32 %v7977_v59, 16  ;;  %v680_v3 = vor.u32 %v678_v62, %v676_v58  ;;  %s7632_s30 = scalar_lea.vmem %s9743_s26, 128  ;;  %s7638_s25 = scalar_lea.vmem %s7637_s23, 256 }
  0x23   : > { %v677_v61 = vsel %vm633_vm0, %v672_v57, %v676_v58  ;;  %v694_v7 = vshrl.u32 %v7977_v59, 16  ;;  %v698_v9 = vshll.u32 %v7991_v4, 16  ;;  %v688_v12 = vor.u32 %v686_v0, %v684_v63  ;;  %p7633_p11 = scmp.ne.s32.totalorder %s9743_s26, %s7632_s30  ;;  %p7639_p0 = scmp.lt.s32.totalorder %s9743_s26, %s7637_s23 }
  0x24   : > { %v685_v5 = vsel %vm633_vm0, %v680_v3, %v684_v63  ;;  %v692_v6 = vrot.slane %v690_v1, 1  ;;  %v702_v20 = vshrl.u32 %v7991_v4, 16  ;;  %v710_v40 = vshrl.u32 %v8004_v15, 16  ;;  %v8068_v3 = vld [vmem:[%s7848_s18 + $0x78] sm:$0xff]   ;;  %p7640_p1 = scmp.lt.s32.totalorder %s7638_s25, %s7632_s30 }
  0x25   : > { %881 = vmatpush1.bf16.msra.mxu0 %v7315_v18  ;;  %v700_v18 = vrot.slane %v698_v9, 1  ;;  %vm4910_vm10 = vcmask 883712   ;;  %vm5172_vm11 = vcmask 261120   ;;  %vm7698_vm12 = vmmov 0   ;;  %p7634_p12 = pnand %p7633_p11, %p7818_p5 }
  0x26   : > { %1155 = vmatprep.subr.bf16.mxu0 %v7320_v22  ;;  %v693_v13 = vsel %vm633_vm0, %v688_v12, %v692_v6  ;;  %v696_v17 = vor.u32 %v694_v7, %v692_v6  ;;  %v706_v22 = vshll.u32 %v8004_v15, 16  ;;  %vm5436_vm13 = vcmask 654336   ;;  %p7641_p2 = por %p7640_p1, %p7639_p0 }
  0x27   : > { %v704_v29 = vor.u32 %v702_v20, %v700_v18  ;;  %vm5887_vm14 = vcmask 982016   ;;  %vm6033_vm15 = vcmask 80896   ;;  %p7635_p13 = pneg %p7634_p12 }
  0x28   : > { %6155 = vmatmul.mubr.msk.bf16.vlgmr.msra.gmra.mrb[0].mxu0 %vm821_vm1, %v645_v24  ;;  %v701_v19 = vsel %vm633_vm0, %v696_v17, %v700_v18  ;;  %v8019_v24 = vld [vmem:[%s7848_s18 + $0x58] sm:$0xff]   ;;  %v708_v30 = vrot.slane %v706_v22, 1  ;;  %v754_v17 = vshll.u32 %v8068_v3, 16 }
  0x29   : > { %1156 = vmatpush1.bf16.msra.mxu0 %v7318_v23  ;;  %912 = vmatprep.mubr.bf16.mxu0 %v7696_v2  ;;  %v8016_v23 = vld [vmem:[%s7848_s18 + $0x50] sm:$0xff]   ;;  %p7642_p3 = pnand %p7641_p2, %p7635_p13 }
  0x2a   : > { %1157 = vmatprep.subr.bf16.mxu0 %v7326_v27  ;;  %v8022_v27 = vld [vmem:[%s7848_s18 + $0x60] sm:$0xff]   ;;  %v709_v38 = vsel %vm633_vm0, %v704_v29, %v708_v30 }
  0x2d   : > { %1158 = vmatpush1.bf16.msra.mxu0 %v7324_v31  ;;  %v8031_v31 = vld [vmem:[%s7848_s18 + $0x68] sm:$0xff]  }
  0x2e   : > { %1159 = vmatprep.subr.bf16.mxu0 %v7331_v32  ;;  %v8034_v32 = vld [vmem:[%s7848_s18 + $0x70] sm:$0xff]   ;;  %v742_v51 = vshrl.u32 %v8031_v31, 16 }
  0x2f   : > { %v746_v52 = vshll.u32 %v8034_v32, 16 }
  0x30   : > { %6156 = vmatmul.mubr.msk.bf16.gmra.mrb[4].mxu0 %vm821_vm1, %v653_v34  ;;  %v714_v34 = vshll.u32 %v8016_v23, 16 }
  0x31   : > { %922 = vmatprep.mubr.bf16.mxu0 %v7696_v2  ;;  %1160 = vmatpush1.bf16.msra.mxu0 %v7329_v36  ;;  %v722_v36 = vshll.u32 %v8019_v24, 16  ;;  %v748_v12 = vrot.slane %v746_v52, 1 }
  0x32   : > { %1161 = vmatprep.subr.bf16.mxu0 %v7337_v37  ;;  %v730_v37 = vshll.u32 %v8022_v27, 16 }
  0x35   : > { %1162 = vmatpush1.bf16.msra.mxu0 %v7335_v41  ;;  %v718_v41 = vshrl.u32 %v8016_v23, 16 }
  0x36   : > { %1163 = vmatprep.subr.bf16.mxu0 %v7343_v42  ;;  %v726_v42 = vshrl.u32 %v8019_v24, 16 }
  0x38   : > { %6157 = vmatmul.mubr.msk.bf16.gmra.mrb[8].mxu0 %vm821_vm1, %v661_v45  ;;  %v734_v45 = vshrl.u32 %v8022_v27, 16 }
  0x39   : > { %932 = vmatprep.mubr.bf16.mxu0 %v7696_v2  ;;  %1164 = vmatpush1.bf16.msra.mxu0 %v7341_v43  ;;  %v716_v43 = vrot.slane %v714_v34, 1 }
  0x3a   : > { %1165 = vmatprep.subr.bf16.mxu0 %v7348_v44  ;;  %v724_v44 = vrot.slane %v722_v36, 1 }
  0x3b   : > { %v720_v58 = vor.u32 %v718_v41, %v716_v43 }
  0x3c   : > { %v728_v63 = vor.u32 %v726_v42, %v724_v44 }
  0x3d   : > { %1166 = vmatpush1.bf16.msra.mxu0 %v7346_v49  ;;  %v732_v49 = vrot.slane %v730_v37, 1 }
  0x3e   : > { %1501 = vmatprep.subr.bf16.mxu0 %v7352_v50  ;;  %v738_v50 = vshll.u32 %v8031_v31, 16 }
  0x3f   : > { %v736_v18 = vor.u32 %v734_v45, %v732_v49 }
  0x40   : > { %6158 = vmatmul.mubr.msk.bf16.gmra.mrb[12].mxu0 %vm821_vm1, %v669_v53  ;;  %v712_v53 = vor.u32 %v710_v40, %v708_v30  ;;  %v740_v6 = vrot.slane %v738_v50, 1 }
  0x41   : > { %942 = vmatprep.mubr.bf16.mxu0 %v7696_v2 }
  0x42   : > { %v717_v57 = vsel %vm633_vm0, %v712_v53, %v716_v43  ;;  %v744_v29 = vor.u32 %v742_v51, %v740_v6 }
  0x44   : > { %v749_v30 = vsel %vm633_vm0, %v744_v29, %v748_v12  ;;  %v7367_v29 = vld [vmem:[%s9784_s1 + $0x114] ss:$8 sps:$4 sm:$0xff]  }
  0x48   : > { %6159 = vmatmul.mubr.msk.bf16.gmra.mrb[16].mxu0 %vm821_vm1, %v677_v61  ;;  %v725_v61 = vsel %vm633_vm0, %v720_v58, %v724_v44  ;;  %v7355_v58 = vld [vmem:[%s9784_s1 + $0xd4] ss:$8 sps:$4 sm:$0xff]  }
  0x49   : > { %952 = vmatprep.mubr.bf16.mxu0 %v7696_v2 }
  0x50   : > { %6160 = vmatmul.mubr.msk.bf16.gmra.mrb[20].mxu0 %vm821_vm1, %v685_v5  ;;  %v733_v5 = vsel %vm633_vm0, %v728_v63, %v732_v49  ;;  %v758_v49 = vshrl.u32 %v8068_v3, 16  ;;  %v7358_v63 = vld [vmem:[%s9784_s1 + $0xe4] ss:$8 sps:$4 sm:$0xff]  }
  0x51   : > { %962 = vmatprep.mubr.bf16.mxu0 %v7696_v2 }
  0x58   : > { %6161 = vmatmul.mubr.msk.bf16.gmra.mrb[24].mxu0 %vm821_vm1, %v693_v13  ;;  %v750_v13 = vshrl.u32 %v8034_v32, 16 }
  0x59   : > { %972 = vmatprep.mubr.bf16.mxu0 %v7696_v2 }
  0x5a   : > { %v752_v43 = vor.u32 %v750_v13, %v748_v12  ;;  %v7359_v12 = vld [vmem:[%s9784_s1 + $0xf0] ss:$8 sps:$4 sm:$0xff]  }
  0x60   : > { %6162 = vmatmul.mubr.msk.bf16.gmra.mrb[28].mxu0 %vm821_vm1, %v701_v19  ;;  %v741_v19 = vsel %vm633_vm0, %v736_v18, %v740_v6  ;;  %v7361_v6 = vld [vmem:[%s9784_s1 + $0xf4] ss:$8 sps:$4 sm:$0xff]   ;;  %v7364_v18 = vld [vmem:[%s9784_s1 + $0x104] ss:$8 sps:$4 sm:$0xff]  }
  0x61   : > { %982 = vmatprep.mubr.bf16.mxu0 %v7696_v2 }
  0x68   : > { %6163 = vmatmul.mubr.msk.bf16.gmra.mrb[32].mxu0 %vm821_vm1, %v709_v38  ;;  %v756_v38 = vrot.slane %v754_v17, 1 }
  0x69   : > { %992 = vmatprep.mubr.bf16.mxu0 %v7696_v2 }
  0x6a   : > { %v757_v44 = vsel %vm633_vm0, %v752_v43, %v756_v38  ;;  %v760_v53 = vor.u32 %v758_v49, %v756_v38  ;;  %v7370_v38 = vld [vmem:[%s9784_s1 + $0x124] ss:$8 sps:$4 sm:$0xff]   ;;  %v1772_v43 = vrot.slane %v635_v14, 1 }
  0x6b   : > { %v8198_v14 = vld [vmem:[%s7848_s18 + $0x8] sm:$0xff]  }
  0x70   : > { %6164 = vmatmul.mubr.msk.bf16.gmra.mrb[36].mxu0 %vm821_vm1, %v717_v57  ;;  %v7350_v57 = vld [vmem:[%s9784_s1 + $0xc0] ss:$8 sps:$4 sm:$0xff]  }
  0x71   : > { %1002 = vmatprep.mubr.bf16.mxu0 %v7696_v2 }
  0x78   : > { %6165 = vmatmul.mubr.msk.bf16.gmra.mrb[40].mxu0 %vm821_vm1, %v725_v61  ;;  %v7353_v61 = vld [vmem:[%s9784_s1 + $0xd0] ss:$8 sps:$4 sm:$0xff]  }
  0x79   : > { %1012 = vmatprep.mubr.bf16.mxu0 %v7696_v2 }
  0x80   : > { %6166 = vmatmul.mubr.msk.bf16.gmra.mrb[44].mxu0 %vm821_vm1, %v733_v5  ;;  %v7356_v5 = vld [vmem:[%s9784_s1 + $0xe0] ss:$8 sps:$4 sm:$0xff]  }
  0x81   : > { %1022 = vmatprep.mubr.bf16.mxu0 %v7696_v2 }
  0x88   : > { %6167 = vmatmul.mubr.msk.bf16.gmra.mrb[48].mxu0 %vm821_vm1, %v741_v19  ;;  %v7362_v19 = vld [vmem:[%s9784_s1 + $0x100] ss:$8 sps:$4 sm:$0xff]  }
  0x89   : > { %1032 = vmatprep.mubr.bf16.mxu0 %v7696_v2 }
  0x90   : > { %6168 = vmatmul.mubr.msk.bf16.gmra.mrb[52].mxu0 %vm821_vm1, %v749_v30  ;;  %v7365_v30 = vld [vmem:[%s9784_s1 + $0x110] ss:$8 sps:$4 sm:$0xff]  }
  0x91   : > { %1042 = vmatprep.mubr.bf16.mxu0 %v7696_v2 }
  0x98   : > { %6169 = vmatmul.mubr.msk.bf16.gmra.mrb[56].mxu0 %vm821_vm1, %v757_v44  ;;  %v1773_v44 = vrot.slane %v637_v11, 2 }
  0x99   : > { %1052 = vmatprep.mubr.bf16.mxu0 %v7696_v2 }
  0x9a   : > { %v1774_v11 = vor.u32 %v1773_v44, %v1772_v43  ;;  %v8236_v43 = vld [vmem:[%s7848_s18 + $0x18] sm:$0xff]  }
  0x9b   : > { %v1367_v44 = vrot.slane %v8236_v43, 1 }
  0xa0   : > { %6170 = vmatmul.mubr.msk.bf16.gmra.mrb[60].mxu0 %vm821_vm1, %v760_v53  ;;  %v1776_v53 = vrot.slane %v642_v16, 2 }
  0xa1   : > { %1187 = vmatprep.mubr.bf16.mxu0 %v7696_v2 }
  0xa8   : > { %6183 = vmatmul.mubr.msk.bf16.vlgmr.msra.gmra.mrb[0].mxu0 %vm821_vm1, %v7857_v8  ;;  %v1363_v8 = vrot.slane %v8198_v14, 1 }
  0xa9   : > { %1502 = vmatpush1.bf16.msra.mxu0 %v7350_v57  ;;  %1197 = vmatprep.mubr.bf16.mxu0 %v7696_v2  ;;  %v1775_v57 = vrot.slane %v646_v25, 1 }
  0xaa   : > { %1503 = vmatprep.subr.bf16.mxu0 %v7355_v58  ;;  %v8193_v58 = vld [vmem:[%s7848_s18] sm:$0xff]  }
  0xab   : > { %v8201_v16 = vor.u32 %v1776_v53, %v1775_v57  ;;  %v7377_v53 = vld [vmem:[%s9784_s1 + $0x150] ss:$8 sps:$4 sm:$0xff]   ;;  %v7382_v57 = vld [vmem:[%s9784_s1 + $0x164] ss:$8 sps:$4 sm:$0xff]  }
  0xad   : > { %1504 = vmatpush1.bf16.msra.mxu0 %v7353_v61  ;;  %v1362_v61 = vrot.slane %v8193_v58, 1 }
  0xae   : > { %1505 = vmatprep.subr.bf16.mxu0 %v7358_v63  ;;  %v7368_v63 = vld [vmem:[%s9784_s1 + $0x120] ss:$8 sps:$4 sm:$0xff]  }
  0xaf   : > { %v1364_v25 = vsel %vm1361_vm3, %v1362_v61, %v1363_v8 }
  0xb0   : > { %6184 = vmatmul.mubr.msk.bf16.gmra.mrb[4].mxu0 %vm821_vm1, %v7863_v10  ;;  %v8205_v10 = vsel %vm1771_vm2, %v1774_v11, %v8201_v16  ;;  %v7385_v11 = vld [vmem:[%s9784_s1 + $0x174] ss:$8 sps:$4 sm:$0xff]  }
  0xb1   : > { %1207 = vmatprep.mubr.bf16.mxu0 %v7696_v2  ;;  %1506 = vmatpush1.bf16.msra.mxu0 %v7356_v5  ;;  %v7373_v5 = vld [vmem:[%s9784_s1 + $0x134] ss:$8 sps:$4 sm:$0xff]  }
  0xb2   : > { %1507 = vmatprep.subr.bf16.mxu0 %v7361_v6  ;;  %v8217_v6 = vld [vmem:[%s7848_s18 + $0x10] sm:$0xff]  }
  0xb5   : > { %1508 = vmatpush1.bf16.msra.mxu0 %v7359_v12  ;;  %v1365_v12 = vrot.slane %v8217_v6, 1 }
  0xb6   : > { %1509 = vmatprep.subr.bf16.mxu0 %v7364_v18  ;;  %v7371_v18 = vld [vmem:[%s9784_s1 + $0x130] ss:$8 sps:$4 sm:$0xff]  }
  0xb7   : > { %v1368_v61 = vsel %vm1361_vm3, %v1365_v12, %v1367_v44 }
  0xb8   : > { %6185 = vmatmul.mubr.msk.bf16.gmra.mrb[8].mxu0 %vm821_vm1, %v7887_v21  ;;  %v7394_v21 = vld [vmem:[%s9784_s1 + $0x1a4] ss:$8 sps:$4 sm:$0xff]  }
  0xb9   : > { %1217 = vmatprep.mubr.bf16.mxu0 %v7696_v2  ;;  %1510 = vmatpush1.bf16.msra.mxu0 %v7362_v19  ;;  %v7376_v19 = vld [vmem:[%s9784_s1 + $0x144] ss:$8 sps:$4 sm:$0xff]  }
  0xba   : > { %1511 = vmatprep.subr.bf16.mxu0 %v7367_v29  ;;  %v1366_v29 = vsel %vm1361_vm3, %v1363_v8, %v1365_v12  ;;  %v7380_v8 = vld [vmem:[%s9784_s1 + $0x160] ss:$8 sps:$4 sm:$0xff]  }
  0xbd   : > { %1512 = vmatpush1.bf16.msra.mxu0 %v7365_v30  ;;  %v7374_v30 = vld [vmem:[%s9784_s1 + $0x140] ss:$8 sps:$4 sm:$0xff]  }
  0xbe   : > { %1943 = vmatprep.subr.bf16.mxu0 %v7370_v38  ;;  %v7379_v38 = vld [vmem:[%s9784_s1 + $0x154] ss:$8 sps:$4 sm:$0xff]  }
  0xc0   : > { %6186 = vmatmul.mubr.msk.bf16.gmra.mrb[12].mxu0 %vm821_vm1, %v7903_v28  ;;  %v7395_v28 = vld [vmem:[%s9784_s1 + $0x1b0] ss:$8 sps:$4 sm:$0xff]  }
  0xc1   : > { %1227 = vmatprep.mubr.bf16.mxu0 %v7696_v2 }
  0xc8   : > { %6187 = vmatmul.mubr.msk.bf16.gmra.mrb[16].mxu0 %vm821_vm1, %v7929_v39 }
  0xc9   : > { %1237 = vmatprep.mubr.bf16.mxu0 %v7696_v2 }
  0xd0   : > { %6188 = vmatmul.mubr.msk.bf16.gmra.mrb[20].mxu0 %vm821_vm1, %v7950_v48 }
  0xd1   : > { %1247 = vmatprep.mubr.bf16.mxu0 %v7696_v2 }
  0xd8   : > { %6189 = vmatmul.mubr.msk.bf16.gmra.mrb[24].mxu0 %vm821_vm1, %v7969_v56 }
  0xd9   : > { %1257 = vmatprep.mubr.bf16.mxu0 %v7696_v2 }
  0xe0   : > { %6190 = vmatmul.mubr.msk.bf16.gmra.mrb[28].mxu0 %vm821_vm1, %v7977_v59 }
  0xe1   : > { %1267 = vmatprep.mubr.bf16.mxu0 %v7696_v2 }
  0xe8   : > { %6191 = vmatmul.mubr.msk.bf16.gmra.mrb[32].mxu0 %vm821_vm1, %v7991_v4 }
  0xe9   : > { %1277 = vmatprep.mubr.bf16.mxu0 %v7696_v2 }
  0xf0   : > { %6192 = vmatmul.mubr.msk.bf16.gmra.mrb[36].mxu0 %vm821_vm1, %v8004_v15 }
  0xf1   : > { %1287 = vmatprep.mubr.bf16.mxu0 %v7696_v2 }
  0xf8   : > { %6193 = vmatmul.mubr.msk.bf16.gmra.mrb[40].mxu0 %vm821_vm1, %v8016_v23 }
  0xf9   : > { %1297 = vmatprep.mubr.bf16.mxu0 %v7696_v2 }
 0x100   : > { %6194 = vmatmul.mubr.msk.bf16.gmra.mrb[44].mxu0 %vm821_vm1, %v8019_v24 }
 0x101   : > { %1307 = vmatprep.mubr.bf16.mxu0 %v7696_v2 }
 0x108   : > { %6195 = vmatmul.mubr.msk.bf16.gmra.mrb[48].mxu0 %vm821_vm1, %v8022_v27 }
 0x109   : > { %1317 = vmatprep.mubr.bf16.mxu0 %v7696_v2 }
 0x110   : > { %6196 = vmatmul.mubr.msk.bf16.gmra.mrb[52].mxu0 %vm821_vm1, %v8031_v31 }
 0x111   : > { %1327 = vmatprep.mubr.bf16.mxu0 %v7696_v2 }
 0x118   : > { %6197 = vmatmul.mubr.msk.bf16.gmra.mrb[56].mxu0 %vm821_vm1, %v8034_v32 }
 0x119   : > { %1337 = vmatprep.mubr.bf16.mxu0 %v7696_v2 }
 0x120   : > { %6198 = vmatmul.mubr.msk.bf16.gmra.mrb[60].mxu0 %vm821_vm1, %v8068_v3 }
 0x121   : > { %1533 = vmatprep.mubr.bf16.mxu0 %v7696_v2 }
 0x128   : > { %6223 = vmatmul.mubr.msk.bf16.vlgmr.msra.gmra.mrb[0].mxu0 %vm821_vm1, %v1364_v25  ;;  %v1369_v25 = vrot.slane %v7929_v39, 1  ;;  %v7401_v39 = vld [vmem:[%s9784_s1 + $0x1d0] ss:$8 sps:$4 sm:$0xff]  }
 0x129   : > { %1944 = vmatpush1.bf16.msra.mxu0 %v7368_v63  ;;  %1543 = vmatprep.mubr.bf16.mxu0 %v7696_v2  ;;  %v7383_v63 = vld [vmem:[%s9784_s1 + $0x170] ss:$8 sps:$4 sm:$0xff]  }
 0x12a   : > { %1945 = vmatprep.subr.bf16.mxu0 %v7373_v5  ;;  %v7388_v5 = vld [vmem:[%s9784_s1 + $0x184] ss:$8 sps:$4 sm:$0xff]   ;;  %v1370_v12 = vsel %vm1361_vm3, %v1367_v44, %v1369_v25 }
 0x12d   : > { %1946 = vmatpush1.bf16.msra.mxu0 %v7371_v18  ;;  %v1371_v18 = vrot.slane %v7950_v48, 1 }
 0x12e   : > { %1947 = vmatprep.subr.bf16.mxu0 %v7376_v19 }
 0x12f   : > { %v1372_v19 = vsel %vm1361_vm3, %v1369_v25, %v1371_v18 }
 0x130   : > { %6224 = vmatmul.mubr.msk.bf16.gmra.mrb[4].mxu0 %vm821_vm1, %v1366_v29  ;;  %v1373_v29 = vrot.slane %v7969_v56, 1 }
 0x131   : > { %1553 = vmatprep.mubr.bf16.mxu0 %v7696_v2  ;;  %1948 = vmatpush1.bf16.msra.mxu0 %v7374_v30 }
 0x132   : > { %1949 = vmatprep.subr.bf16.mxu0 %v7379_v38  ;;  %v1374_v30 = vsel %vm1361_vm3, %v1371_v18, %v1373_v29  ;;  %v1375_v38 = vrot.slane %v7977_v59, 1 }
 0x134   : > { %v1376_v44 = vsel %vm1361_vm3, %v1373_v29, %v1375_v38 }
 0x135   : > { %1950 = vmatpush1.bf16.msra.mxu0 %v7377_v53  ;;  %v1377_v53 = vrot.slane %v7991_v4, 1 }
 0x136   : > { %1951 = vmatprep.subr.bf16.mxu0 %v7382_v57 }
 0x137   : > { %v1378_v57 = vsel %vm1361_vm3, %v1375_v38, %v1377_v53 }
 0x138   : > { %6225 = vmatmul.mubr.msk.bf16.gmra.mrb[8].mxu0 %vm821_vm1, %v1368_v61  ;;  %v1379_v61 = vrot.slane %v8004_v15, 1 }
 0x139   : > { %1563 = vmatprep.mubr.bf16.mxu0 %v7696_v2  ;;  %1952 = vmatpush1.bf16.msra.mxu0 %v7380_v8 }
 0x13a   : > { %1953 = vmatprep.subr.bf16.mxu0 %v7385_v11  ;;  %v1380_v8 = vsel %vm1361_vm3, %v1377_v53, %v1379_v61  ;;  %v1381_v11 = vrot.slane %v8016_v23, 1 }
 0x13c   : > { %v1382_v25 = vsel %vm1361_vm3, %v1379_v61, %v1381_v11  ;;  %v1779_v61 = vrot.slane %v654_v35, 1  ;;  %v1783_v35 = vrot.slane %v662_v46, 1 }
 0x13d   : > { %1954 = vmatpush1.bf16.msra.mxu0 %v7383_v63  ;;  %v1383_v63 = vrot.slane %v8019_v24, 1 }
 0x13e   : > { %2353 = vmatprep.subr.bf16.mxu0 %v7388_v5 }
 0x13f   : > { %v1384_v5 = vsel %vm1361_vm3, %v1381_v11, %v1383_v63  ;;  %v7391_v11 = vld [vmem:[%s9784_s1 + $0x194] ss:$8 sps:$4 sm:$0xff]  }
 0x140   : > { %6226 = vmatmul.mubr.msk.bf16.gmra.mrb[12].mxu0 %vm821_vm1, %v1370_v12  ;;  %v1385_v12 = vrot.slane %v8022_v27, 1 }
 0x141   : > { %1573 = vmatprep.mubr.bf16.mxu0 %v7696_v2 }
 0x142   : > { %v1386_v18 = vsel %vm1361_vm3, %v1383_v63, %v1385_v12  ;;  %v7389_v63 = vld [vmem:[%s9784_s1 + $0x190] ss:$8 sps:$4 sm:$0xff]  }
 0x148   : > { %6227 = vmatmul.mubr.msk.bf16.gmra.mrb[16].mxu0 %vm821_vm1, %v1372_v19  ;;  %v1387_v19 = vrot.slane %v8031_v31, 1 }
 0x149   : > { %1583 = vmatprep.mubr.bf16.mxu0 %v7696_v2 }
 0x14a   : > { %v1388_v29 = vsel %vm1361_vm3, %v1385_v12, %v1387_v19  ;;  %v7397_v12 = vld [vmem:[%s9784_s1 + $0x1b4] ss:$8 sps:$4 sm:$0xff]  }
 0x150   : > { %6228 = vmatmul.mubr.msk.bf16.gmra.mrb[20].mxu0 %vm821_vm1, %v1374_v30  ;;  %v1389_v30 = vrot.slane %v8034_v32, 1 }
 0x151   : > { %1593 = vmatprep.mubr.bf16.mxu0 %v7696_v2 }
 0x152   : > { %v1390_v38 = vsel %vm1361_vm3, %v1387_v19, %v1389_v30  ;;  %v1788_v19 = vrot.slane %v666_v47, 2 }
 0x158   : > { %6229 = vmatmul.mubr.msk.bf16.gmra.mrb[24].mxu0 %vm821_vm1, %v1376_v44  ;;  %v1391_v44 = vrot.slane %v8068_v3, 1 }
 0x159   : > { %1603 = vmatprep.mubr.bf16.mxu0 %v7696_v2 }
 0x15a   : > { %v1392_v53 = vsel %vm1361_vm3, %v1389_v30, %v1391_v44  ;;  %v7403_v30 = vld [vmem:[%s9784_s1 + $0x1d4] ss:$8 sps:$4 sm:$0xff]  }
 0x160   : > { %6230 = vmatmul.mubr.msk.bf16.gmra.mrb[28].mxu0 %vm821_vm1, %v1378_v57  ;;  %v7386_v57 = vld [vmem:[%s9784_s1 + $0x180] ss:$8 sps:$4 sm:$0xff]  }
 0x161   : > { %1613 = vmatprep.mubr.bf16.mxu0 %v7696_v2 }
 0x168   : > { %6231 = vmatmul.mubr.msk.bf16.gmra.mrb[32].mxu0 %vm821_vm1, %v1380_v8  ;;  %v1780_v8 = vrot.slane %v650_v26, 2 }
 0x169   : > { %1623 = vmatprep.mubr.bf16.mxu0 %v7696_v2 }
 0x170   : > { %6232 = vmatmul.mubr.msk.bf16.gmra.mrb[36].mxu0 %vm821_vm1, %v1382_v25  ;;  %v1781_v25 = vor.u32 %v1780_v8, %v1779_v61  ;;  %v1795_v61 = vrot.slane %v686_v0, 1  ;;  %v1796_v8 = vrot.slane %v682_v60, 2  ;;  %v1803_v60 = vrot.slane %v702_v20, 1 }
 0x171   : > { %1633 = vmatprep.mubr.bf16.mxu0 %v7696_v2 }
 0x172   : > { %v1782_v26 = vsel %vm1771_vm2, %v8201_v16, %v1781_v25  ;;  %v1797_v48 = vor.u32 %v1796_v8, %v1795_v61  ;;  %v7627_v8 = vld [vmem:[%s7848_s18 + $0x48] sm:$0xff]  }
 0x178   : > { %6233 = vmatmul.mubr.msk.bf16.gmra.mrb[40].mxu0 %vm821_vm1, %v1384_v5  ;;  %v7392_v5 = vld [vmem:[%s9784_s1 + $0x1a0] ss:$8 sps:$4 sm:$0xff]  }
 0x179   : > { %1643 = vmatprep.mubr.bf16.mxu0 %v7696_v2 }
 0x180   : > { %6234 = vmatmul.mubr.msk.bf16.gmra.mrb[44].mxu0 %vm821_vm1, %v1386_v18  ;;  %v1787_v18 = vrot.slane %v670_v54, 1  ;;  %v1791_v54 = vrot.slane %v678_v62, 1  ;;  %v1799_v62 = vrot.slane %v694_v7, 1 }
 0x181   : > { %1653 = vmatprep.mubr.bf16.mxu0 %v7696_v2 }
 0x188   : > { %6235 = vmatmul.mubr.msk.bf16.gmra.mrb[48].mxu0 %vm821_vm1, %v1388_v29  ;;  %v7398_v29 = vld [vmem:[%s9784_s1 + $0x1c0] ss:$8 sps:$4 sm:$0xff]  }
 0x189   : > { %1663 = vmatprep.mubr.bf16.mxu0 %v7696_v2 }
 0x190   : > { %6236 = vmatmul.mubr.msk.bf16.gmra.mrb[52].mxu0 %vm821_vm1, %v1390_v38  ;;  %v1789_v38 = vor.u32 %v1788_v19, %v1787_v18  ;;  %v7623_v19 = vld [vmem:[%s7848_s18 + $0x28] sm:$0xff]  }
 0x191   : > { %1673 = vmatprep.mubr.bf16.mxu0 %v7696_v2 }
 0x198   : > { %6237 = vmatmul.mubr.msk.bf16.gmra.mrb[56].mxu0 %vm821_vm1, %v1392_v53 }
 0x199   : > { %1683 = vmatprep.mubr.bf16.mxu0 %v7696_v2 }
 0x1a0   : > { %6238 = vmatmul.mubr.msk.bf16.gmra.mrb[60].mxu0 %vm821_vm1, %v1391_v44  ;;  %v1792_v44 = vrot.slane %v674_v55, 2 }
 0x1a1   : > { %1975 = vmatprep.mubr.bf16.mxu0 %v7696_v2 }
 0x1a2   : > { %v1793_v53 = vor.u32 %v1792_v44, %v1791_v54 }
 0x1a4   : > { %v1798_v55 = vsel %vm1771_vm2, %v1793_v53, %v1797_v48 }
 0x1a8   : > { %6263 = vmatmul.mubr.msk.bf16.vlgmr.msra.gmra.mrb[0].mxu0 %vm821_vm1, %v8205_v10  ;;  %v1784_v10 = vrot.slane %v658_v33, 2  ;;  %v7400_v33 = vld [vmem:[%s9784_s1 + $0x1c4] ss:$8 sps:$4 sm:$0xff]  }
 0x1a9   : > { %2354 = vmatpush1.bf16.msra.mxu0 %v7386_v57  ;;  %1985 = vmatprep.mubr.bf16.mxu0 %v7696_v2  ;;  %v1794_v57 = vsel %vm1771_vm2, %v1789_v38, %v1793_v53  ;;  %v7626_v53 = vld [vmem:[%s7848_s18 + $0x40] sm:$0xff]  }
 0x1aa   : > { %2355 = vmatprep.subr.bf16.mxu0 %v7391_v11  ;;  %v1785_v16 = vor.u32 %v1784_v10, %v1783_v35  ;;  %v1800_v11 = vrot.slane %v690_v1, 2  ;;  %v1807_v1 = vrot.slane %v710_v40, 1  ;;  %v1820_v35 = vrot.slane %v730_v37, 2 }
 0x1ab   : > { %v1824_v10 = vrot.slane %v738_v50, 2  ;;  %v1827_v37 = vrot.slane %v750_v13, 1 }
 0x1ac   : > { %v1786_v46 = vsel %vm1771_vm2, %v1781_v25, %v1785_v16  ;;  %v1790_v47 = vsel %vm1771_vm2, %v1785_v16, %v1789_v38  ;;  %v1801_v0 = vor.u32 %v1800_v11, %v1799_v62  ;;  %v1804_v25 = vrot.slane %v698_v9, 2  ;;  %v7628_v62 = vld [vmem:[%s7848_s18 + $0x50] sm:$0xff]  }
 0x1ad   : > { %2356 = vmatpush1.bf16.msra.mxu0 %v7389_v63  ;;  %v1808_v63 = vrot.slane %v706_v22, 2  ;;  %v1811_v9 = vrot.slane %v718_v41, 1  ;;  %v1815_v22 = vrot.slane %v726_v42, 1  ;;  %v1832_v16 = vrot.slane %v754_v17, 2 }
 0x1ae   : > { %2357 = vmatprep.subr.bf16.mxu0 %v7394_v21  ;;  %v1802_v56 = vsel %vm1771_vm2, %v1797_v48, %v1801_v0  ;;  %v1805_v7 = vor.u32 %v1804_v25, %v1803_v60  ;;  %v1812_v21 = vrot.slane %v714_v34, 2  ;;  %v1819_v34 = vrot.slane %v734_v45, 1 }
 0x1af   : > { %v1809_v20 = vor.u32 %v1808_v63, %v1807_v1  ;;  %v2215_v17 = vrot.slane %v8198_v14, 2  ;;  %v2231_v48 = vrot.slane %v7627_v8, 2  ;;  %v2233_v11 = vrot.slane %v7628_v62, 2 }
 0x1b0   : > { %6264 = vmatmul.mubr.msk.bf16.gmra.mrb[4].mxu0 %vm821_vm1, %v1782_v26  ;;  %v1806_v59 = vsel %vm1771_vm2, %v1801_v0, %v1805_v7  ;;  %v1813_v40 = vor.u32 %v1812_v21, %v1811_v9  ;;  %v1816_v26 = vrot.slane %v722_v36, 2  ;;  %v1821_v42 = vor.u32 %v1820_v35, %v1819_v34 }
 0x1b1   : > { %1995 = vmatprep.mubr.bf16.mxu0 %v7696_v2  ;;  %2358 = vmatpush1.bf16.msra.mxu0 %v7392_v5  ;;  %v1810_v4 = vsel %vm1771_vm2, %v1805_v7, %v1809_v20  ;;  %v1823_v36 = vrot.slane %v742_v51, 1  ;;  %v1828_v5 = vrot.slane %v746_v52, 2  ;;  %v2214_v52 = vrot.slane %v8193_v58, 2  ;;  %v7630_v7 = vld [vmem:[%s7848_s18 + $0x60] sm:$0xff]  }
 0x1b2   : > { %2359 = vmatprep.subr.bf16.mxu0 %v7397_v12  ;;  %v1814_v15 = vsel %vm1771_vm2, %v1809_v20, %v1813_v40  ;;  %v1817_v41 = vor.u32 %v1816_v26, %v1815_v22  ;;  %v1831_v12 = vrot.slane %v758_v49, 1  ;;  %v2219_v58 = vrot.slane %v8236_v43, 2 }
 0x1b3   : > { %v1825_v45 = vor.u32 %v1824_v10, %v1823_v36  ;;  %v1829_v51 = vor.u32 %v1828_v5, %v1827_v37  ;;  %v2216_v49 = vsel %vm2213_vm4, %v2214_v52, %v2215_v17  ;;  %v2234_v0 = vsel %vm2213_vm4, %v2231_v48, %v2233_v11  ;;  %v7406_v37 = vld [vmem:[%s9786_s3 + $0x4] ss:$8 sps:$4 sm:$0xff]  }
 0x1b4   : > { %v1818_v23 = vsel %vm1771_vm2, %v1813_v40, %v1817_v41  ;;  %v1822_v24 = vsel %vm1771_vm2, %v1817_v41, %v1821_v42  ;;  %v1833_v13 = vor.u32 %v1832_v16, %v1831_v12  ;;  %v2239_v63 = vrot.slane %v8031_v31, 2  ;;  %v2610_v41 = vld [vmem:[%s9785_s2] sm:$0x3]  ;;  %6334 = vmatprep.mubr.msk.bf16.mxu1 %vm2859_vm5, %v7406_v37 }
 0x1b5   : > { %2360 = vmatpush1.bf16.msra.mxu0 %v7395_v28  ;;  %v1826_v27 = vsel %vm1771_vm2, %v1821_v42, %v1825_v45  ;;  %v1830_v50 = vsel %vm1771_vm2, %v1825_v45, %v1829_v51  ;;  %v2217_v28 = vrot.slane %v8217_v6, 2  ;;  %v2243_v40 = vrot.slane %v8068_v3, 2 }
 0x1b6   : > { %2361 = vmatprep.subr.bf16.mxu0 %v7400_v33  ;;  %v1834_v32 = vsel %vm1771_vm2, %v1829_v51, %v1833_v13  ;;  %v2612_v31 = vlaneseq }
 0x1b7   : > { %v2218_v33 = vsel %vm2213_vm4, %v2215_v17, %v2217_v28  ;;  %v2220_v14 = vsel %vm2213_vm4, %v2217_v28, %v2219_v58 }
 0x1b8   : > { %6265 = vmatmul.mubr.msk.bf16.gmra.mrb[8].mxu0 %vm821_vm1, %v1786_v46  ;;  %v7622_v46 = vld [vmem:[%s7848_s18 + $0x20] sm:$0xff]   ;;  %v8510_v22 = vshrl.u32 %v2612_v31, 7 }
 0x1b9   : > { %2005 = vmatprep.mubr.bf16.mxu0 %v7696_v2  ;;  %2362 = vmatpush1.bf16.msra.mxu0 %v7398_v29  ;;  %v2221_v18 = vrot.slane %v7622_v46, 2  ;;  %v2223_v29 = vrot.slane %v7623_v19, 2 }
 0x1ba   : > { %2363 = vmatprep.subr.bf16.mxu0 %v7403_v30  ;;  %v7624_v30 = vld [vmem:[%s7848_s18 + $0x30] sm:$0xff]   ;;  %v2614_v26 = vsub.s32 0, %v8510_v22 }
 0x1bb   : > { %v2222_v6 = vsel %vm2213_vm4, %v2219_v58, %v2221_v18  ;;  %v2224_v43 = vsel %vm2213_vm4, %v2221_v18, %v2223_v29  ;;  %v2225_v38 = vrot.slane %v7624_v30, 2 }
 0x1bc   : > { %v8519_v3 = vrot.slane %v2610_v41, %v2614_v26 }
 0x1bd   : > { %2364 = vmatpush1.bf16.msra.mxu0 %v7401_v39  ;;  %v2226_v39 = vsel %vm2213_vm4, %v2223_v29, %v2225_v38 }
 0x1be   : > { %5319 = vmatprep.subr.bf16.mxu0 %v7696_v2 }
 0x1c0   : > { %6266 = vmatmul.mubr.msk.bf16.gmra.mrb[12].mxu0 %vm821_vm1, %v1790_v47  ;;  %v7625_v47 = vld [vmem:[%s7848_s18 + $0x38] sm:$0xff]  }
 0x1c1   : > { %2015 = vmatprep.mubr.bf16.mxu0 %v7696_v2  ;;  %v2227_v54 = vrot.slane %v7625_v47, 2 }
 0x1c3   : > { %v2228_v44 = vsel %vm2213_vm4, %v2225_v38, %v2227_v54 }
 0x1c8   : > { %6267 = vmatmul.mubr.msk.bf16.gmra.mrb[16].mxu0 %vm821_vm1, %v1794_v57  ;;  %v2229_v57 = vrot.slane %v7626_v53, 2 }
 0x1c9   : > { %2025 = vmatprep.mubr.bf16.mxu0 %v7696_v2 }
 0x1ca   : > { %v2230_v61 = vsel %vm2213_vm4, %v2227_v54, %v2229_v57 }
 0x1d0   : > { %6268 = vmatmul.mubr.msk.bf16.gmra.mrb[20].mxu0 %vm821_vm1, %v1798_v55  ;;  %v2232_v55 = vsel %vm2213_vm4, %v2229_v57, %v2231_v48 }
 0x1d1   : > { %2035 = vmatprep.mubr.bf16.mxu0 %v7696_v2 }
 0x1d8   : > { %6269 = vmatmul.mubr.msk.bf16.gmra.mrb[24].mxu0 %vm821_vm1, %v1802_v56  ;;  %v7629_v56 = vld [vmem:[%s7848_s18 + $0x58] sm:$0xff]  }
 0x1d9   : > { %2045 = vmatprep.mubr.bf16.mxu0 %v7696_v2  ;;  %v2235_v60 = vrot.slane %v7629_v56, 2 }
 0x1db   : > { %v2236_v25 = vsel %vm2213_vm4, %v2233_v11, %v2235_v60 }
 0x1e0   : > { %6270 = vmatmul.mubr.msk.bf16.gmra.mrb[28].mxu0 %vm821_vm1, %v1806_v59  ;;  %v2237_v59 = vrot.slane %v7630_v7, 2 }
 0x1e1   : > { %2055 = vmatprep.mubr.bf16.mxu0 %v7696_v2 }
 0x1e2   : > { %v2238_v1 = vsel %vm2213_vm4, %v2235_v60, %v2237_v59  ;;  %v2240_v20 = vsel %vm2213_vm4, %v2237_v59, %v2239_v63 }
 0x1e8   : > { %6271 = vmatmul.mubr.msk.bf16.gmra.mrb[32].mxu0 %vm821_vm1, %v1810_v4  ;;  %v7631_v4 = vld [vmem:[%s7848_s18 + $0x70] sm:$0xff]   ;;  %s6733_s18 = sshll.u32 %s7801_s22, 7  ;;  %s6036_s22 = scalar_lea.sflag [#allocation3], %s486_s29 }
 0x1e9   : > { %2065 = vmatprep.mubr.bf16.mxu0 %v7696_v2  ;;  %v2241_v9 = vrot.slane %v7631_v4, 2  ;;  %s9741_s17 = scalar_lea.hbm %s9798_s15, %s6733_s18 }
 0x1eb   : > { %v2242_v21 = vsel %vm2213_vm4, %v2239_v63, %v2241_v9 }
 0x1f0   : > { %6272 = vmatmul.mubr.msk.bf16.gmra.mrb[36].mxu0 %vm821_vm1, %v1814_v15  ;;  %v2244_v15 = vsel %vm2213_vm4, %v2241_v9, %v2243_v40 }
 0x1f1   : > { %2075 = vmatprep.mubr.bf16.mxu0 %v7696_v2 }
 0x1f8   : > { %6273 = vmatmul.mubr.msk.bf16.gmra.mrb[40].mxu0 %vm821_vm1, %v1818_v23  ;;  %v2618_v23 = vsub.s32 1, %v8510_v22 }
 0x1f9   : > { %2085 = vmatprep.mubr.bf16.mxu0 %v7696_v2 }
 0x1fa   : > { %v8523_v34 = vrot.slane %v2610_v41, %v2618_v23 }
 0x200   : > { %6274 = vmatmul.mubr.msk.bf16.gmra.mrb[44].mxu0 %vm821_vm1, %v1822_v24 }
 0x201   : > { %2095 = vmatprep.mubr.bf16.mxu0 %v7696_v2 }
 0x208   : > { %6275 = vmatmul.mubr.msk.bf16.gmra.mrb[48].mxu0 %vm821_vm1, %v1826_v27 }
 0x209   : > { %2105 = vmatprep.mubr.bf16.mxu0 %v7696_v2 }
 0x210   : > { %6276 = vmatmul.mubr.msk.bf16.gmra.mrb[52].mxu0 %vm821_vm1, %v1830_v50 }
 0x211   : > { %2115 = vmatprep.mubr.bf16.mxu0 %v7696_v2 }
 0x218   : > { %6277 = vmatmul.mubr.msk.bf16.gmra.mrb[56].mxu0 %vm821_vm1, %v1834_v32 }
 0x219   : > { %2125 = vmatprep.mubr.bf16.mxu0 %v7696_v2 }
 0x220   : > { %6278 = vmatmul.mubr.msk.bf16.gmra.mrb[60].mxu0 %vm821_vm1, %v1833_v13 }
 0x221   : > { %2385 = vmatprep.mubr.bf16.mxu0 %v7696_v2 }
 0x228   : > { %6303 = vmatmul.mubr.msk.bf16.vlgmr.msra.gmra.mrb[0].mxu0 %vm821_vm1, %v2216_v49 }
 0x229   : > { %2395 = vmatprep.mubr.bf16.mxu0 %v7696_v2 }
 0x230   : > { %6304 = vmatmul.mubr.msk.bf16.gmra.mrb[4].mxu0 %vm821_vm1, %v2218_v33 }
 0x231   : > { %2405 = vmatprep.mubr.bf16.mxu0 %v7696_v2 }
 0x238   : > { %6305 = vmatmul.mubr.msk.bf16.gmra.mrb[8].mxu0 %vm821_vm1, %v2220_v14 }
 0x239   : > { %2415 = vmatprep.mubr.bf16.mxu0 %v7696_v2 }
 0x240   : > { %6306 = vmatmul.mubr.msk.bf16.gmra.mrb[12].mxu0 %vm821_vm1, %v2222_v6 }
 0x241   : > { %2425 = vmatprep.mubr.bf16.mxu0 %v7696_v2 }
 0x248   : > { %6307 = vmatmul.mubr.msk.bf16.gmra.mrb[16].mxu0 %vm821_vm1, %v2224_v43 }
 0x249   : > { %2435 = vmatprep.mubr.bf16.mxu0 %v7696_v2 }
 0x250   : > { %6308 = vmatmul.mubr.msk.bf16.gmra.mrb[20].mxu0 %vm821_vm1, %v2226_v39 }
 0x251   : > { %2445 = vmatprep.mubr.bf16.mxu0 %v7696_v2 }
 0x258   : > { %6309 = vmatmul.mubr.msk.bf16.gmra.mrb[24].mxu0 %vm821_vm1, %v2228_v44 }
 0x259   : > { %2455 = vmatprep.mubr.bf16.mxu0 %v7696_v2 }
 0x260   : > { %6310 = vmatmul.mubr.msk.bf16.gmra.mrb[28].mxu0 %vm821_vm1, %v2230_v61 }
 0x261   : > { %2465 = vmatprep.mubr.bf16.mxu0 %v7696_v2 }
 0x268   : > { %6311 = vmatmul.mubr.msk.bf16.gmra.mrb[32].mxu0 %vm821_vm1, %v2232_v55 }
 0x269   : > { %2475 = vmatprep.mubr.bf16.mxu0 %v7696_v2 }
 0x270   : > { %6312 = vmatmul.mubr.msk.bf16.gmra.mrb[36].mxu0 %vm821_vm1, %v2234_v0 }
 0x271   : > { %2485 = vmatprep.mubr.bf16.mxu0 %v7696_v2 }
 0x278   : > { %6313 = vmatmul.mubr.msk.bf16.gmra.mrb[40].mxu0 %vm821_vm1, %v2236_v25 }
 0x279   : > { %2495 = vmatprep.mubr.bf16.mxu0 %v7696_v2 }
 0x280   : > { %6314 = vmatmul.mubr.msk.bf16.gmra.mrb[44].mxu0 %vm821_vm1, %v2238_v1 }
 0x281   : > { %2505 = vmatprep.mubr.bf16.mxu0 %v7696_v2 }
 0x288   : > { %6315 = vmatmul.mubr.msk.bf16.gmra.mrb[48].mxu0 %vm821_vm1, %v2240_v20 }
 0x289   : > { %2515 = vmatprep.mubr.bf16.mxu0 %v7696_v2 }
 0x290   : > { %6316 = vmatmul.mubr.msk.bf16.gmra.mrb[52].mxu0 %vm821_vm1, %v2242_v21 }
 0x291   : > { %2525 = vmatprep.mubr.bf16.mxu0 %v7696_v2 }
 0x298   : > { %6317 = vmatmul.mubr.msk.bf16.gmra.mrb[56].mxu0 %vm821_vm1, %v2244_v15 }
 0x299   : > { %2535 = vmatprep.mubr.bf16.mxu0 %v7696_v2 }
 0x2a0   : > { %6318 = vmatmul.mubr.msk.bf16.gmra.mrb[60].mxu0 %vm821_vm1, %v2243_v40 }
 0x2fb   : > { %v2387_v35 = vpop.f32.mrb[0].mxu0 }
 0x2fc   : > { %v2622_v42 = vadd.f32 %v8519_v3, %v2387_v35  ;;  %v2389_v24 = vpop.f32.mrb[1].mxu0 }
 0x2fd   : > { %v2623_v36 = vadd.f32 %v8523_v34, %v2389_v24  ;;  %v2391_v10 = vpop.f32.mrb[2].mxu0 }
 0x2fe   : > { %v2624_v45 = vadd.f32 %v8519_v3, %v2391_v10  ;;  %v2393_v27 = vpop.f32.mrb[3].mxu0  ;;  %v2686_v51 = vmax.f32 %v2622_v42, 0.0 }
 0x2ff   : > { %v2625_v5 = vadd.f32 %v8523_v34, %v2393_v27  ;;  %v2687_v12 = vmax.f32 %v2623_v36, 0.0 }
 0x300   : > { %v2688_v50 = vmax.f32 %v2624_v45, 0.0 }
 0x301   : > { %v2689_v16 = vmax.f32 %v2625_v5, 0.0 }
 0x302   : > { %v8533_v13 = vpack.c.bf16 %v2688_v50, %v2686_v51 }
 0x303   : > { %v2397_v32 = vpop.f32.mrb[4].mxu0  ;;  %v8535_v52 = vpack.c.bf16 %v2689_v16, %v2687_v12 }
 0x304   : > { %v2626_v17 = vadd.f32 %v8519_v3, %v2397_v32  ;;  %v2399_v49 = vpop.f32.mrb[5].mxu0 }
 0x305   : > { %v2627_v28 = vadd.f32 %v8523_v34, %v2399_v49  ;;  %v2401_v33 = vpop.f32.mrb[6].mxu0  ;;  %2888 = vmatprep.subr.bf16.mxu1 %v8535_v52 }
 0x306   : > { %v2628_v58 = vadd.f32 %v8519_v3, %v2401_v33  ;;  %v2403_v14 = vpop.f32.mrb[7].mxu0  ;;  %2889 = vmatpush1.bf16.msra.mxu1 %v8533_v13  ;;  %v2690_v18 = vmax.f32 %v2626_v17, 0.0 }
 0x307   : > { %v2629_v46 = vadd.f32 %v8523_v34, %v2403_v14  ;;  %v2691_v19 = vmax.f32 %v2627_v28, 0.0 }
 0x308   : > { %v2692_v6 = vmax.f32 %v2628_v58, 0.0 }
 0x309   : > { %v2693_v29 = vmax.f32 %v2629_v46, 0.0 }
 0x30a   : > { %v8543_v43 = vpack.c.bf16 %v2692_v6, %v2690_v18 }
 0x30b   : > { %v8545_v30 = vpack.c.bf16 %v2693_v29, %v2691_v19  ;;  %v2407_v38 = vpop.f32.mrb[8].mxu0 }
 0x30c   : > { %v2630_v39 = vadd.f32 %v8519_v3, %v2407_v38  ;;  %v2409_v47 = vpop.f32.mrb[9].mxu0 }
 0x30d   : > { %v2631_v54 = vadd.f32 %v8523_v34, %v2409_v47  ;;  %v2411_v44 = vpop.f32.mrb[10].mxu0  ;;  %2890 = vmatprep.subr.bf16.mxu1 %v8545_v30 }
 0x30e   : > { %v2632_v53 = vadd.f32 %v8519_v3, %v2411_v44  ;;  %v2413_v57 = vpop.f32.mrb[11].mxu0  ;;  %2891 = vmatpush1.bf16.msra.mxu1 %v8543_v43  ;;  %v2694_v8 = vmax.f32 %v2630_v39, 0.0 }
 0x30f   : > { %v2633_v61 = vadd.f32 %v8523_v34, %v2413_v57  ;;  %v2695_v55 = vmax.f32 %v2631_v54, 0.0 }
 0x310   : > { %v2696_v48 = vmax.f32 %v2632_v53, 0.0 }
 0x311   : > { %v2697_v62 = vmax.f32 %v2633_v61, 0.0 }
 0x312   : > { %v8553_v11 = vpack.c.bf16 %v2696_v48, %v2694_v8 }
 0x313   : > { %v8555_v0 = vpack.c.bf16 %v2697_v62, %v2695_v55  ;;  %v2417_v56 = vpop.f32.mrb[12].mxu0 }
 0x314   : > { %v2634_v60 = vadd.f32 %v8519_v3, %v2417_v56  ;;  %v2419_v25 = vpop.f32.mrb[13].mxu0 }
 0x315   : > { %v2635_v7 = vadd.f32 %v8523_v34, %v2419_v25  ;;  %v2421_v59 = vpop.f32.mrb[14].mxu0  ;;  %2892 = vmatprep.subr.bf16.mxu1 %v8555_v0 }
 0x316   : > { %v2636_v1 = vadd.f32 %v8519_v3, %v2421_v59  ;;  %v2423_v63 = vpop.f32.mrb[15].mxu0  ;;  %2893 = vmatpush1.bf16.msra.mxu1 %v8553_v11  ;;  %v2698_v4 = vmax.f32 %v2634_v60, 0.0 }
 0x317   : > { %v2637_v20 = vadd.f32 %v8523_v34, %v2423_v63  ;;  %v2699_v21 = vmax.f32 %v2635_v7, 0.0 }
 0x318   : > { %v2700_v9 = vmax.f32 %v2636_v1, 0.0 }
 0x319   : > { %v2701_v40 = vmax.f32 %v2637_v20, 0.0 }
 0x31a   : > { %v8563_v15 = vpack.c.bf16 %v2700_v9, %v2698_v4 }
 0x31b   : > { %v8565_v31 = vpack.c.bf16 %v2701_v40, %v2699_v21  ;;  %v2427_v41 = vpop.f32.mrb[16].mxu0 }
 0x31c   : > { %v2638_v35 = vadd.f32 %v8519_v3, %v2427_v41  ;;  %v2429_v42 = vpop.f32.mrb[17].mxu0 }
 0x31d   : > { %v2639_v24 = vadd.f32 %v8523_v34, %v2429_v42  ;;  %v2431_v36 = vpop.f32.mrb[18].mxu0  ;;  %2894 = vmatprep.subr.bf16.mxu1 %v8565_v31 }
 0x31e   : > { %v2640_v10 = vadd.f32 %v8519_v3, %v2431_v36  ;;  %v2433_v45 = vpop.f32.mrb[19].mxu0  ;;  %2895 = vmatpush1.bf16.msra.mxu1 %v8563_v15  ;;  %v2702_v37 = vmax.f32 %v2638_v35, 0.0 }
 0x31f   : > { %v2641_v27 = vadd.f32 %v8523_v34, %v2433_v45  ;;  %v2703_v51 = vmax.f32 %v2639_v24, 0.0 }
 0x320   : > { %v2704_v5 = vmax.f32 %v2640_v10, 0.0 }
 0x321   : > { %v2705_v50 = vmax.f32 %v2641_v27, 0.0 }
 0x322   : > { %v8573_v12 = vpack.c.bf16 %v2704_v5, %v2702_v37 }
 0x323   : > { %v8575_v16 = vpack.c.bf16 %v2705_v50, %v2703_v51  ;;  %v2437_v32 = vpop.f32.mrb[20].mxu0 }
 0x324   : > { %v2642_v17 = vadd.f32 %v8519_v3, %v2437_v32  ;;  %v2439_v49 = vpop.f32.mrb[21].mxu0 }
 0x325   : > { %v2643_v28 = vadd.f32 %v8523_v34, %v2439_v49  ;;  %v2441_v33 = vpop.f32.mrb[22].mxu0  ;;  %2896 = vmatprep.subr.bf16.mxu1 %v8575_v16 }
 0x326   : > { %v2644_v58 = vadd.f32 %v8519_v3, %v2441_v33  ;;  %v2443_v14 = vpop.f32.mrb[23].mxu0  ;;  %2897 = vmatpush1.bf16.msra.mxu1 %v8573_v12  ;;  %v2706_v18 = vmax.f32 %v2642_v17, 0.0 }
 0x327   : > { %v2645_v46 = vadd.f32 %v8523_v34, %v2443_v14  ;;  %v2707_v19 = vmax.f32 %v2643_v28, 0.0 }
 0x328   : > { %v2708_v6 = vmax.f32 %v2644_v58, 0.0 }
 0x329   : > { %v2709_v29 = vmax.f32 %v2645_v46, 0.0 }
 0x32a   : > { %v8583_v38 = vpack.c.bf16 %v2708_v6, %v2706_v18 }
 0x32b   : > { %v8585_v39 = vpack.c.bf16 %v2709_v29, %v2707_v19  ;;  %v2447_v47 = vpop.f32.mrb[24].mxu0 }
 0x32c   : > { %v2646_v54 = vadd.f32 %v8519_v3, %v2447_v47  ;;  %v2449_v44 = vpop.f32.mrb[25].mxu0 }
 0x32d   : > { %v2647_v53 = vadd.f32 %v8523_v34, %v2449_v44  ;;  %v2451_v57 = vpop.f32.mrb[26].mxu0  ;;  %2898 = vmatprep.subr.bf16.mxu1 %v8585_v39 }
 0x32e   : > { %v2648_v61 = vadd.f32 %v8519_v3, %v2451_v57  ;;  %v2453_v8 = vpop.f32.mrb[27].mxu0  ;;  %2899 = vmatpush1.bf16.msra.mxu1 %v8583_v38  ;;  %v2710_v55 = vmax.f32 %v2646_v54, 0.0 }
 0x32f   : > { %v2649_v48 = vadd.f32 %v8523_v34, %v2453_v8  ;;  %v2711_v56 = vmax.f32 %v2647_v53, 0.0 }
 0x330   : > { %v2712_v62 = vmax.f32 %v2648_v61, 0.0 }
 0x331   : > { %v2713_v60 = vmax.f32 %v2649_v48, 0.0 }
 0x332   : > { %v8593_v25 = vpack.c.bf16 %v2712_v62, %v2710_v55 }
 0x333   : > { %v8595_v7 = vpack.c.bf16 %v2713_v60, %v2711_v56  ;;  %v2457_v59 = vpop.f32.mrb[28].mxu0 }
 0x334   : > { %v2650_v1 = vadd.f32 %v8519_v3, %v2457_v59  ;;  %v2459_v63 = vpop.f32.mrb[29].mxu0 }
 0x335   : > { %v2651_v20 = vadd.f32 %v8523_v34, %v2459_v63  ;;  %v2461_v4 = vpop.f32.mrb[30].mxu0  ;;  %2900 = vmatprep.subr.bf16.mxu1 %v8595_v7 }
 0x336   : > { %v2652_v9 = vadd.f32 %v8519_v3, %v2461_v4  ;;  %v2463_v21 = vpop.f32.mrb[31].mxu0  ;;  %2901 = vmatpush1.bf16.msra.mxu1 %v8593_v25  ;;  %v2714_v41 = vmax.f32 %v2650_v1, 0.0 }
 0x337   : > { %v2653_v40 = vadd.f32 %v8523_v34, %v2463_v21  ;;  %v2715_v42 = vmax.f32 %v2651_v20, 0.0 }
 0x338   : > { %v2716_v35 = vmax.f32 %v2652_v9, 0.0 }
 0x339   : > { %v2717_v24 = vmax.f32 %v2653_v40, 0.0 }
 0x33a   : > { %v8603_v36 = vpack.c.bf16 %v2716_v35, %v2714_v41 }
 0x33b   : > { %v8605_v10 = vpack.c.bf16 %v2717_v24, %v2715_v42  ;;  %v2467_v45 = vpop.f32.mrb[32].mxu0 }
 0x33c   : > { %v2654_v27 = vadd.f32 %v8519_v3, %v2467_v45  ;;  %v2469_v37 = vpop.f32.mrb[33].mxu0 }
 0x33d   : > { %v2655_v5 = vadd.f32 %v8523_v34, %v2469_v37  ;;  %v2471_v51 = vpop.f32.mrb[34].mxu0  ;;  %2902 = vmatprep.subr.bf16.mxu1 %v8605_v10 }
 0x33e   : > { %v2656_v50 = vadd.f32 %v8519_v3, %v2471_v51  ;;  %v2473_v32 = vpop.f32.mrb[35].mxu0  ;;  %2903 = vmatpush1.bf16.msra.mxu1 %v8603_v36  ;;  %v2718_v49 = vmax.f32 %v2654_v27, 0.0 }
 0x33f   : > { %v2657_v17 = vadd.f32 %v8523_v34, %v2473_v32  ;;  %v2719_v33 = vmax.f32 %v2655_v5, 0.0 }
 0x340   : > { %v2720_v28 = vmax.f32 %v2656_v50, 0.0 }
 0x341   : > { %v2721_v58 = vmax.f32 %v2657_v17, 0.0 }
 0x342   : > { %v8613_v14 = vpack.c.bf16 %v2720_v28, %v2718_v49 }
 0x343   : > { %v8615_v46 = vpack.c.bf16 %v2721_v58, %v2719_v33  ;;  %v2477_v18 = vpop.f32.mrb[36].mxu0 }
 0x344   : > { %v2658_v6 = vadd.f32 %v8519_v3, %v2477_v18  ;;  %v2479_v19 = vpop.f32.mrb[37].mxu0 }
 0x345   : > { %v2659_v29 = vadd.f32 %v8523_v34, %v2479_v19  ;;  %v2481_v47 = vpop.f32.mrb[38].mxu0  ;;  %2904 = vmatprep.subr.bf16.mxu1 %v8615_v46 }
 0x346   : > { %v2660_v54 = vadd.f32 %v8519_v3, %v2481_v47  ;;  %v2483_v44 = vpop.f32.mrb[39].mxu0  ;;  %2905 = vmatpush1.bf16.msra.mxu1 %v8613_v14  ;;  %v2722_v57 = vmax.f32 %v2658_v6, 0.0 }
 0x347   : > { %v2661_v53 = vadd.f32 %v8523_v34, %v2483_v44  ;;  %v2723_v8 = vmax.f32 %v2659_v29, 0.0 }
 0x348   : > { %v2724_v61 = vmax.f32 %v2660_v54, 0.0 }
 0x349   : > { %v2725_v48 = vmax.f32 %v2661_v53, 0.0 }
 0x34a   : > { %v8623_v55 = vpack.c.bf16 %v2724_v61, %v2722_v57 }
 0x34b   : > { %v8625_v62 = vpack.c.bf16 %v2725_v48, %v2723_v8  ;;  %v2487_v56 = vpop.f32.mrb[40].mxu0 }
 0x34c   : > { %v2662_v60 = vadd.f32 %v8519_v3, %v2487_v56  ;;  %v2489_v59 = vpop.f32.mrb[41].mxu0 }
 0x34d   : > { %v2663_v1 = vadd.f32 %v8523_v34, %v2489_v59  ;;  %v2491_v63 = vpop.f32.mrb[42].mxu0  ;;  %2906 = vmatprep.subr.bf16.mxu1 %v8625_v62 }
 0x34e   : > { %v2664_v20 = vadd.f32 %v8519_v3, %v2491_v63  ;;  %v2493_v4 = vpop.f32.mrb[43].mxu0  ;;  %2907 = vmatpush1.bf16.msra.mxu1 %v8623_v55  ;;  %v2726_v21 = vmax.f32 %v2662_v60, 0.0 }
 0x34f   : > { %v2665_v9 = vadd.f32 %v8523_v34, %v2493_v4  ;;  %v2727_v41 = vmax.f32 %v2663_v1, 0.0 }
 0x350   : > { %v2728_v40 = vmax.f32 %v2664_v20, 0.0 }
 0x351   : > { %v2729_v35 = vmax.f32 %v2665_v9, 0.0 }
 0x352   : > { %v8633_v42 = vpack.c.bf16 %v2728_v40, %v2726_v21 }
 0x353   : > { %v8635_v24 = vpack.c.bf16 %v2729_v35, %v2727_v41  ;;  %v2497_v45 = vpop.f32.mrb[44].mxu0 }
 0x354   : > { %v2666_v27 = vadd.f32 %v8519_v3, %v2497_v45  ;;  %v2499_v37 = vpop.f32.mrb[45].mxu0 }
 0x355   : > { %v2667_v5 = vadd.f32 %v8523_v34, %v2499_v37  ;;  %v2501_v51 = vpop.f32.mrb[46].mxu0  ;;  %2908 = vmatprep.subr.bf16.mxu1 %v8635_v24 }
 0x356   : > { %v2668_v50 = vadd.f32 %v8519_v3, %v2501_v51  ;;  %v2503_v32 = vpop.f32.mrb[47].mxu0  ;;  %2909 = vmatpush1.bf16.msra.mxu1 %v8633_v42  ;;  %v2730_v49 = vmax.f32 %v2666_v27, 0.0 }
 0x357   : > { %v2669_v17 = vadd.f32 %v8523_v34, %v2503_v32  ;;  %v2731_v33 = vmax.f32 %v2667_v5, 0.0 }
 0x358   : > { %v2732_v28 = vmax.f32 %v2668_v50, 0.0 }
 0x359   : > { %v2733_v58 = vmax.f32 %v2669_v17, 0.0 }
 0x35a   : > { %v8643_v18 = vpack.c.bf16 %v2732_v28, %v2730_v49 }
 0x35b   : > { %v8645_v6 = vpack.c.bf16 %v2733_v58, %v2731_v33  ;;  %v2507_v19 = vpop.f32.mrb[48].mxu0 }
 0x35c   : > { %v2670_v29 = vadd.f32 %v8519_v3, %v2507_v19  ;;  %v2509_v47 = vpop.f32.mrb[49].mxu0 }
 0x35d   : > { %v2671_v54 = vadd.f32 %v8523_v34, %v2509_v47  ;;  %v2511_v44 = vpop.f32.mrb[50].mxu0  ;;  %2910 = vmatprep.subr.bf16.mxu1 %v8645_v6 }
 0x35e   : > { %v2672_v53 = vadd.f32 %v8519_v3, %v2511_v44  ;;  %v2513_v57 = vpop.f32.mrb[51].mxu0  ;;  %2911 = vmatpush1.bf16.msra.mxu1 %v8643_v18  ;;  %v2734_v8 = vmax.f32 %v2670_v29, 0.0 }
 0x35f   : > { %v2673_v61 = vadd.f32 %v8523_v34, %v2513_v57  ;;  %v2735_v56 = vmax.f32 %v2671_v54, 0.0 }
 0x360   : > { %v2736_v48 = vmax.f32 %v2672_v53, 0.0 }
 0x361   : > { %v2737_v60 = vmax.f32 %v2673_v61, 0.0 }
 0x362   : > { %v8653_v59 = vpack.c.bf16 %v2736_v48, %v2734_v8 }
 0x363   : > { %v8655_v1 = vpack.c.bf16 %v2737_v60, %v2735_v56  ;;  %v2517_v63 = vpop.f32.mrb[52].mxu0 }
 0x364   : > { %v2674_v20 = vadd.f32 %v8519_v3, %v2517_v63  ;;  %v2519_v4 = vpop.f32.mrb[53].mxu0 }
 0x365   : > { %v2675_v9 = vadd.f32 %v8523_v34, %v2519_v4  ;;  %v2521_v21 = vpop.f32.mrb[54].mxu0  ;;  %2912 = vmatprep.subr.bf16.mxu1 %v8655_v1 }
 0x366   : > { %v2676_v40 = vadd.f32 %v8519_v3, %v2521_v21  ;;  %v2523_v41 = vpop.f32.mrb[55].mxu0  ;;  %2913 = vmatpush1.bf16.msra.mxu1 %v8653_v59  ;;  %v2738_v45 = vmax.f32 %v2674_v20, 0.0 }
 0x367   : > { %v2677_v35 = vadd.f32 %v8523_v34, %v2523_v41  ;;  %v2739_v37 = vmax.f32 %v2675_v9, 0.0 }
 0x368   : > { %v2740_v27 = vmax.f32 %v2676_v40, 0.0 }
 0x369   : > { %v2741_v5 = vmax.f32 %v2677_v35, 0.0 }
 0x36a   : > { %v8663_v51 = vpack.c.bf16 %v2740_v27, %v2738_v45 }
 0x36b   : > { %v8665_v50 = vpack.c.bf16 %v2741_v5, %v2739_v37  ;;  %v2527_v32 = vpop.f32.mrb[56].mxu0  ;;  %v7404_v5 = vld [vmem:[%s9786_s3] ss:$8 sps:$4 sm:$0xff]  }
 0x36c   : > { %v2678_v17 = vadd.f32 %v8519_v3, %v2527_v32  ;;  %v2529_v49 = vpop.f32.mrb[57].mxu0  ;;  %v7410_v32 = vld [vmem:[%s9786_s3 + $0x24] ss:$8 sps:$4 sm:$0xff]  }
 0x36d   : > { %v2679_v28 = vadd.f32 %v8523_v34, %v2529_v49  ;;  %v2531_v33 = vpop.f32.mrb[58].mxu0  ;;  %2914 = vmatprep.subr.bf16.mxu1 %v8665_v50  ;;  %v7452_v49 = vld [vmem:[%s9787_s4 + $0x30] sm:$0xff]  }
 0x36e   : > { %v2680_v58 = vadd.f32 %v8519_v3, %v2531_v33  ;;  %v2533_v19 = vpop.f32.mrb[59].mxu0  ;;  %2915 = vmatpush1.bf16.msra.mxu1 %v8663_v51  ;;  %v2742_v47 = vmax.f32 %v2678_v17, 0.0  ;;  %v7451_v17 = vld [vmem:[%s9787_s4 + $0x28] sm:$0xff]   ;;  %v7454_v33 = vld [vmem:[%s9787_s4 + $0x40] sm:$0xff]  }
 0x36f   : > { %v2681_v29 = vadd.f32 %v8523_v34, %v2533_v19  ;;  %v2743_v44 = vmax.f32 %v2679_v28, 0.0  ;;  %v7453_v28 = vld [vmem:[%s9787_s4 + $0x38] sm:$0xff]   ;;  %v7456_v19 = vld [vmem:[%s9787_s4 + $0x50] ss:$0 sps:$4 sm:$0xff]  }
 0x370   : > { %v2744_v54 = vmax.f32 %v2680_v58, 0.0  ;;  %v7455_v58 = vld [vmem:[%s9787_s4 + $0x48] sm:$0xff]  }
 0x371   : > { %v2745_v53 = vmax.f32 %v2681_v29, 0.0  ;;  %v3343_v29 = vsel %vm3341_vm6, %v7456_v19, 0 }
 0x372   : > { %v8673_v57 = vpack.c.bf16 %v2744_v54, %v2742_v47 }
 0x373   : > { %v8675_v61 = vpack.c.bf16 %v2745_v53, %v2743_v44  ;;  %v2537_v8 = vpop.f32.mrb[60].mxu0 }
 0x374   : > { %v2682_v48 = vadd.f32 %v8519_v3, %v2537_v8  ;;  %v2539_v56 = vpop.f32.mrb[61].mxu0 }
 0x375   : > { %v2683_v60 = vadd.f32 %v8523_v34, %v2539_v56  ;;  %v2541_v63 = vpop.f32.mrb[62].mxu0  ;;  %2916 = vmatprep.subr.bf16.mxu1 %v8675_v61 }
 0x376   : > { %v2684_v20 = vadd.f32 %v8519_v3, %v2541_v63  ;;  %v2543_v4 = vpop.f32.mrb[63].mxu0  ;;  %2917 = vmatpush1.bf16.msra.mxu1 %v8673_v57  ;;  %v2746_v21 = vmax.f32 %v2682_v48, 0.0  ;;  %v7407_v3 = vld [vmem:[%s9786_s3 + $0x14] ss:$8 sps:$4 sm:$0xff]  }
 0x377   : > { %v2685_v9 = vadd.f32 %v8523_v34, %v2543_v4  ;;  %v2747_v41 = vmax.f32 %v2683_v60, 0.0  ;;  %v7409_v34 = vld [vmem:[%s9786_s3 + $0x10] ss:$8 sps:$4 sm:$0xff]  }
 0x378   : > { %v2748_v40 = vmax.f32 %v2684_v20, 0.0 }
 0x379   : > { %v2749_v35 = vmax.f32 %v2685_v9, 0.0 }
 0x37a   : > { %v2780_v45 = vpack.c.bf16 %v2748_v40, %v2746_v21 }
 0x37b   : > { %v2781_v27 = vpack.c.bf16 %v2749_v35, %v2747_v41 }
 0x37c   : > { %v2883_v37 = vsel %vm2213_vm4, %v2780_v45, 0 }
 0x37d   : > { %6333 = vmatprep.subr.msk.bf16.mxu1 %vm2213_vm4, %v2781_v27 }
 0x37e   : > { %2919 = vmatpush1.bf16.msra.mxu1 %v2883_v37 }
 0x37f   : > { %3090 = vmatprep.subr.bf16.mxu1 %v8535_v52  ;;  %v7413_v52 = vld [vmem:[%s9786_s3 + $0x34] ss:$8 sps:$4 sm:$0xff]  }
 0x381   : > { %2921 = vmatmul.mubr.bf16.vlgmr.msra.gmra.mrb[0].mxu1 %v7404_v5 }
 0x382   : > { %3091 = vmatpush1.bf16.msra.mxu1 %v8533_v13  ;;  %6335 = vmatprep.mubr.msk.bf16.mxu1 %vm2859_vm5, %v7407_v3  ;;  %v7412_v13 = vld [vmem:[%s9786_s3 + $0x20] ss:$8 sps:$4 sm:$0xff]  }
 0x383   : > { %3092 = vmatprep.subr.bf16.mxu1 %v8545_v30  ;;  %v7416_v30 = vld [vmem:[%s9786_s3 + $0x44] ss:$8 sps:$4 sm:$0xff]  }
 0x386   : > { %3093 = vmatpush1.bf16.msra.mxu1 %v8543_v43  ;;  %v7415_v43 = vld [vmem:[%s9786_s3 + $0x30] ss:$8 sps:$4 sm:$0xff]  }
 0x387   : > { %3094 = vmatprep.subr.bf16.mxu1 %v8555_v0  ;;  %v7419_v0 = vld [vmem:[%s9786_s3 + $0x54] ss:$8 sps:$4 sm:$0xff]  }
 0x389   : > { %2931 = vmatmul.mubr.bf16.gmra.mrb[4].mxu1 %v7409_v34 }
 0x38a   : > { %3095 = vmatpush1.bf16.msra.mxu1 %v8553_v11  ;;  %6336 = vmatprep.mubr.msk.bf16.mxu1 %vm2859_vm5, %v7410_v32  ;;  %v7418_v11 = vld [vmem:[%s9786_s3 + $0x40] ss:$8 sps:$4 sm:$0xff]  }
 0x38b   : > { %3096 = vmatprep.subr.bf16.mxu1 %v8565_v31  ;;  %v7422_v31 = vld [vmem:[%s9786_s3 + $0x64] ss:$8 sps:$4 sm:$0xff]  }
 0x38e   : > { %3097 = vmatpush1.bf16.msra.mxu1 %v8563_v15  ;;  %v7421_v15 = vld [vmem:[%s9786_s3 + $0x50] ss:$8 sps:$4 sm:$0xff]  }
 0x38f   : > { %3098 = vmatprep.subr.bf16.mxu1 %v8575_v16  ;;  %v7427_v16 = vld [vmem:[%s9786_s3 + $0x74] ss:$8 sps:$4 sm:$0xff]  }
 0x391   : > { %2941 = vmatmul.mubr.bf16.gmra.mrb[8].mxu1 %v7412_v13 }
 0x392   : > { %3099 = vmatpush1.bf16.msra.mxu1 %v8573_v12  ;;  %6337 = vmatprep.mubr.msk.bf16.mxu1 %vm2859_vm5, %v7413_v52  ;;  %v7424_v12 = vld [vmem:[%s9786_s3 + $0x60] ss:$8 sps:$4 sm:$0xff]  }
 0x393   : > { %3100 = vmatprep.subr.bf16.mxu1 %v8585_v39  ;;  %v7428_v39 = vld [vmem:[%s9786_s3 + $0x84] ss:$8 sps:$4 sm:$0xff]  }
 0x396   : > { %3101 = vmatpush1.bf16.msra.mxu1 %v8583_v38  ;;  %v7425_v38 = vld [vmem:[%s9786_s3 + $0x70] ss:$8 sps:$4 sm:$0xff]  }
 0x397   : > { %3102 = vmatprep.subr.bf16.mxu1 %v8595_v7  ;;  %v7431_v7 = vld [vmem:[%s9786_s3 + $0x94] ss:$8 sps:$4 sm:$0xff]  }
 0x399   : > { %2951 = vmatmul.mubr.bf16.gmra.mrb[12].mxu1 %v7415_v43 }
 0x39a   : > { %3103 = vmatpush1.bf16.msra.mxu1 %v8593_v25  ;;  %6338 = vmatprep.mubr.msk.bf16.mxu1 %vm2859_vm5, %v7416_v30  ;;  %v7430_v25 = vld [vmem:[%s9786_s3 + $0x80] ss:$8 sps:$4 sm:$0xff]  }
 0x39b   : > { %3104 = vmatprep.subr.bf16.mxu1 %v8605_v10  ;;  %v7434_v10 = vld [vmem:[%s9786_s3 + $0xa4] ss:$8 sps:$4 sm:$0xff]  }
 0x39e   : > { %3105 = vmatpush1.bf16.msra.mxu1 %v8603_v36  ;;  %v7433_v36 = vld [vmem:[%s9786_s3 + $0x90] ss:$8 sps:$4 sm:$0xff]  }
 0x39f   : > { %3106 = vmatprep.subr.bf16.mxu1 %v8615_v46  ;;  %v7437_v46 = vld [vmem:[%s9786_s3 + $0xb4] ss:$8 sps:$4 sm:$0xff]  }
 0x3a1   : > { %2961 = vmatmul.mubr.bf16.gmra.mrb[16].mxu1 %v7418_v11 }
 0x3a2   : > { %3107 = vmatpush1.bf16.msra.mxu1 %v8613_v14  ;;  %6339 = vmatprep.mubr.msk.bf16.mxu1 %vm2859_vm5, %v7419_v0  ;;  %v7436_v14 = vld [vmem:[%s9786_s3 + $0xa0] ss:$8 sps:$4 sm:$0xff]  }
 0x3a3   : > { %3108 = vmatprep.subr.bf16.mxu1 %v8625_v62  ;;  %v7440_v62 = vld [vmem:[%s9786_s3 + $0xc4] ss:$8 sps:$4 sm:$0xff]  }
 0x3a6   : > { %3109 = vmatpush1.bf16.msra.mxu1 %v8623_v55  ;;  %v7439_v55 = vld [vmem:[%s9786_s3 + $0xb0] ss:$8 sps:$4 sm:$0xff]  }
 0x3a7   : > { %3110 = vmatprep.subr.bf16.mxu1 %v8635_v24  ;;  %v7442_v24 = vld [vmem:[%s9786_s3 + $0xc0] ss:$8 sps:$4 sm:$0xff]  }
 0x3a9   : > { %2971 = vmatmul.mubr.bf16.gmra.mrb[20].mxu1 %v7421_v15 }
 0x3aa   : > { %3111 = vmatpush1.bf16.msra.mxu1 %v8633_v42  ;;  %6340 = vmatprep.mubr.msk.bf16.mxu1 %vm2859_vm5, %v7422_v31  ;;  %v7446_v42 = vld [vmem:[%s9787_s4] sm:$0xff]  }
 0x3ab   : > { %3112 = vmatprep.subr.bf16.mxu1 %v8645_v6  ;;  %v7447_v6 = vld [vmem:[%s9787_s4 + $0x8] sm:$0xff]  }
 0x3ae   : > { %3113 = vmatpush1.bf16.msra.mxu1 %v8643_v18  ;;  %v7443_v18 = vld [vmem:[%s9786_s3 + $0xd4] ss:$8 sps:$4 sm:$0xff]  }
 0x3af   : > { %3114 = vmatprep.subr.bf16.mxu1 %v8655_v1  ;;  %v7448_v1 = vld [vmem:[%s9787_s4 + $0x10] sm:$0xff]  }
 0x3b1   : > { %2981 = vmatmul.mubr.bf16.gmra.mrb[24].mxu1 %v7424_v12 }
 0x3b2   : > { %3115 = vmatpush1.bf16.msra.mxu1 %v8653_v59  ;;  %6370 = vmatprep.mubr.msk.bf16.mxu1 %vm2859_vm5, %v7427_v16  ;;  %v7445_v59 = vld [vmem:[%s9786_s3 + $0xd0] ss:$8 sps:$4 sm:$0xff]  }
 0x3b3   : > { %3116 = vmatprep.subr.bf16.mxu1 %v8665_v50  ;;  %v7450_v50 = vld [vmem:[%s9787_s4 + $0x20] sm:$0xff]  }
 0x3b6   : > { %3117 = vmatpush1.bf16.msra.mxu1 %v8663_v51  ;;  %v7449_v51 = vld [vmem:[%s9787_s4 + $0x18] sm:$0xff]  }
 0x3b7   : > { %3118 = vmatprep.subr.bf16.mxu1 %v8675_v61 }
 0x3ba   : > { %3119 = vmatpush1.bf16.msra.mxu1 %v8673_v57 }
 0x3bb   : > { %6369 = vmatprep.subr.msk.bf16.mxu1 %vm2213_vm4, %v2781_v27 }
 0x3be   : > { %3121 = vmatpush1.bf16.msra.mxu1 %v2883_v37 }
 0x3bf   : > { %3345 = vmatprep.subr.bf16.mxu1 %v7696_v2 }
 0x3c1   : > { %3123 = vmatmul.mubr.bf16.vlgmr.msra.gmra.mrb[28].mxu1 %v7425_v38 }
 0x3c2   : > { %6371 = vmatprep.mubr.msk.bf16.mxu1 %vm2859_vm5, %v7428_v39  ;;  %3346 = vmatpush1.bf16.msra.mxu1 %v7446_v42 }
 0x3c3   : > { %3347 = vmatprep.subr.bf16.mxu1 %v7696_v2 }
 0x3c6   : > { %3348 = vmatpush1.bf16.msra.mxu1 %v7447_v6 }
 0x3c7   : > { %3349 = vmatprep.subr.bf16.mxu1 %v7696_v2 }
 0x3c9   : > { %3133 = vmatmul.mubr.bf16.gmra.mrb[32].mxu1 %v7430_v25 }
 0x3ca   : > { %6372 = vmatprep.mubr.msk.bf16.mxu1 %vm2859_vm5, %v7431_v7  ;;  %3350 = vmatpush1.bf16.msra.mxu1 %v7448_v1  ;;  %v7457_v7 = vld [vmem:[%s9787_s4 + $0x54] sm:$0xff]   ;;  %v7459_v1 = vld [vmem:[%s9787_s4 + $0x64] sm:$0xff]  }
 0x3cb   : > { %3351 = vmatprep.subr.bf16.mxu1 %v7696_v2 }
 0x3ce   : > { %3352 = vmatpush1.bf16.msra.mxu1 %v7449_v51 }
 0x3cf   : > { %3353 = vmatprep.subr.bf16.mxu1 %v7696_v2 }
 0x3d1   : > { %3143 = vmatmul.mubr.bf16.gmra.mrb[36].mxu1 %v7433_v36 }
 0x3d2   : > { %6373 = vmatprep.mubr.msk.bf16.mxu1 %vm2859_vm5, %v7434_v10  ;;  %3354 = vmatpush1.bf16.msra.mxu1 %v7450_v50 }
 0x3d3   : > { %3355 = vmatprep.subr.bf16.mxu1 %v7696_v2 }
 0x3d6   : > { %3356 = vmatpush1.bf16.msra.mxu1 %v7451_v17 }
 0x3d7   : > { %3357 = vmatprep.subr.bf16.mxu1 %v7696_v2 }
 0x3d9   : > { %3153 = vmatmul.mubr.bf16.gmra.mrb[40].mxu1 %v7436_v14 }
 0x3da   : > { %6374 = vmatprep.mubr.msk.bf16.mxu1 %vm2859_vm5, %v7437_v46  ;;  %3358 = vmatpush1.bf16.msra.mxu1 %v7452_v49 }
 0x3db   : > { %3359 = vmatprep.subr.bf16.mxu1 %v7696_v2 }
 0x3de   : > { %3360 = vmatpush1.bf16.msra.mxu1 %v7453_v28 }
 0x3df   : > { %3361 = vmatprep.subr.bf16.mxu1 %v7696_v2 }
 0x3e1   : > { %3163 = vmatmul.mubr.bf16.gmra.mrb[44].mxu1 %v7439_v55 }
 0x3e2   : > { %6375 = vmatprep.mubr.msk.bf16.mxu1 %vm2859_vm5, %v7440_v62  ;;  %3362 = vmatpush1.bf16.msra.mxu1 %v7454_v33  ;;  %v7458_v62 = vld [vmem:[%s9787_s4 + $0x5c] sm:$0xff]   ;;  %v7460_v33 = vld [vmem:[%s9787_s4 + $0x6c] sm:$0xff]  }
 0x3e3   : > { %3363 = vmatprep.subr.bf16.mxu1 %v7696_v2 }
 0x3e6   : > { %3364 = vmatpush1.bf16.msra.mxu1 %v7455_v58 }
 0x3e7   : > { %3365 = vmatprep.subr.bf16.mxu1 %v7696_v2 }
 0x3e9   : > { %3173 = vmatmul.mubr.bf16.gmra.mrb[48].mxu1 %v7442_v24 }
 0x3ea   : > { %6376 = vmatprep.mubr.msk.bf16.mxu1 %vm2859_vm5, %v7443_v18  ;;  %3366 = vmatpush1.bf16.msra.mxu1 %v3343_v29 }
 0x3eb   : > { %3522 = vmatprep.subr.bf16.mxu1 %v7696_v2 }
 0x3f1   : > { %3183 = vmatmul.mubr.bf16.gmra.mrb[52].mxu1 %v7445_v59 }
 0x454   : > { %v2922_v47 = vpop.f32.mrb[0].mxu1 }
 0x455   : > { %v2924_v54 = vpop.f32.mrb[1].mxu1 }
 0x456   : > { %v2926_v44 = vpop.f32.mrb[2].mxu1 }
 0x457   : > { %v2928_v53 = vpop.f32.mrb[3].mxu1 }
 0x45c   : > { %v2932_v57 = vpop.f32.mrb[4].mxu1 }
 0x45d   : > { %v2934_v61 = vpop.f32.mrb[5].mxu1 }
 0x45e   : > { %v2936_v8 = vpop.f32.mrb[6].mxu1 }
 0x45f   : > { %v2938_v48 = vpop.f32.mrb[7].mxu1 }
 0x464   : > { %v8856_v56 = vpop.f32.mrb[8].mxu1 }
 0x465   : > { %v8858_v60 = vpop.f32.mrb[9].mxu1 }
 0x466   : > { %v2946_v63 = vpop.f32.mrb[10].mxu1 }
 0x467   : > { %v2948_v20 = vpop.f32.mrb[11].mxu1 }
 0x46c   : > { %v8860_v4 = vpop.f32.mrb[12].mxu1 }
 0x46d   : > { %v8862_v9 = vpop.f32.mrb[13].mxu1 }
 0x46e   : > { %v8864_v21 = vpop.f32.mrb[14].mxu1 }
 0x46f   : > { %v8866_v40 = vpop.f32.mrb[15].mxu1 }
 0x474   : > { %v8868_v41 = vpop.f32.mrb[16].mxu1 }
 0x475   : > { %v8870_v35 = vpop.f32.mrb[17].mxu1 }
 0x476   : > { %v8872_v45 = vpop.f32.mrb[18].mxu1 }
 0x477   : > { %v8874_v27 = vpop.f32.mrb[19].mxu1 }
 0x47c   : > { %v8876_v37 = vpop.f32.mrb[20].mxu1 }
 0x47d   : > { %v8878_v5 = vpop.f32.mrb[21].mxu1 }
 0x47e   : > { %v8880_v3 = vpop.f32.mrb[22].mxu1 }
 0x47f   : > { %v8882_v34 = vpop.f32.mrb[23].mxu1 }
 0x484   : > { %v8884_v32 = vpop.f32.mrb[24].mxu1 }
 0x485   : > { %v8886_v13 = vpop.f32.mrb[25].mxu1 }
 0x486   : > { %v8888_v52 = vpop.f32.mrb[26].mxu1 }
 0x487   : > { %v8890_v43 = vpop.f32.mrb[27].mxu1 }
 0x494   : > { %v3124_v30 = vpop.f32.mrb[28].mxu1 }
 0x495   : > { %v3193_v11 = vmax.f32 %v2922_v47, %v3124_v30  ;;  %v3126_v0 = vpop.f32.mrb[29].mxu1 }
 0x496   : > { %v3194_v15 = vmax.f32 %v2924_v54, %v3126_v0  ;;  %v3128_v31 = vpop.f32.mrb[30].mxu1 }
 0x497   : > { %v3195_v12 = vmax.f32 %v2926_v44, %v3128_v31  ;;  %v3130_v16 = vpop.f32.mrb[31].mxu1  ;;  %v7461_v44 = vld [vmem:[%s9787_s4 + $0x74] sm:$0xff]   ;;  %v7464_v31 = vld [vmem:[%s9787_s4 + $0x8c] sm:$0xff]  }
 0x498   : > { %v3196_v38 = vmax.f32 %v2928_v53, %v3130_v16 }
 0x499   : > { %v8892_v39 = vpack.c.bf16 %v3195_v12, %v3193_v11 }
 0x49a   : > { %v8894_v25 = vpack.c.bf16 %v3196_v38, %v3194_v15 }
 0x49c   : > { %v3134_v36 = vpop.f32.mrb[32].mxu1  ;;  %6388 = vmatprep.mubr.msk.bf16.mxu1 %vm3319_vm7, %v8894_v25 }
 0x49d   : > { %v3197_v10 = vmax.f32 %v2932_v57, %v3134_v36  ;;  %v3136_v14 = vpop.f32.mrb[33].mxu1  ;;  %3378 = vmatmul.mubr.bf16.vlgmr.msra.gmra.mrb[56].mxu1 %v8892_v39 }
 0x49e   : > { %v3198_v46 = vmax.f32 %v2934_v61, %v3136_v14  ;;  %v3138_v55 = vpop.f32.mrb[34].mxu1  ;;  %3523 = vmatpush1.bf16.msra.mxu1 %v7457_v7 }
 0x49f   : > { %v3199_v42 = vmax.f32 %v2936_v8, %v3138_v55  ;;  %v3140_v24 = vpop.f32.mrb[35].mxu1  ;;  %3524 = vmatprep.subr.bf16.mxu1 %v7696_v2 }
 0x4a0   : > { %v3200_v18 = vmax.f32 %v2938_v48, %v3140_v24 }
 0x4a1   : > { %v8906_v6 = vpack.c.bf16 %v3199_v42, %v3197_v10  ;;  %v7467_v42 = vld [vmem:[%s9787_s4 + $0xa4] ss:$0 sps:$4 sm:$0xff]  }
 0x4a2   : > { %v8908_v59 = vpack.c.bf16 %v3200_v18, %v3198_v46  ;;  %3525 = vmatpush1.bf16.msra.mxu1 %v7458_v62 }
 0x4a3   : > { %3526 = vmatprep.subr.bf16.mxu1 %v7696_v2 }
 0x4a4   : > { %v3144_v51 = vpop.f32.mrb[36].mxu1  ;;  %6389 = vmatprep.mubr.msk.bf16.mxu1 %vm3319_vm7, %v8908_v59 }
 0x4a5   : > { %v3201_v50 = vmax.f32 %v8856_v56, %v3144_v51  ;;  %v3146_v17 = vpop.f32.mrb[37].mxu1  ;;  %3386 = vmatmul.mubr.bf16.gmra.mrb[60].mxu1 %v8906_v6  ;;  %v7462_v56 = vld [vmem:[%s9787_s4 + $0x7c] sm:$0xff]  }
 0x4a6   : > { %v3202_v49 = vmax.f32 %v8858_v60, %v3146_v17  ;;  %v3148_v28 = vpop.f32.mrb[38].mxu1  ;;  %3527 = vmatpush1.bf16.msra.mxu1 %v7459_v1 }
 0x4a7   : > { %v3203_v58 = vmax.f32 %v2946_v63, %v3148_v28  ;;  %v3150_v19 = vpop.f32.mrb[39].mxu1  ;;  %3528 = vmatprep.subr.bf16.mxu1 %v7696_v2 }
 0x4a8   : > { %v3204_v29 = vmax.f32 %v2948_v20, %v3150_v19  ;;  %v7480_v19 = vld [vmem:[%s9788_s5 + $0x98] ss:$8 sps:$4 sm:$0xff]  }
 0x4a9   : > { %v8923_v47 = vpack.c.bf16 %v3203_v58, %v3201_v50 }
 0x4aa   : > { %v8925_v54 = vpack.c.bf16 %v3204_v29, %v3202_v49  ;;  %3529 = vmatpush1.bf16.msra.mxu1 %v7460_v33  ;;  %v7482_v29 = vld [vmem:[%s9788_s5 + $0x9c] ss:$8 sps:$4 sm:$0xff]  }
 0x4ab   : > { %3530 = vmatprep.subr.bf16.mxu1 %v7696_v2 }
 0x4ac   : > { %v3154_v53 = vpop.f32.mrb[40].mxu1  ;;  %6390 = vmatprep.mubr.msk.bf16.mxu1 %vm3319_vm7, %v8925_v54 }
 0x4ad   : > { %v3205_v57 = vmax.f32 %v8860_v4, %v3154_v53  ;;  %v3156_v61 = vpop.f32.mrb[41].mxu1  ;;  %3394 = vmatmul.mubr.bf16.gmra.mrb[64].mxu1 %v8923_v47 }
 0x4ae   : > { %v3206_v8 = vmax.f32 %v8862_v9, %v3156_v61  ;;  %v3158_v48 = vpop.f32.mrb[42].mxu1  ;;  %3531 = vmatpush1.bf16.msra.mxu1 %v7461_v44  ;;  %v7463_v9 = vld [vmem:[%s9787_s4 + $0x84] sm:$0xff]  }
 0x4af   : > { %v3207_v60 = vmax.f32 %v8864_v21, %v3158_v48  ;;  %v3160_v63 = vpop.f32.mrb[43].mxu1  ;;  %3532 = vmatprep.subr.bf16.mxu1 %v7696_v2 }
 0x4b0   : > { %v3208_v20 = vmax.f32 %v8866_v40, %v3160_v63 }
 0x4b1   : > { %v8942_v30 = vpack.c.bf16 %v3207_v60, %v3205_v57  ;;  %v7487_v57 = vld [vmem:[%s9788_s5 + $0x4] ss:$8 sps:$4 sm:$0xff]  }
 0x4b2   : > { %v3228_v4 = vpack.c.bf16 %v3208_v20, %v3206_v8  ;;  %3533 = vmatpush1.bf16.msra.mxu1 %v7462_v56 }
 0x4b3   : > { %3534 = vmatprep.subr.bf16.mxu1 %v7696_v2 }
 0x4b4   : > { %v3164_v11 = vpop.f32.mrb[44].mxu1  ;;  %6391 = vmatprep.mubr.msk.bf16.mxu1 %vm3319_vm7, %v3228_v4 }
 0x4b5   : > { %v3209_v21 = vmax.f32 %v8868_v41, %v3164_v11  ;;  %v3166_v0 = vpop.f32.mrb[45].mxu1  ;;  %3402 = vmatmul.mubr.bf16.gmra.mrb[68].mxu1 %v8942_v30 }
 0x4b6   : > { %v3210_v40 = vmax.f32 %v8870_v35, %v3166_v0  ;;  %v3168_v15 = vpop.f32.mrb[46].mxu1  ;;  %3535 = vmatpush1.bf16.msra.mxu1 %v7463_v9  ;;  %v7465_v35 = vld [vmem:[%s9787_s4 + $0x94] sm:$0xff]  }
 0x4b7   : > { %v3211_v12 = vmax.f32 %v8872_v45, %v3168_v15  ;;  %v3170_v16 = vpop.f32.mrb[47].mxu1  ;;  %3536 = vmatprep.subr.bf16.mxu1 %v7696_v2 }
 0x4b8   : > { %v3212_v38 = vmax.f32 %v8874_v27, %v3170_v16  ;;  %v7466_v27 = vld [vmem:[%s9787_s4 + $0x9c] sm:$0xff]  }
 0x4b9   : > { %v3229_v7 = vpack.c.bf16 %v3211_v12, %v3209_v21 }
 0x4ba   : > { %v3230_v41 = vpack.c.bf16 %v3212_v38, %v3210_v40  ;;  %3537 = vmatpush1.bf16.msra.mxu1 %v7464_v31 }
 0x4bb   : > { %3538 = vmatprep.subr.bf16.mxu1 %v7696_v2 }
 0x4bc   : > { %v3174_v36 = vpop.f32.mrb[48].mxu1  ;;  %6392 = vmatprep.mubr.msk.bf16.mxu1 %vm3319_vm7, %v3230_v41 }
 0x4bd   : > { %v3213_v10 = vmax.f32 %v8876_v37, %v3174_v36  ;;  %v3176_v45 = vpop.f32.mrb[49].mxu1  ;;  %3410 = vmatmul.mubr.bf16.gmra.mrb[72].mxu1 %v3229_v7 }
 0x4be   : > { %v3214_v14 = vmax.f32 %v8878_v5, %v3176_v45  ;;  %v3178_v46 = vpop.f32.mrb[50].mxu1  ;;  %3539 = vmatpush1.bf16.msra.mxu1 %v7465_v35  ;;  %v3520_v5 = vsel %vm3341_vm6, %v7467_v42, 0 }
 0x4bf   : > { %v3215_v55 = vmax.f32 %v8880_v3, %v3178_v46  ;;  %v3180_v62 = vpop.f32.mrb[51].mxu1  ;;  %3540 = vmatprep.subr.bf16.mxu1 %v7696_v2 }
 0x4c0   : > { %v3216_v37 = vmax.f32 %v8882_v34, %v3180_v62 }
 0x4c1   : > { %v3231_v24 = vpack.c.bf16 %v3215_v55, %v3213_v10 }
 0x4c2   : > { %v3232_v18 = vpack.c.bf16 %v3216_v37, %v3214_v14  ;;  %3541 = vmatpush1.bf16.msra.mxu1 %v7466_v27 }
 0x4c3   : > { %3542 = vmatprep.subr.bf16.mxu1 %v7696_v2 }
 0x4c4   : > { %v3184_v1 = vpop.f32.mrb[52].mxu1  ;;  %6393 = vmatprep.mubr.msk.bf16.mxu1 %vm3319_vm7, %v3232_v18 }
 0x4c5   : > { %v3217_v3 = vmax.f32 %v8884_v32, %v3184_v1  ;;  %v3186_v51 = vpop.f32.mrb[53].mxu1  ;;  %3418 = vmatmul.mubr.bf16.gmra.mrb[76].mxu1 %v3231_v24  ;;  %v7468_v32 = vld [vmem:[%s9788_s5 + $0x58] ss:$8 sps:$4 sm:$0xff]  }
 0x4c6   : > { %v3218_v50 = vmax.f32 %v8886_v13, %v3186_v51  ;;  %v3188_v17 = vpop.f32.mrb[54].mxu1  ;;  %3543 = vmatpush1.bf16.msra.mxu1 %v3520_v5  ;;  %v7470_v13 = vld [vmem:[%s9788_s5 + $0x5c] ss:$8 sps:$4 sm:$0xff]  }
 0x4c7   : > { %v3219_v34 = vmax.f32 %v8888_v52, %v3188_v17  ;;  %v3190_v49 = vpop.f32.mrb[55].mxu1  ;;  %3794 = vmatprep.subr.bf16.mxu1 %v7470_v13  ;;  %v7471_v52 = vld [vmem:[%s9788_s5 + $0x68] ss:$8 sps:$4 sm:$0xff]  }
 0x4c8   : > { %v3220_v28 = vmax.f32 %v8890_v43, %v3190_v49  ;;  %v7473_v43 = vld [vmem:[%s9788_s5 + $0x6c] ss:$8 sps:$4 sm:$0xff]  }
 0x4c9   : > { %v3233_v33 = vpack.c.bf16 %v3219_v34, %v3217_v3 }
 0x4ca   : > { %v3234_v58 = vpack.c.bf16 %v3220_v28, %v3218_v50 }
 0x4cc   : > { %6394 = vmatprep.mubr.msk.bf16.mxu1 %vm3319_vm7, %v3234_v58 }
 0x4cd   : > { %3426 = vmatmul.mubr.bf16.gmra.mrb[80].mxu1 %v3233_v33 }
 0x4ce   : > { %6427 = vmatprep.mubr.msk.bf16.mxu1 %vm3319_vm7, %v8894_v25  ;;  %v7476_v25 = vld [vmem:[%s9788_s5 + $0x7c] ss:$8 sps:$4 sm:$0xff]  }
 0x4d5   : > { %3555 = vmatmul.mubr.bf16.vlgmr.msra.gmra.mrb[84].mxu1 %v8892_v39  ;;  %v7474_v39 = vld [vmem:[%s9788_s5 + $0x78] ss:$8 sps:$4 sm:$0xff]  }
 0x4d6   : > { %6428 = vmatprep.mubr.msk.bf16.mxu1 %vm3319_vm7, %v8908_v59  ;;  %3795 = vmatpush1.bf16.msra.mxu1 %v7468_v32  ;;  %v7479_v59 = vld [vmem:[%s9788_s5 + $0x8c] ss:$8 sps:$4 sm:$0xff]  }
 0x4d7   : > { %3796 = vmatprep.subr.bf16.mxu1 %v7473_v43 }
 0x4da   : > { %3797 = vmatpush1.bf16.msra.mxu1 %v7471_v52 }
 0x4db   : > { %3798 = vmatprep.subr.bf16.mxu1 %v7476_v25 }
 0x4dd   : > { %3563 = vmatmul.mubr.bf16.gmra.mrb[88].mxu1 %v8906_v6  ;;  %v7477_v6 = vld [vmem:[%s9788_s5 + $0x88] ss:$8 sps:$4 sm:$0xff]  }
 0x4de   : > { %6429 = vmatprep.mubr.msk.bf16.mxu1 %vm3319_vm7, %v8925_v54  ;;  %3799 = vmatpush1.bf16.msra.mxu1 %v7474_v39 }
 0x4df   : > { %3800 = vmatprep.subr.bf16.mxu1 %v7479_v59 }
 0x4e2   : > { %3801 = vmatpush1.bf16.msra.mxu1 %v7477_v6 }
 0x4e3   : > { %3802 = vmatprep.subr.bf16.mxu1 %v7482_v29 }
 0x4e5   : > { %3571 = vmatmul.mubr.bf16.gmra.mrb[92].mxu1 %v8923_v47  ;;  %v6444_v47 = vld [vmem:[%s9788_s5 + $0xa8] sm:$0x33] }
 0x4e6   : > { %6430 = vmatprep.mubr.msk.bf16.mxu1 %vm3319_vm7, %v3228_v4  ;;  %3803 = vmatpush1.bf16.msra.mxu1 %v7480_v19  ;;  %v6456_v54 = vcombine.high %v6444_v47, %v6444_v47  ;;  %v6455_v44 = vcombine.low %v6444_v47, %v6444_v47  ;;  %v7485_v47 = vld [vmem:[%s9788_s5] ss:$8 sps:$4 sm:$0xff]  }
 0x4e8   : > { %6457 = vmatprep.subr.msk.bf16.mxu1 %vm3787_vm8, %v6456_v54  ;;  %v3789_v53 = vsel %vm3787_vm8, %v6455_v44, 0 }
 0x4ea   : > { %3805 = vmatpush1.bf16.msra.mxu1 %v3789_v53  ;;  %v7490_v53 = vld [vmem:[%s9788_s5 + $0x14] ss:$8 sps:$4 sm:$0xff]  }
 0x4eb   : > { %3972 = vmatprep.subr.bf16.mxu1 %v7487_v57 }
 0x4ed   : > { %3579 = vmatmul.mubr.bf16.gmra.mrb[96].mxu1 %v8942_v30 }
 0x4ee   : > { %6431 = vmatprep.mubr.msk.bf16.mxu1 %vm3319_vm7, %v3230_v41 }
 0x4f5   : > { %3587 = vmatmul.mubr.bf16.gmra.mrb[100].mxu1 %v3229_v7 }
 0x4f6   : > { %6432 = vmatprep.mubr.msk.bf16.mxu1 %vm3319_vm7, %v3232_v18 }
 0x4fd   : > { %3595 = vmatmul.mubr.bf16.gmra.mrb[104].mxu1 %v3231_v24 }
 0x4fe   : > { %6433 = vmatprep.mubr.msk.bf16.mxu1 %vm3319_vm7, %v3234_v58 }
 0x505   : > { %3603 = vmatmul.mubr.bf16.gmra.mrb[108].mxu1 %v3233_v33 }
 0x506   : > { %3826 = vmatprep.mubr.bf16.mxu1 %v7696_v2 }
 0x570   : > { %v3379_v61 = vpop.f32.mrb[56].mxu1 }
 0x571   : > { %v3381_v8 = vpop.f32.mrb[57].mxu1 }
 0x572   : > { %v3382_v48 = vpop.f32.mrb[58].mxu1 }
 0x573   : > { %v3384_v56 = vpop.f32.mrb[59].mxu1 }
 0x578   : > { %v3387_v60 = vpop.f32.mrb[60].mxu1 }
 0x579   : > { %v3389_v63 = vpop.f32.mrb[61].mxu1 }
 0x57a   : > { %v3390_v20 = vpop.f32.mrb[62].mxu1  ;;  %v7488_v63 = vld [vmem:[%s9788_s5 + $0x10] ss:$8 sps:$4 sm:$0xff]  }
 0x57b   : > { %v3392_v30 = vpop.f32.mrb[63].mxu1 }
 0x580   : > { %v3395_v4 = vpop.f32.mrb[64].mxu1 }
 0x581   : > { %v3397_v9 = vpop.f32.mrb[65].mxu1 }
 0x582   : > { %v3398_v11 = vpop.f32.mrb[66].mxu1 }
 0x583   : > { %v3400_v21 = vpop.f32.mrb[67].mxu1 }
 0x588   : > { %v9035_v0 = vpop.f32.mrb[68].mxu1 }
 0x589   : > { %v3405_v40 = vpop.f32.mrb[69].mxu1 }
 0x58a   : > { %v9037_v15 = vpop.f32.mrb[70].mxu1 }
 0x58b   : > { %v3408_v31 = vpop.f32.mrb[71].mxu1 }
 0x590   : > { %v9039_v12 = vpop.f32.mrb[72].mxu1 }
 0x591   : > { %v3413_v16 = vpop.f32.mrb[73].mxu1 }
 0x592   : > { %v9041_v38 = vpop.f32.mrb[74].mxu1 }
 0x593   : > { %v3416_v7 = vpop.f32.mrb[75].mxu1 }
 0x594   : > { %v7491_v7 = vld [vmem:[%s9788_s5 + $0x20] ss:$8 sps:$4 sm:$0xff]  }
 0x598   : > { %v9043_v41 = vpop.f32.mrb[76].mxu1 }
 0x599   : > { %v3421_v35 = vpop.f32.mrb[77].mxu1 }
 0x59a   : > { %v9045_v36 = vpop.f32.mrb[78].mxu1 }
 0x59b   : > { %v3424_v10 = vpop.f32.mrb[79].mxu1 }
 0x5a0   : > { %v9047_v45 = vpop.f32.mrb[80].mxu1 }
 0x5a1   : > { %v3429_v14 = vpop.f32.mrb[81].mxu1 }
 0x5a2   : > { %v9049_v46 = vpop.f32.mrb[82].mxu1  ;;  %v7496_v14 = vld [vmem:[%s9788_s5 + $0x34] ss:$8 sps:$4 sm:$0xff]  }
 0x5a3   : > { %v3432_v27 = vpop.f32.mrb[83].mxu1 }
 0x5a8   : > { %v3556_v55 = vpop.f32.mrb[84].mxu1 }
 0x5a9   : > { %v3611_v62 = vmax.f32 %v3379_v61, %v3556_v55  ;;  %v3558_v42 = vpop.f32.mrb[85].mxu1 }
 0x5aa   : > { %v3559_v37 = vpop.f32.mrb[86].mxu1 }
 0x5ab   : > { %v3612_v24 = vmax.f32 %v3382_v48, %v3559_v37  ;;  %v3561_v18 = vpop.f32.mrb[87].mxu1 }
 0x5ad   : > { %v9051_v5 = vpack.c.bf16 %v3612_v24, %v3611_v62  ;;  %v7494_v24 = vld [vmem:[%s9788_s5 + $0x30] ss:$8 sps:$4 sm:$0xff]  }
 0x5af   : > { %v3658_v1 = vshll.u32 %v9051_v5, 16  ;;  %v3656_v3 = vshrl.u32 %v9051_v5, 16 }
 0x5b0   : > { %v3564_v51 = vpop.f32.mrb[88].mxu1 }
 0x5b1   : > { %v3613_v50 = vmax.f32 %v3387_v60, %v3564_v51  ;;  %v3566_v17 = vpop.f32.mrb[89].mxu1  ;;  %v4332_v34 = vrot.slane %v3656_v3, 1  ;;  %v4333_v49 = vrot.slane %v3658_v1, 2  ;;  %v3660_v52 = vrot.slane %v3658_v1, 1  ;;  %v3642_v51 = vld [vmem:[%s9788_s5 + $0x50] sm:$0x33] }
 0x5b2   : > { %v3567_v28 = vpop.f32.mrb[90].mxu1 }
 0x5b3   : > { %v3614_v33 = vmax.f32 %v3390_v20, %v3567_v28  ;;  %v3569_v58 = vpop.f32.mrb[91].mxu1  ;;  %v4334_v32 = vor.u32 %v4333_v49, %v4332_v34  ;;  %v3661_v19 = vor.u32 %v3660_v52, %v3656_v3  ;;  %v7493_v20 = vld [vmem:[%s9788_s5 + $0x24] ss:$8 sps:$4 sm:$0xff]   ;;  %v6476_v52 = vcombine.high %v3642_v51, %v3642_v51 }
 0x5b5   : > { %v9055_v13 = vpack.c.bf16 %v3614_v33, %v3613_v50  ;;  %v7497_v33 = vld [vmem:[%s9788_s5 + $0x40] ss:$8 sps:$4 sm:$0xff]  }
 0x5b7   : > { %v3663_v43 = vshll.u32 %v9055_v13, 16  ;;  %v3667_v39 = vshrl.u32 %v9055_v13, 16 }
 0x5b8   : > { %v3572_v25 = vpop.f32.mrb[92].mxu1 }
 0x5b9   : > { %v3615_v6 = vmax.f32 %v3395_v4, %v3572_v25  ;;  %v3574_v59 = vpop.f32.mrb[93].mxu1  ;;  %v3665_v29 = vrot.slane %v3663_v43, 1  ;;  %v4335_v54 = vrot.slane %v3667_v39, 1  ;;  %v4336_v57 = vrot.slane %v3663_v43, 2 }
 0x5ba   : > { %v3575_v44 = vpop.f32.mrb[94].mxu1  ;;  %v6475_v43 = vcombine.low %v3642_v51, %v3642_v51 }
 0x5bb   : > { %v3616_v61 = vmax.f32 %v3398_v11, %v3575_v44  ;;  %v3577_v8 = vpop.f32.mrb[95].mxu1  ;;  %v3666_v48 = vsel %vm633_vm0, %v3661_v19, %v3665_v29  ;;  %v4337_v56 = vor.u32 %v4336_v57, %v4335_v54  ;;  %v3669_v31 = vor.u32 %v3667_v39, %v3665_v29 }
 0x5bc   : > { %6458 = vmatmul.mubr.msk.bf16.vlgmr.msra.gmra.mrb[112].mxu1 %vm3765_vm9, %v3666_v48  ;;  %v3967_v29 = vsel %vm3787_vm8, %v6475_v43, 0  ;;  %v7505_v43 = vld [vmem:[%s9788_s5 + $0xc0] ss:$8 sps:$4 sm:$0xff]  }
 0x5bd   : > { %v9067_v60 = vpack.c.bf16 %v3616_v61, %v3615_v6  ;;  %3973 = vmatpush1.bf16.msra.mxu1 %v7485_v47  ;;  %3836 = vmatprep.mubr.bf16.mxu1 %v7696_v2  ;;  %v9077_v30 = vsel %vm1771_vm2, %v4334_v32, %v4337_v56  ;;  %v7504_v47 = vld [vmem:[%s9788_s5 + $0xb4] ss:$8 sps:$4 sm:$0xff]  }
 0x5be   : > { %3974 = vmatprep.subr.bf16.mxu1 %v7490_v53 }
 0x5bf   : > { %v3671_v4 = vshll.u32 %v9067_v60, 16  ;;  %v3675_v9 = vshrl.u32 %v9067_v60, 16 }
 0x5c0   : > { %v3580_v11 = vpop.f32.mrb[96].mxu1 }
 0x5c1   : > { %v3617_v21 = vmax.f32 %v9035_v0, %v3580_v11  ;;  %v3582_v40 = vpop.f32.mrb[97].mxu1  ;;  %v3673_v16 = vrot.slane %v3671_v4, 1  ;;  %3975 = vmatpush1.bf16.msra.mxu1 %v7488_v63  ;;  %v4339_v35 = vrot.slane %v3675_v9, 1  ;;  %v4340_v27 = vrot.slane %v3671_v4, 2 }
 0x5c2   : > { %v3583_v10 = vpop.f32.mrb[98].mxu1  ;;  %3976 = vmatprep.subr.bf16.mxu1 %v7493_v20 }
 0x5c3   : > { %v3618_v55 = vmax.f32 %v9037_v15, %v3583_v10  ;;  %v3585_v62 = vpop.f32.mrb[99].mxu1  ;;  %v3674_v0 = vsel %vm633_vm0, %v3669_v31, %v3673_v16  ;;  %v4341_v42 = vor.u32 %v4340_v27, %v4339_v35  ;;  %v7499_v15 = vld [vmem:[%s9788_s5 + $0x44] ss:$8 sps:$4 sm:$0xff]   ;;  %v3677_v49 = vor.u32 %v3675_v9, %v3673_v16 }
 0x5c4   : > { %6459 = vmatmul.mubr.msk.bf16.gmra.mrb[116].mxu1 %vm3765_vm9, %v3674_v0 }
 0x5c5   : > { %v9091_v37 = vpack.c.bf16 %v3618_v55, %v3617_v21  ;;  %3846 = vmatprep.mubr.bf16.mxu1 %v7696_v2  ;;  %3977 = vmatpush1.bf16.msra.mxu1 %v7491_v7  ;;  %v9101_v18 = vsel %vm1771_vm2, %v4337_v56, %v4341_v42 }
 0x5c6   : > { %3978 = vmatprep.subr.bf16.mxu1 %v7496_v14 }
 0x5c7   : > { %v3679_v1 = vshll.u32 %v9091_v37, 16  ;;  %v3683_v3 = vshrl.u32 %v9091_v37, 16 }
 0x5c8   : > { %v3588_v50 = vpop.f32.mrb[100].mxu1 }
 0x5c9   : > { %v3619_v17 = vmax.f32 %v9039_v12, %v3588_v50  ;;  %v3590_v34 = vpop.f32.mrb[101].mxu1  ;;  %v3681_v28 = vrot.slane %v3679_v1, 1  ;;  %3979 = vmatpush1.bf16.msra.mxu1 %v7494_v24  ;;  %v4343_v58 = vrot.slane %v3683_v3, 1  ;;  %v4344_v39 = vrot.slane %v3679_v1, 2 }
 0x5ca   : > { %v3591_v32 = vpop.f32.mrb[102].mxu1  ;;  %3980 = vmatprep.subr.bf16.mxu1 %v7499_v15 }
 0x5cb   : > { %v3620_v25 = vmax.f32 %v9041_v38, %v3591_v32  ;;  %v3593_v6 = vpop.f32.mrb[103].mxu1  ;;  %v3682_v59 = vsel %vm633_vm0, %v3677_v49, %v3681_v28  ;;  %v4345_v12 = vor.u32 %v4344_v39, %v4343_v58  ;;  %v3685_v8 = vor.u32 %v3683_v3, %v3681_v28  ;;  %v7502_v32 = vld [vmem:[%s9788_s5 + $0xb0] ss:$8 sps:$4 sm:$0xff]   ;;  %v7510_v39 = vld [vmem:[%s9788_s5 + $0xd4] ss:$8 sps:$4 sm:$0xff]  }
 0x5cc   : > { %6460 = vmatmul.mubr.msk.bf16.gmra.mrb[120].mxu1 %vm3765_vm9, %v3682_v59  ;;  %v7513_v6 = vld [vmem:[%s9788_s5 + $0xe4] ss:$8 sps:$4 sm:$0xff]   ;;  %v7511_v59 = vld [vmem:[%s9788_s5 + $0xe0] ss:$8 sps:$4 sm:$0xff]  }
 0x5cd   : > { %v9115_v19 = vpack.c.bf16 %v3620_v25, %v3619_v17  ;;  %3856 = vmatprep.mubr.bf16.mxu1 %v7696_v2  ;;  %3981 = vmatpush1.bf16.msra.mxu1 %v7497_v33  ;;  %v9124_v38 = vsel %vm1771_vm2, %v4341_v42, %v4345_v12  ;;  %v7508_v25 = vld [vmem:[%s9788_s5 + $0xd0] ss:$8 sps:$4 sm:$0xff]  }
 0x5ce   : > { %6477 = vmatprep.subr.msk.bf16.mxu1 %vm3787_vm8, %v6476_v52  ;;  %v7507_v52 = vld [vmem:[%s9788_s5 + $0xc4] ss:$8 sps:$4 sm:$0xff]  }
 0x5cf   : > { %v3687_v54 = vshll.u32 %v9115_v19, 16  ;;  %v3691_v44 = vshrl.u32 %v9115_v19, 16 }
 0x5d0   : > { %v3596_v53 = vpop.f32.mrb[104].mxu1 }
 0x5d1   : > { %v3621_v57 = vmax.f32 %v9043_v41, %v3596_v53  ;;  %v3598_v61 = vpop.f32.mrb[105].mxu1  ;;  %v3689_v48 = vrot.slane %v3687_v54, 1  ;;  %3983 = vmatpush1.bf16.msra.mxu1 %v3967_v29  ;;  %v4347_v56 = vrot.slane %v3691_v44, 1  ;;  %v4348_v20 = vrot.slane %v3687_v54, 2  ;;  %v6495_v29 = vld [vmem:[%s9788_s5 + $0x100] sm:$0x33] }
 0x5d2   : > { %v3599_v63 = vpop.f32.mrb[106].mxu1  ;;  %4189 = vmatprep.subr.bf16.mxu1 %v7504_v47  ;;  %v7514_v47 = vld [vmem:[%s9788_s5 + $0xf0] ss:$8 sps:$4 sm:$0xff]   ;;  %v6507_v54 = vcombine.high %v6495_v29, %v6495_v29  ;;  %v4095_v61 = vrot.slane %v9055_v13, 1 }
 0x5d3   : > { %v3622_v4 = vmax.f32 %v9045_v36, %v3599_v63  ;;  %v3601_v9 = vpop.f32.mrb[107].mxu1  ;;  %v3690_v11 = vsel %vm633_vm0, %v3685_v8, %v3689_v48  ;;  %v4349_v21 = vor.u32 %v4348_v20, %v4347_v56  ;;  %v3693_v10 = vor.u32 %v3691_v44, %v3689_v48  ;;  %v7519_v48 = vld [vmem:[%s9788_s5 + $0x108] ss:$8 sps:$4 sm:$0xff]   ;;  %v7524_v56 = vld [vmem:[%s9788_s5 + $0x11c] ss:$8 sps:$4 sm:$0xff]  }
 0x5d4   : > { %6461 = vmatmul.mubr.msk.bf16.gmra.mrb[124].mxu1 %vm3765_vm9, %v3690_v11  ;;  %v6506_v44 = vcombine.low %v6495_v29, %v6495_v29  ;;  %v4094_v8 = vrot.slane %v9051_v5, 1  ;;  %v7522_v20 = vld [vmem:[%s9788_s5 + $0x118] ss:$8 sps:$4 sm:$0xff]   ;;  %v4097_v9 = vrot.slane %v9067_v60, 1  ;;  %v7525_v11 = vld [vmem:[%s9788_s5 + $0x128] ss:$8 sps:$4 sm:$0xff]  }
 0x5d5   : > { %v9132_v40 = vpack.c.bf16 %v3622_v4, %v3621_v57  ;;  %3866 = vmatprep.mubr.bf16.mxu1 %v7696_v2  ;;  %v9136_v41 = vsel %vm1771_vm2, %v4345_v12, %v4349_v21  ;;  %v7516_v12 = vld [vmem:[%s9788_s5 + $0xf4] ss:$8 sps:$4 sm:$0xff]  }
 0x5d6   : > { %v4184_v53 = vsel %vm3787_vm8, %v6506_v44, 0  ;;  %v7521_v57 = vld [vmem:[%s9788_s5 + $0x10c] ss:$8 sps:$4 sm:$0xff]   ;;  %v4096_v63 = vsel %vm1361_vm3, %v4094_v8, %v4095_v61 }
 0x5d7   : > { %v3695_v31 = vshll.u32 %v9132_v40, 16  ;;  %v3699_v16 = vshrl.u32 %v9132_v40, 16  ;;  %v7527_v4 = vld [vmem:[%s9788_s5 + $0x12c] ss:$8 sps:$4 sm:$0xff]  }
 0x5d8   : > { %v3604_v7 = vpop.f32.mrb[108].mxu1  ;;  %v7563_v44 = vld [vmem:[%s9791_s8 + $0x70] sm:$0xff]  }
 0x5d9   : > { %v3623_v36 = vmax.f32 %v9047_v45, %v3604_v7  ;;  %v3606_v35 = vpop.f32.mrb[109].mxu1  ;;  %v3697_v14 = vrot.slane %v3695_v31, 1  ;;  %v4351_v27 = vrot.slane %v3699_v16, 1  ;;  %v4352_v62 = vrot.slane %v3695_v31, 2  ;;  %v7533_v7 = vld [vmem:[%s9788_s5 + $0x14c] ss:$8 sps:$4 sm:$0xff]  }
 0x5da   : > { %v3607_v55 = vpop.f32.mrb[110].mxu1  ;;  %v4098_v31 = vsel %vm1361_vm3, %v4095_v61, %v4097_v9  ;;  %v6526_v35 = vld [vmem:[%s9788_s5 + $0x158] sm:$0x33] }
 0x5db   : > { %v3624_v0 = vmax.f32 %v9049_v46, %v3607_v55  ;;  %v3609_v42 = vpop.f32.mrb[111].mxu1  ;;  %v3698_v24 = vsel %vm633_vm0, %v3693_v10, %v3697_v14  ;;  %v4353_v15 = vor.u32 %v4352_v62, %v4351_v27  ;;  %v3701_v50 = vor.u32 %v3699_v16, %v3697_v14  ;;  %v7528_v16 = vld [vmem:[%s9788_s5 + $0x138] ss:$8 sps:$4 sm:$0xff]   ;;  %v7531_v10 = vld [vmem:[%s9788_s5 + $0x148] ss:$8 sps:$4 sm:$0xff]  }
 0x5dc   : > { %6462 = vmatmul.mubr.msk.bf16.gmra.mrb[128].mxu1 %vm3765_vm9, %v3698_v24  ;;  %v6538_v14 = vcombine.high %v6526_v35, %v6526_v35  ;;  %v6537_v27 = vcombine.low %v6526_v35, %v6526_v35  ;;  %v4101_v42 = vrot.slane %v9115_v19, 1 }
 0x5dd   : > { %v9144_v1 = vpack.c.bf16 %v3624_v0, %v3623_v36  ;;  %3876 = vmatprep.mubr.bf16.mxu1 %v7696_v2  ;;  %v9148_v45 = vsel %vm1771_vm2, %v4349_v21, %v4353_v15  ;;  %v7530_v21 = vld [vmem:[%s9788_s5 + $0x13c] ss:$8 sps:$4 sm:$0xff]   ;;  %v4099_v36 = vrot.slane %v9091_v37, 1 }
 0x5de   : > { %v4436_v62 = vsel %vm3787_vm8, %v6537_v27, 0  ;;  %v7538_v0 = vld [vmem:[%s9788_s5 + $0x164] ss:$8 sps:$4 sm:$0xff]  }
 0x5df   : > { %v3703_v3 = vshll.u32 %v9144_v1, 16  ;;  %v3707_v51 = vshrl.u32 %v9144_v1, 16  ;;  %v4100_v55 = vsel %vm1361_vm3, %v4097_v9, %v4099_v36  ;;  %v4102_v24 = vsel %vm1361_vm3, %v4099_v36, %v4101_v42 }
 0x5e1   : > { %v3705_v17 = vrot.slane %v3703_v3, 1  ;;  %v4355_v46 = vrot.slane %v3707_v51, 1  ;;  %v4356_v34 = vrot.slane %v3703_v3, 2 }
 0x5e3   : > { %v3706_v49 = vsel %vm633_vm0, %v3701_v50, %v3705_v17  ;;  %v9153_v28 = vor.u32 %v4356_v34, %v4355_v46  ;;  %v3709_v58 = vor.u32 %v3707_v51, %v3705_v17  ;;  %v4105_v51 = vrot.slane %v9144_v1, 1  ;;  %v7536_v17 = vld [vmem:[%s9788_s5 + $0x160] ss:$8 sps:$4 sm:$0xff]   ;;  %v7541_v46 = vld [vmem:[%s9788_s5 + $0x174] ss:$8 sps:$4 sm:$0xff]  }
 0x5e4   : > { %6463 = vmatmul.mubr.msk.bf16.gmra.mrb[132].mxu1 %vm3765_vm9, %v3706_v49  ;;  %v7539_v34 = vld [vmem:[%s9788_s5 + $0x170] ss:$8 sps:$4 sm:$0xff]   ;;  %v7544_v49 = vld [vmem:[%s9788_s5 + $0x184] ss:$8 sps:$4 sm:$0xff]  }
 0x5e5   : > { %3886 = vmatprep.mubr.bf16.mxu1 %v7696_v2  ;;  %v9159_v33 = vsel %vm1771_vm2, %v4353_v15, %v9153_v28  ;;  %v4103_v15 = vrot.slane %v9132_v40, 1 }
 0x5e7   : > { %v4104_v3 = vsel %vm1361_vm3, %v4101_v42, %v4103_v15  ;;  %v4106_v50 = vsel %vm1361_vm3, %v4103_v15, %v4105_v51 }
 0x5ec   : > { %6464 = vmatmul.mubr.msk.bf16.gmra.mrb[136].mxu1 %vm3765_vm9, %v3709_v58  ;;  %v7542_v58 = vld [vmem:[%s9788_s5 + $0x180] ss:$8 sps:$4 sm:$0xff]  }
 0x5ed   : > { %4004 = vmatprep.mubr.bf16.mxu1 %v7696_v2 }
 0x5f4   : > { %6478 = vmatmul.mubr.msk.bf16.vlgmr.msra.gmra.mrb[112].mxu1 %vm3765_vm9, %v9051_v5 }
 0x5f5   : > { %4190 = vmatpush1.bf16.msra.mxu1 %v7502_v32  ;;  %4014 = vmatprep.mubr.bf16.mxu1 %v7696_v2  ;;  %v7545_v32 = vld [vmem:[%s9788_s5 + $0x190] ss:$8 sps:$4 sm:$0xff]  }
 0x5f6   : > { %4191 = vmatprep.subr.bf16.mxu1 %v7507_v52  ;;  %v7550_v52 = vld [vmem:[%s9788_s5 + $0x1a4] ss:$8 sps:$4 sm:$0xff]  }
 0x5f9   : > { %4192 = vmatpush1.bf16.msra.mxu1 %v7505_v43  ;;  %v6557_v43 = vld [vmem:[%s9788_s5 + $0x1b0] sm:$0x33] }
 0x5fa   : > { %4193 = vmatprep.subr.bf16.mxu1 %v7510_v39  ;;  %v6569_v39 = vcombine.high %v6557_v43, %v6557_v43 }
 0x5fc   : > { %6479 = vmatmul.mubr.msk.bf16.gmra.mrb[116].mxu1 %vm3765_vm9, %v9055_v13 }
 0x5fd   : > { %4024 = vmatprep.mubr.bf16.mxu1 %v7696_v2  ;;  %4194 = vmatpush1.bf16.msra.mxu1 %v7508_v25  ;;  %v6568_v25 = vcombine.low %v6557_v43, %v6557_v43 }
 0x5fe   : > { %4195 = vmatprep.subr.bf16.mxu1 %v7513_v6 }
 0x5ff   : > { %v4674_v6 = vsel %vm3787_vm8, %v6568_v25, 0 }
 0x601   : > { %4196 = vmatpush1.bf16.msra.mxu1 %v7511_v59 }
 0x602   : > { %4197 = vmatprep.subr.bf16.mxu1 %v7516_v12 }
 0x604   : > { %6480 = vmatmul.mubr.msk.bf16.gmra.mrb[120].mxu1 %vm3765_vm9, %v9067_v60 }
 0x605   : > { %4034 = vmatprep.mubr.bf16.mxu1 %v7696_v2  ;;  %4198 = vmatpush1.bf16.msra.mxu1 %v7514_v47 }
 0x606   : > { %6508 = vmatprep.subr.msk.bf16.mxu1 %vm3787_vm8, %v6507_v54  ;;  %v7562_v54 = vld [vmem:[%s9791_s8 + $0x68] sm:$0xff]  }
 0x609   : > { %4200 = vmatpush1.bf16.msra.mxu1 %v4184_v53  ;;  %v4810_v53 = vld [vmem:[%s9789_s6] sm:$0x3] }
 0x60a   : > { %4441 = vmatprep.subr.bf16.mxu1 %v7521_v57  ;;  %v7564_v57 = vld [vmem:[%s9791_s8 + $0x78] sm:$0xff]   ;;  %v9388_v61 = vrot.slane %v4810_v53, %v2614_v26  ;;  %v9393_v8 = vrot.slane %v4810_v53, %v2618_v23 }
 0x60c   : > { %6481 = vmatmul.mubr.msk.bf16.gmra.mrb[124].mxu1 %vm3765_vm9, %v9091_v37 }
 0x60d   : > { %4044 = vmatprep.mubr.bf16.mxu1 %v7696_v2 }
 0x614   : > { %6482 = vmatmul.mubr.msk.bf16.gmra.mrb[128].mxu1 %vm3765_vm9, %v9115_v19 }
 0x615   : > { %4054 = vmatprep.mubr.bf16.mxu1 %v7696_v2 }
 0x61c   : > { %6483 = vmatmul.mubr.msk.bf16.gmra.mrb[132].mxu1 %vm3765_vm9, %v9132_v40 }
 0x61d   : > { %4064 = vmatprep.mubr.bf16.mxu1 %v7696_v2 }
 0x624   : > { %6484 = vmatmul.mubr.msk.bf16.gmra.mrb[136].mxu1 %vm3765_vm9, %v9144_v1 }
 0x625   : > { %4221 = vmatprep.mubr.bf16.mxu1 %v7696_v2 }
 0x62c   : > { %6509 = vmatmul.mubr.msk.bf16.vlgmr.msra.gmra.mrb[112].mxu1 %vm3765_vm9, %v4096_v63 }
 0x62d   : > { %4442 = vmatpush1.bf16.msra.mxu1 %v7519_v48  ;;  %4231 = vmatprep.mubr.bf16.mxu1 %v7696_v2 }
 0x62e   : > { %4443 = vmatprep.subr.bf16.mxu1 %v7524_v56  ;;  %v7565_v56 = vld [vmem:[%s9791_s8 + $0x80] sm:$0xff]  }
 0x631   : > { %4444 = vmatpush1.bf16.msra.mxu1 %v7522_v20 }
 0x632   : > { %4445 = vmatprep.subr.bf16.mxu1 %v7527_v4 }
 0x634   : > { %6510 = vmatmul.mubr.msk.bf16.gmra.mrb[116].mxu1 %vm3765_vm9, %v4098_v31 }
 0x635   : > { %4241 = vmatprep.mubr.bf16.mxu1 %v7696_v2  ;;  %4446 = vmatpush1.bf16.msra.mxu1 %v7525_v11 }
 0x636   : > { %4447 = vmatprep.subr.bf16.mxu1 %v7530_v21 }
 0x639   : > { %4448 = vmatpush1.bf16.msra.mxu1 %v7528_v16 }
 0x63a   : > { %4449 = vmatprep.subr.bf16.mxu1 %v7533_v7 }
 0x63c   : > { %6511 = vmatmul.mubr.msk.bf16.gmra.mrb[120].mxu1 %vm3765_vm9, %v4100_v55 }
 0x63d   : > { %4251 = vmatprep.mubr.bf16.mxu1 %v7696_v2  ;;  %4450 = vmatpush1.bf16.msra.mxu1 %v7531_v10 }
 0x63e   : > { %6539 = vmatprep.subr.msk.bf16.mxu1 %vm3787_vm8, %v6538_v14 }
 0x641   : > { %4452 = vmatpush1.bf16.msra.mxu1 %v4436_v62 }
 0x642   : > { %4679 = vmatprep.subr.bf16.mxu1 %v7538_v0 }
 0x644   : > { %6512 = vmatmul.mubr.msk.bf16.gmra.mrb[124].mxu1 %vm3765_vm9, %v4102_v24 }
 0x645   : > { %4261 = vmatprep.mubr.bf16.mxu1 %v7696_v2 }
 0x64c   : > { %6513 = vmatmul.mubr.msk.bf16.gmra.mrb[128].mxu1 %vm3765_vm9, %v4104_v3 }
 0x64d   : > { %4271 = vmatprep.mubr.bf16.mxu1 %v7696_v2 }
 0x654   : > { %6514 = vmatmul.mubr.msk.bf16.gmra.mrb[132].mxu1 %vm3765_vm9, %v4106_v50 }
 0x655   : > { %4281 = vmatprep.mubr.bf16.mxu1 %v7696_v2 }
 0x65c   : > { %6515 = vmatmul.mubr.msk.bf16.gmra.mrb[136].mxu1 %vm3765_vm9, %v4105_v51 }
 0x65d   : > { %4473 = vmatprep.mubr.bf16.mxu1 %v7696_v2 }
 0x664   : > { %6540 = vmatmul.mubr.msk.bf16.vlgmr.msra.gmra.mrb[112].mxu1 %vm3765_vm9, %v9077_v30  ;;  %v7547_v30 = vld [vmem:[%s9788_s5 + $0x194] ss:$8 sps:$4 sm:$0xff]  }
 0x665   : > { %4680 = vmatpush1.bf16.msra.mxu1 %v7536_v17  ;;  %4483 = vmatprep.mubr.bf16.mxu1 %v7696_v2 }
 0x666   : > { %4681 = vmatprep.subr.bf16.mxu1 %v7541_v46 }
 0x669   : > { %4682 = vmatpush1.bf16.msra.mxu1 %v7539_v34 }
 0x66a   : > { %4683 = vmatprep.subr.bf16.mxu1 %v7544_v49 }
 0x66c   : > { %6541 = vmatmul.mubr.msk.bf16.gmra.mrb[116].mxu1 %vm3765_vm9, %v9101_v18  ;;  %v7548_v18 = vld [vmem:[%s9788_s5 + $0x1a0] ss:$8 sps:$4 sm:$0xff]  }
 0x66d   : > { %4493 = vmatprep.mubr.bf16.mxu1 %v7696_v2  ;;  %4684 = vmatpush1.bf16.msra.mxu1 %v7542_v58 }
 0x66e   : > { %4685 = vmatprep.subr.bf16.mxu1 %v7547_v30 }
 0x671   : > { %4686 = vmatpush1.bf16.msra.mxu1 %v7545_v32 }
 0x672   : > { %4687 = vmatprep.subr.bf16.mxu1 %v7550_v52 }
 0x674   : > { %6542 = vmatmul.mubr.msk.bf16.gmra.mrb[120].mxu1 %vm3765_vm9, %v9124_v38  ;;  %v4585_v38 = vrot.slane %v9055_v13, 2 }
 0x675   : > { %4503 = vmatprep.mubr.bf16.mxu1 %v7696_v2  ;;  %4688 = vmatpush1.bf16.msra.mxu1 %v7548_v18 }
 0x676   : > { %6570 = vmatprep.subr.msk.bf16.mxu1 %vm3787_vm8, %v6569_v39 }
 0x679   : > { %4690 = vmatpush1.bf16.msra.mxu1 %v4674_v6 }
 0x67c   : > { %6543 = vmatmul.mubr.msk.bf16.gmra.mrb[124].mxu1 %vm3765_vm9, %v9136_v41  ;;  %v4584_v41 = vrot.slane %v9051_v5, 2  ;;  %v4591_v5 = vrot.slane %v9115_v19, 2  ;;  %v7559_v19 = vld [vmem:[%s9791_s8 + $0x50] sm:$0xff]  }
 0x67d   : > { %4513 = vmatprep.mubr.bf16.mxu1 %v7696_v2  ;;  %5320 = vmatpush1.bf16.msra.mxu0 %v7559_v19 }
 0x67e   : > { %v4586_v59 = vsel %vm2213_vm4, %v4584_v41, %v4585_v38  ;;  %5321 = vmatprep.subr.bf16.mxu0 %v7696_v2 }
 0x684   : > { %6544 = vmatmul.mubr.msk.bf16.gmra.mrb[128].mxu1 %vm3765_vm9, %v9148_v45  ;;  %v4587_v45 = vrot.slane %v9067_v60, 2  ;;  %v4593_v60 = vrot.slane %v9132_v40, 2  ;;  %v7560_v40 = vld [vmem:[%s9791_s8 + $0x58] sm:$0xff]  }
 0x685   : > { %4523 = vmatprep.mubr.bf16.mxu1 %v7696_v2  ;;  %5322 = vmatpush1.bf16.msra.mxu0 %v7560_v40 }
 0x686   : > { %v4594_v29 = vsel %vm2213_vm4, %v4591_v5, %v4593_v60  ;;  %5323 = vmatprep.subr.bf16.mxu0 %v7696_v2 }
 0x68c   : > { %6545 = vmatmul.mubr.msk.bf16.gmra.mrb[132].mxu1 %vm3765_vm9, %v9159_v33  ;;  %v4588_v33 = vsel %vm2213_vm4, %v4585_v38, %v4587_v45 }
 0x68d   : > { %4533 = vmatprep.mubr.bf16.mxu1 %v7696_v2 }
 0x694   : > { %6546 = vmatmul.mubr.msk.bf16.gmra.mrb[136].mxu1 %vm3765_vm9, %v9153_v28  ;;  %v4589_v28 = vrot.slane %v9091_v37, 2  ;;  %v4595_v37 = vrot.slane %v9144_v1, 2  ;;  %v7561_v1 = vld [vmem:[%s9791_s8 + $0x60] sm:$0xff]  }
 0x695   : > { %4711 = vmatprep.mubr.bf16.mxu1 %v7696_v2  ;;  %5324 = vmatpush1.bf16.msra.mxu0 %v7561_v1 }
 0x696   : > { %v4590_v13 = vsel %vm2213_vm4, %v4587_v45, %v4589_v28  ;;  %v4592_v12 = vsel %vm2213_vm4, %v4589_v28, %v4591_v5  ;;  %v4596_v47 = vsel %vm2213_vm4, %v4593_v60, %v4595_v37  ;;  %5325 = vmatprep.subr.bf16.mxu0 %v7696_v2 }
 0x699   : > { %5326 = vmatpush1.bf16.msra.mxu0 %v7562_v54 }
 0x69a   : > { %5327 = vmatprep.subr.bf16.mxu0 %v7696_v2 }
 0x69c   : > { %6571 = vmatmul.mubr.msk.bf16.vlgmr.msra.gmra.mrb[112].mxu1 %vm3765_vm9, %v4586_v59 }
 0x69d   : > { %4721 = vmatprep.mubr.bf16.mxu1 %v7696_v2  ;;  %5328 = vmatpush1.bf16.msra.mxu0 %v7563_v44 }
 0x69e   : > { %5329 = vmatprep.subr.bf16.mxu0 %v7696_v2 }
 0x6a1   : > { %5330 = vmatpush1.bf16.msra.mxu0 %v7564_v57 }
 0x6a2   : > { %5331 = vmatprep.subr.bf16.mxu0 %v7696_v2 }
 0x6a4   : > { %6572 = vmatmul.mubr.msk.bf16.gmra.mrb[116].mxu1 %vm3765_vm9, %v4588_v33 }
 0x6a5   : > { %4731 = vmatprep.mubr.bf16.mxu1 %v7696_v2  ;;  %5332 = vmatpush1.bf16.msra.mxu0 %v7565_v56 }
 0x6a6   : > { %5333 = vmatprep.subr.bf16.mxu0 %v7696_v2 }
 0x6ac   : > { %6573 = vmatmul.mubr.msk.bf16.gmra.mrb[120].mxu1 %vm3765_vm9, %v4590_v13 }
 0x6ad   : > { %4741 = vmatprep.mubr.bf16.mxu1 %v7696_v2 }
 0x6b4   : > { %6574 = vmatmul.mubr.msk.bf16.gmra.mrb[124].mxu1 %vm3765_vm9, %v4592_v12 }
 0x6b5   : > { %4751 = vmatprep.mubr.bf16.mxu1 %v7696_v2 }
 0x6bc   : > { %6575 = vmatmul.mubr.msk.bf16.gmra.mrb[128].mxu1 %vm3765_vm9, %v4594_v29 }
 0x6bd   : > { %4761 = vmatprep.mubr.bf16.mxu1 %v7696_v2 }
 0x6c4   : > { %6576 = vmatmul.mubr.msk.bf16.gmra.mrb[132].mxu1 %vm3765_vm9, %v4596_v47 }
 0x6c5   : > { %4771 = vmatprep.mubr.bf16.mxu1 %v7696_v2 }
 0x6cc   : > { %6577 = vmatmul.mubr.msk.bf16.gmra.mrb[136].mxu1 %vm3765_vm9, %v4595_v37 }
 0x6cd   : > { %4958 = vmatprep.mubr.bf16.mxu1 %v7696_v2 }
 0x76f   : > { %v4713_v48 = vpop.f32.mrb[112].mxu1 }
 0x770   : > { %v4822_v63 = vadd.f32 %v9388_v61, %v4713_v48  ;;  %v4715_v20 = vpop.f32.mrb[113].mxu1 }
 0x771   : > { %v4823_v26 = vadd.f32 %v9393_v8, %v4715_v20  ;;  %v4717_v4 = vpop.f32.mrb[114].mxu1 }
 0x772   : > { %v4824_v9 = vadd.f32 %v9388_v61, %v4717_v4  ;;  %v4719_v11 = vpop.f32.mrb[115].mxu1  ;;  %v4850_v23 = vmax.f32 %v4822_v63, 0.0 }
 0x773   : > { %v4825_v22 = vadd.f32 %v9393_v8, %v4719_v11  ;;  %v4851_v31 = vmax.f32 %v4823_v26, 0.0 }
 0x774   : > { %v4852_v21 = vmax.f32 %v4824_v9, 0.0 }
 0x775   : > { %v4853_v16 = vmax.f32 %v4825_v22, 0.0 }
 0x776   : > { %v9404_v7 = vpack.c.bf16 %v4852_v21, %v4850_v23 }
 0x777   : > { %v9406_v36 = vpack.c.bf16 %v4853_v16, %v4851_v31  ;;  %v4723_v35 = vpop.f32.mrb[116].mxu1 }
 0x778   : > { %v4826_v10 = vadd.f32 %v9388_v61, %v4723_v35  ;;  %v4725_v14 = vpop.f32.mrb[117].mxu1 }
 0x779   : > { %v4827_v27 = vadd.f32 %v9393_v8, %v4725_v14  ;;  %v4727_v55 = vpop.f32.mrb[118].mxu1  ;;  %4926 = vmatprep.subr.bf16.mxu1 %v9406_v36 }
 0x77a   : > { %v4828_v62 = vadd.f32 %v9388_v61, %v4727_v55  ;;  %v4729_v0 = vpop.f32.mrb[119].mxu1  ;;  %4927 = vmatpush1.bf16.msra.mxu1 %v9404_v7  ;;  %v4854_v24 = vmax.f32 %v4826_v10, 0.0 }
 0x77b   : > { %v4829_v42 = vadd.f32 %v9393_v8, %v4729_v0  ;;  %v4855_v3 = vmax.f32 %v4827_v27, 0.0 }
 0x77c   : > { %v4856_v15 = vmax.f32 %v4828_v62, 0.0 }
 0x77d   : > { %v4857_v51 = vmax.f32 %v4829_v42, 0.0 }
 0x77e   : > { %v9414_v50 = vpack.c.bf16 %v4856_v15, %v4854_v24 }
 0x77f   : > { %v9416_v17 = vpack.c.bf16 %v4857_v51, %v4855_v3  ;;  %v4733_v46 = vpop.f32.mrb[120].mxu1 }
 0x780   : > { %v4830_v34 = vadd.f32 %v9388_v61, %v4733_v46  ;;  %v4735_v49 = vpop.f32.mrb[121].mxu1 }
 0x781   : > { %v4831_v58 = vadd.f32 %v9393_v8, %v4735_v49  ;;  %v4737_v30 = vpop.f32.mrb[122].mxu1  ;;  %4928 = vmatprep.subr.bf16.mxu1 %v9416_v17 }
 0x782   : > { %v4832_v32 = vadd.f32 %v9388_v61, %v4737_v30  ;;  %v4739_v52 = vpop.f32.mrb[123].mxu1  ;;  %4929 = vmatpush1.bf16.msra.mxu1 %v9414_v50  ;;  %v4858_v18 = vmax.f32 %v4830_v34, 0.0 }
 0x783   : > { %v4833_v43 = vadd.f32 %v9393_v8, %v4739_v52  ;;  %v4859_v25 = vmax.f32 %v4831_v58, 0.0 }
 0x784   : > { %v4860_v39 = vmax.f32 %v4832_v32, 0.0 }
 0x785   : > { %v4861_v6 = vmax.f32 %v4833_v43, 0.0 }
 0x786   : > { %v9424_v38 = vpack.c.bf16 %v4860_v39, %v4858_v18 }
 0x787   : > { %v9426_v41 = vpack.c.bf16 %v4861_v6, %v4859_v25  ;;  %v4743_v59 = vpop.f32.mrb[124].mxu1 }
 0x788   : > { %v4834_v45 = vadd.f32 %v9388_v61, %v4743_v59  ;;  %v4745_v33 = vpop.f32.mrb[125].mxu1 }
 0x789   : > { %v4835_v28 = vadd.f32 %v9393_v8, %v4745_v33  ;;  %v4747_v13 = vpop.f32.mrb[126].mxu1  ;;  %4930 = vmatprep.subr.bf16.mxu1 %v9426_v41  ;;  %v7553_v33 = vld [vmem:[%s9790_s7] sm:$0xff]  }
 0x78a   : > { %v4836_v5 = vadd.f32 %v9388_v61, %v4747_v13  ;;  %v4749_v12 = vpop.f32.mrb[127].mxu1  ;;  %4931 = vmatpush1.bf16.msra.mxu1 %v9424_v38  ;;  %v4862_v29 = vmax.f32 %v4834_v45, 0.0  ;;  %v7570_v13 = vld [vmem:[%s9791_s8 + $0x18] sm:$0xff]  }
 0x78b   : > { %v4837_v60 = vadd.f32 %v9393_v8, %v4749_v12  ;;  %v4863_v47 = vmax.f32 %v4835_v28, 0.0  ;;  %v7569_v28 = vld [vmem:[%s9791_s8 + $0x10] sm:$0xff]  }
 0x78c   : > { %v4864_v37 = vmax.f32 %v4836_v5, 0.0  ;;  %v7571_v5 = vld [vmem:[%s9791_s8 + $0x20] sm:$0xff]   ;;  %v7572_v12 = vld [vmem:[%s9791_s8 + $0x90] sm:$0xff]  }
 0x78d   : > { %v4865_v19 = vmax.f32 %v4837_v60, 0.0  ;;  %v7573_v60 = vld [vmem:[%s9791_s8 + $0x28] sm:$0xff]  }
 0x78e   : > { %v9434_v40 = vpack.c.bf16 %v4864_v37, %v4862_v29  ;;  %v7574_v29 = vld [vmem:[%s9791_s8 + $0x30] sm:$0xff]   ;;  %v7575_v37 = vld [vmem:[%s9791_s8 + $0x38] sm:$0xff]  }
 0x78f   : > { %v9436_v1 = vpack.c.bf16 %v4865_v19, %v4863_v47  ;;  %v4753_v54 = vpop.f32.mrb[128].mxu1  ;;  %v7577_v47 = vld [vmem:[%s9791_s8 + $0x40] sm:$0xff]   ;;  %v7576_v19 = vld [vmem:[%s9791_s8 + $0x98] sm:$0xff]  }
 0x790   : > { %v4838_v44 = vadd.f32 %v9388_v61, %v4753_v54  ;;  %v4755_v53 = vpop.f32.mrb[129].mxu1 }
 0x791   : > { %v4839_v57 = vadd.f32 %v9393_v8, %v4755_v53  ;;  %v4757_v48 = vpop.f32.mrb[130].mxu1  ;;  %4932 = vmatprep.subr.bf16.mxu1 %v9436_v1 }
 0x792   : > { %v4840_v56 = vadd.f32 %v9388_v61, %v4757_v48  ;;  %v4759_v63 = vpop.f32.mrb[131].mxu1  ;;  %4933 = vmatpush1.bf16.msra.mxu1 %v9434_v40  ;;  %v4866_v26 = vmax.f32 %v4838_v44, 0.0 }
 0x793   : > { %v4841_v20 = vadd.f32 %v9393_v8, %v4759_v63  ;;  %v4867_v9 = vmax.f32 %v4839_v57, 0.0 }
 0x794   : > { %v4868_v4 = vmax.f32 %v4840_v56, 0.0 }
 0x795   : > { %v4869_v11 = vmax.f32 %v4841_v20, 0.0 }
 0x796   : > { %v4886_v22 = vpack.c.bf16 %v4868_v4, %v4866_v26 }
 0x797   : > { %v4887_v23 = vpack.c.bf16 %v4869_v11, %v4867_v9  ;;  %v4763_v21 = vpop.f32.mrb[132].mxu1 }
 0x798   : > { %v4842_v31 = vadd.f32 %v9388_v61, %v4763_v21  ;;  %v4765_v16 = vpop.f32.mrb[133].mxu1 }
 0x799   : > { %v4843_v35 = vadd.f32 %v9393_v8, %v4765_v16  ;;  %v4767_v10 = vpop.f32.mrb[134].mxu1  ;;  %4934 = vmatprep.subr.bf16.mxu1 %v4887_v23 }
 0x79a   : > { %v4844_v14 = vadd.f32 %v9388_v61, %v4767_v10  ;;  %v4769_v27 = vpop.f32.mrb[135].mxu1  ;;  %4935 = vmatpush1.bf16.msra.mxu1 %v4886_v22  ;;  %v4870_v62 = vmax.f32 %v4842_v31, 0.0 }
 0x79b   : > { %v4845_v55 = vadd.f32 %v9393_v8, %v4769_v27  ;;  %v4871_v42 = vmax.f32 %v4843_v35, 0.0 }
 0x79c   : > { %v4872_v0 = vmax.f32 %v4844_v14, 0.0 }
 0x79d   : > { %v4873_v24 = vmax.f32 %v4845_v55, 0.0  ;;  %v7579_v55 = vld [vmem:[%s9792_s9] sm:$0xff]  }
 0x79e   : > { %v4888_v15 = vpack.c.bf16 %v4872_v0, %v4870_v62  ;;  %v7580_v62 = vld [vmem:[%s9792_s9 + $0x28] sm:$0xff]  }
 0x79f   : > { %v4889_v3 = vpack.c.bf16 %v4873_v24, %v4871_v42  ;;  %v4773_v51 = vpop.f32.mrb[136].mxu1 }
 0x7a0   : > { %v4846_v46 = vadd.f32 %v9388_v61, %v4773_v51  ;;  %v4775_v34 = vpop.f32.mrb[137].mxu1  ;;  %v7581_v51 = vld [vmem:[%s9792_s9 + $0x8] sm:$0xff]  }
 0x7a1   : > { %v4847_v49 = vadd.f32 %v9393_v8, %v4775_v34  ;;  %v4777_v58 = vpop.f32.mrb[138].mxu1  ;;  %4936 = vmatprep.subr.bf16.mxu1 %v4889_v3 }
 0x7a2   : > { %v4848_v30 = vadd.f32 %v9388_v61, %v4777_v58  ;;  %v4779_v32 = vpop.f32.mrb[139].mxu1  ;;  %4937 = vmatpush1.bf16.msra.mxu1 %v4888_v15  ;;  %v4874_v43 = vmax.f32 %v4846_v46, 0.0  ;;  %v7554_v61 = vld [vmem:[%s9790_s7 + $0x8] sm:$0xff]   ;;  %v7582_v46 = vld [vmem:[%s9792_s9 + $0x30] sm:$0xff]  }
 0x7a3   : > { %v4849_v52 = vadd.f32 %v9393_v8, %v4779_v32  ;;  %v4875_v39 = vmax.f32 %v4847_v49, 0.0  ;;  %v7555_v8 = vld [vmem:[%s9790_s7 + $0x10] ss:$0 sps:$4 sm:$0xff]  }
 0x7a4   : > { %v4876_v18 = vmax.f32 %v4848_v30, 0.0 }
 0x7a5   : > { %v4877_v25 = vmax.f32 %v4849_v52, 0.0  ;;  %v7583_v52 = vld [vmem:[%s9792_s9 + $0x10] sm:$0xff]  }
 0x7a6   : > { %v4890_v6 = vpack.c.bf16 %v4876_v18, %v4874_v43  ;;  %v7584_v43 = vld [vmem:[%s9792_s9 + $0x38] sm:$0xff]  }
 0x7a7   : > { %v4891_v59 = vpack.c.bf16 %v4877_v25, %v4875_v39 }
 0x7a8   : > { %v4921_v45 = vsel %vm2213_vm4, %v4890_v6, 0 }
 0x7a9   : > { %6581 = vmatprep.subr.msk.bf16.mxu1 %vm2213_vm4, %v4891_v59 }
 0x7aa   : > { %4939 = vmatpush1.bf16.msra.mxu1 %v4921_v45 }
 0x7ab   : > { %5015 = vmatprep.subr.bf16.mxu1 %v9406_v36  ;;  %v7566_v36 = vld [vmem:[%s9791_s8] sm:$0xff]  }
 0x7ad   : > { %6582 = vmatmul.mubr.msk.bf16.vlgmr.msra.gmra.mrb[140].mxu1 %vm4910_vm10, %v7553_v33  ;;  %v7585_v33 = vld [vmem:[%s9792_s9 + $0x18] sm:$0xff]  }
 0x7ae   : > { %5016 = vmatpush1.bf16.msra.mxu1 %v9404_v7  ;;  %4968 = vmatprep.mubr.bf16.mxu1 %v7696_v2  ;;  %v7556_v7 = vld [vmem:[%s9790_s7 + $0x14] sm:$0xff]  }
 0x7af   : > { %5017 = vmatprep.subr.bf16.mxu1 %v9416_v17  ;;  %v7558_v17 = vld [vmem:[%s9790_s7 + $0x24] ss:$0 sps:$4 sm:$0xff]  }
 0x7b2   : > { %5018 = vmatpush1.bf16.msra.mxu1 %v9414_v50  ;;  %v7557_v50 = vld [vmem:[%s9790_s7 + $0x1c] sm:$0xff]  }
 0x7b3   : > { %5019 = vmatprep.subr.bf16.mxu1 %v9426_v41  ;;  %v7568_v41 = vld [vmem:[%s9791_s8 + $0x88] sm:$0xff]  }
 0x7b4   : > { %5334 = vmatpush1.bf16.msra.mxu0 %v7568_v41 }
 0x7b5   : > { %6583 = vmatmul.mubr.msk.bf16.gmra.mrb[144].mxu1 %vm4910_vm10, %v7554_v61  ;;  %5335 = vmatprep.subr.bf16.mxu0 %v7696_v2 }
 0x7b6   : > { %5020 = vmatpush1.bf16.msra.mxu1 %v9424_v38  ;;  %4978 = vmatprep.mubr.bf16.mxu1 %v7696_v2  ;;  %v7567_v38 = vld [vmem:[%s9791_s8 + $0x8] sm:$0xff]  }
 0x7b7   : > { %5021 = vmatprep.subr.bf16.mxu1 %v9436_v1  ;;  %v7697_v1 = vmov 0.0  }
 0x7b8   : > { %5336 = vmatpush1.bf16.msra.mxu0 %v7572_v12 }
 0x7b9   : > { %5337 = vmatprep.subr.bf16.mxu0 %v7696_v2 }
 0x7ba   : > { %5022 = vmatpush1.bf16.msra.mxu1 %v9434_v40  ;;  %v7578_v40 = vld [vmem:[%s9791_s8 + $0x48] sm:$0xff]  }
 0x7bb   : > { %5023 = vmatprep.subr.bf16.mxu1 %v4887_v23 }
 0x7bc   : > { %5338 = vmatpush1.bf16.msra.mxu0 %v7576_v19 }
 0x7bd   : > { %6584 = vmatmul.mubr.msk.bf16.gmra.mrb[148].mxu1 %vm4910_vm10, %v7555_v8  ;;  %6796 = vmatprep.subr.bf16.mxu0 %v7697_v1 }
 0x7be   : > { %5024 = vmatpush1.bf16.msra.mxu1 %v4886_v22  ;;  %5047 = vmatprep.mubr.bf16.mxu1 %v7696_v2 }
 0x7bf   : > { %5025 = vmatprep.subr.bf16.mxu1 %v4889_v3 }
 0x7c2   : > { %5026 = vmatpush1.bf16.msra.mxu1 %v4888_v15 }
 0x7c3   : > { %6593 = vmatprep.subr.msk.bf16.mxu1 %vm2213_vm4, %v4891_v59 }
 0x7c6   : > { %5028 = vmatpush1.bf16.msra.mxu1 %v4921_v45 }
 0x7c7   : > { %5182 = vmatprep.subr.bf16.mxu1 %v7696_v2 }
 0x7c9   : > { %6594 = vmatmul.mubr.msk.bf16.vlgmr.msra.gmra.mrb[152].mxu1 %vm4910_vm10, %v7556_v7  ;;  %v7586_v7 = vld [vmem:[%s9792_s9 + $0x40] sm:$0xff]  }
 0x7ca   : > { %5057 = vmatprep.mubr.bf16.mxu1 %v7696_v2  ;;  %5183 = vmatpush1.bf16.msra.mxu1 %v7566_v36  ;;  %v7587_v36 = vld [vmem:[%s9792_s9 + $0x20] sm:$0xff]  }
 0x7cb   : > { %5184 = vmatprep.subr.bf16.mxu1 %v7696_v2 }
 0x7ce   : > { %5185 = vmatpush1.bf16.msra.mxu1 %v7567_v38 }
 0x7cf   : > { %5186 = vmatprep.subr.bf16.mxu1 %v7696_v2 }
 0x7d1   : > { %6595 = vmatmul.mubr.msk.bf16.gmra.mrb[156].mxu1 %vm4910_vm10, %v7557_v50  ;;  %v7588_v50 = vld [vmem:[%s9792_s9 + $0x48] sm:$0xff]  }
 0x7d2   : > { %5067 = vmatprep.mubr.bf16.mxu1 %v7696_v2  ;;  %5187 = vmatpush1.bf16.msra.mxu1 %v7569_v28 }
 0x7d3   : > { %5188 = vmatprep.subr.bf16.mxu1 %v7696_v2 }
 0x7d6   : > { %5189 = vmatpush1.bf16.msra.mxu1 %v7570_v13 }
 0x7d7   : > { %5190 = vmatprep.subr.bf16.mxu1 %v7696_v2 }
 0x7d9   : > { %6596 = vmatmul.mubr.msk.bf16.gmra.mrb[160].mxu1 %vm4910_vm10, %v7558_v17 }
 0x7da   : > { %5191 = vmatpush1.bf16.msra.mxu1 %v7571_v5 }
 0x7db   : > { %5192 = vmatprep.subr.bf16.mxu1 %v7696_v2 }
 0x7de   : > { %5193 = vmatpush1.bf16.msra.mxu1 %v7573_v60 }
 0x7df   : > { %5194 = vmatprep.subr.bf16.mxu1 %v7696_v2 }
 0x7e2   : > { %5195 = vmatpush1.bf16.msra.mxu1 %v7574_v29 }
 0x7e3   : > { %5196 = vmatprep.subr.bf16.mxu1 %v7696_v2 }
 0x7e6   : > { %5197 = vmatpush1.bf16.msra.mxu1 %v7575_v37 }
 0x7e7   : > { %5198 = vmatprep.subr.bf16.mxu1 %v7696_v2 }
 0x7ea   : > { %5199 = vmatpush1.bf16.msra.mxu1 %v7577_v47  ;;  %v7589_v47 = vld [vmem:[%s9792_s9 + $0x78] sm:$0xff]  }
 0x7eb   : > { %5200 = vmatprep.subr.bf16.mxu1 %v7696_v2 }
 0x7ee   : > { %5201 = vmatpush1.bf16.msra.mxu1 %v7578_v40  ;;  %v7590_v40 = vld [vmem:[%s9792_s9 + $0x50] sm:$0xff]  }
 0x7ef   : > { %6782 = vmatprep.subr.bf16.mxu1 %v7697_v1 }
 0x880   : > { %v4960_v54 = vpop.f32.mrb[140].mxu1 }
 0x881   : > { %v4962_v44 = vpop.f32.mrb[141].mxu1 }
 0x882   : > { %v4964_v53 = vpop.f32.mrb[142].mxu1 }
 0x883   : > { %v4966_v57 = vpop.f32.mrb[143].mxu1 }
 0x888   : > { %v4970_v48 = vpop.f32.mrb[144].mxu1 }
 0x889   : > { %v4972_v56 = vpop.f32.mrb[145].mxu1 }
 0x88a   : > { %v4974_v63 = vpop.f32.mrb[146].mxu1 }
 0x88b   : > { %v4976_v20 = vpop.f32.mrb[147].mxu1 }
 0x890   : > { %v4980_v26 = vpop.f32.mrb[148].mxu1 }
 0x891   : > { %v4982_v2 = vpop.f32.mrb[149].mxu1 }
 0x892   : > { %v4984_v4 = vpop.f32.mrb[150].mxu1 }
 0x893   : > { %v4985_v9 = vpop.f32.mrb[151].mxu1 }
 0x89c   : > { %v5049_v11 = vpop.f32.mrb[152].mxu1 }
 0x89d   : > { %v5076_v22 = vmax.f32 %v4960_v54, %v5049_v11  ;;  %v5051_v23 = vpop.f32.mrb[153].mxu1 }
 0x89e   : > { %v5077_v21 = vmax.f32 %v4962_v44, %v5051_v23  ;;  %v5053_v31 = vpop.f32.mrb[154].mxu1 }
 0x89f   : > { %v5078_v16 = vmax.f32 %v4964_v53, %v5053_v31  ;;  %v5055_v35 = vpop.f32.mrb[155].mxu1 }
 0x8a0   : > { %v5079_v10 = vmax.f32 %v4966_v57, %v5055_v35  ;;  %v7591_v57 = vld [vmem:[%s9792_s9 + $0x80] sm:$0xff]   ;;  %v7595_v35 = vld [vmem:[%s9792_s9 + $0x90] sm:$0xff]  }
 0x8a1   : > { %v5086_v14 = vpack.c.bf16 %v5078_v16, %v5076_v22  ;;  %v7593_v22 = vld [vmem:[%s9792_s9 + $0x88] sm:$0xff]  }
 0x8a2   : > { %v5087_v27 = vpack.c.bf16 %v5079_v10, %v5077_v21  ;;  %v7594_v21 = vld [vmem:[%s9792_s9 + $0x60] sm:$0xff]  }
 0x8a4   : > { %v5059_v0 = vpop.f32.mrb[156].mxu1  ;;  %6607 = vmatprep.mubr.msk.bf16.mxu1 %vm5172_vm11, %v5087_v27  ;;  %6640 = vmatprep.mubr.msk.bf16.mxu0 %vm5172_vm11, %v5087_v27 }
 0x8a5   : > { %v5080_v42 = vmax.f32 %v4970_v48, %v5059_v0  ;;  %v5061_v24 = vpop.f32.mrb[157].mxu1  ;;  %5215 = vmatmul.mubr.bf16.vlgmr.msra.gmra.mrb[164].mxu1 %v5086_v14  ;;  %5352 = vmatmul.mubr.bf16.vlgmr.msra.gmra.mrb[64].mxu0 %v5086_v14  ;;  %v7596_v0 = vld [vmem:[%s9792_s9 + $0x68] sm:$0xff]  }
 0x8a6   : > { %v5081_v15 = vmax.f32 %v4972_v56, %v5061_v24  ;;  %v5063_v3 = vpop.f32.mrb[158].mxu1  ;;  %6797 = vmatpush3.bf16.msra.mxu0 %v7579_v55  ;;  %6783 = vmatpush3.bf16.msra.mxu1 %v7580_v62 }
 0x8a7   : > { %v5082_v34 = vmax.f32 %v4974_v63, %v5063_v3  ;;  %v5065_v49 = vpop.f32.mrb[159].mxu1  ;;  %6798 = vmatprep.subr.bf16.mxu0 %v7697_v1  ;;  %6784 = vmatprep.subr.bf16.mxu1 %v7697_v1  ;;  %v7598_v3 = vld [vmem:[%s9792_s9 + $0x70] sm:$0xff]  }
 0x8a8   : > { %v5083_v58 = vmax.f32 %v4976_v20, %v5065_v49  ;;  %v7601_v49 = vld [vmem:[%s9792_s9 + $0xb0] sm:$0xff]  }
 0x8a9   : > { %v5088_v30 = vpack.c.bf16 %v5082_v34, %v5080_v42  ;;  %v7600_v34 = vld [vmem:[%s9792_s9 + $0xa8] sm:$0xff]  }
 0x8aa   : > { %v5089_v32 = vpack.c.bf16 %v5083_v58, %v5081_v15  ;;  %6799 = vmatpush3.bf16.msra.mxu0 %v7581_v51  ;;  %6785 = vmatpush3.bf16.msra.mxu1 %v7582_v46  ;;  %v7597_v15 = vld [vmem:[%s9792_s9 + $0x98] sm:$0xff]   ;;  %v7599_v46 = vld [vmem:[%s9792_s9 + $0xa0] sm:$0xff]  }
 0x8ab   : > { %6800 = vmatprep.subr.bf16.mxu0 %v7697_v1  ;;  %6786 = vmatprep.subr.bf16.mxu1 %v7697_v1  ;;  %v7602_v58 = vld [vmem:[%s9792_s9 + $0xb8] sm:$0xff]  }
 0x8ac   : > { %v5069_v18 = vpop.f32.mrb[160].mxu1  ;;  %6608 = vmatprep.mubr.msk.bf16.mxu1 %vm5172_vm11, %v5089_v32  ;;  %6641 = vmatprep.mubr.msk.bf16.mxu0 %vm5172_vm11, %v5089_v32 }
 0x8ad   : > { %v5084_v39 = vmax.f32 %v4980_v26, %v5069_v18  ;;  %v5071_v25 = vpop.f32.mrb[161].mxu1  ;;  %5223 = vmatmul.mubr.bf16.gmra.mrb[168].mxu1 %v5088_v30  ;;  %5360 = vmatmul.mubr.bf16.gmra.mrb[68].mxu0 %v5088_v30  ;;  %v7603_v30 = vld [vmem:[%s9792_s9 + $0xc0] sm:$0xff]   ;;  %v7606_v18 = vld [vmem:[%s9794_s11 + $0x10] sm:$0xff]  }
 0x8ae   : > { %v5085_v6 = vmax.f32 %v4982_v2, %v5071_v25  ;;  %v5073_v59 = vpop.f32.mrb[162].mxu1  ;;  %6801 = vmatpush3.bf16.msra.mxu0 %v7583_v52  ;;  %6787 = vmatpush3.bf16.msra.mxu1 %v7584_v43  ;;  %v7592_v2 = vld [vmem:[%s9792_s9 + $0x58] sm:$0xff]   ;;  %v7604_v52 = vld [vmem:[%s9794_s11] sm:$0xff]   ;;  %v7605_v43 = vld [vmem:[%s9794_s11 + $0x8] sm:$0xff]  }
 0x8af   : > { %v5074_v45 = vpop.f32.mrb[163].mxu1  ;;  %6802 = vmatprep.subr.bf16.mxu0 %v7697_v1  ;;  %6788 = vmatprep.subr.bf16.mxu1 %v7697_v1  ;;  %v5090_v8 = vpack.c.bf16 %v5084_v39, %v5084_v39  ;;  %v7607_v39 = vld [vmem:[%s9794_s11 + $0x18] sm:$0xff]   ;;  %v7608_v25 = vld [vmem:[%s9794_s11 + $0x20] sm:$0xff]   ;;  %v7610_v59 = vld [vmem:[%s9794_s11 + $0x30] sm:$0xff]  }
 0x8b0   : > { %v5091_v61 = vpack.c.bf16 %v5085_v6, %v5085_v6  ;;  %v7609_v6 = vld [vmem:[%s9794_s11 + $0x28] sm:$0xff]   ;;  %v7611_v45 = vld [vmem:[%s9794_s11 + $0x38] ss:$0 sps:$4 sm:$0xff]  }
 0x8b2   : > { %6609 = vmatprep.mubr.msk.bf16.mxu1 %vm5172_vm11, %v5091_v61  ;;  %6642 = vmatprep.mubr.msk.bf16.mxu0 %vm5172_vm11, %v5091_v61  ;;  %v7612_v61 = vld [vmem:[%s9796_s13] sm:$0xff]  }
 0x8b3   : > { %6803 = vmatpush3.bf16.msra.mxu0 %v7585_v33  ;;  %6789 = vmatpush3.bf16.msra.mxu1 %v7586_v7  ;;  %v5892_v33 = vsel %vm3341_vm6, %v7611_v45, 0  ;;  %v7614_v7 = vld [vmem:[%s9796_s13 + $0x10] sm:$0xff]  }
 0x8b4   : > { %6804 = vmatprep.subr.bf16.mxu0 %v7697_v1  ;;  %6790 = vmatprep.subr.bf16.mxu1 %v7697_v1 }
 0x8b5   : > { %5231 = vmatmul.mubr.bf16.gmra.mrb[172].mxu1 %v5090_v8  ;;  %5368 = vmatmul.mubr.bf16.gmra.mrb[72].mxu0 %v5090_v8  ;;  %v7613_v8 = vld [vmem:[%s9796_s13 + $0x8] sm:$0xff]  }
 0x8b6   : > { %6806 = vmatprep.mubr.msk.bf16.mxu0 %vm7698_vm12, %v7697_v1  ;;  %6792 = vmatprep.mubr.msk.bf16.mxu1 %vm7698_vm12, %v7697_v1 }
 0x8b7   : > { %6805 = vmatpush3.bf16.msra.mxu0 %v7587_v36  ;;  %6791 = vmatpush3.bf16.msra.mxu1 %v7588_v50  ;;  %v7615_v36 = vld [vmem:[%s9796_s13 + $0x18] sm:$0xff]  }
 0x8b8   : > { %6824 = vmatprep.subr.bf16.mxu0 %v7697_v1  ;;  %6810 = vmatprep.subr.bf16.mxu1 %v7697_v1 }
 0x978   : > { %v5216_v17 = vpop.f32.mrb[164].mxu1  ;;  %v5353_v38 = vpop.f32.mrb[64].mxu0 }
 0x979   : > { %v5375_v41 = vmax.f32 %v5216_v17, %v5353_v38  ;;  %v5218_v28 = vpop.f32.mrb[165].mxu1  ;;  %v5355_v13 = vpop.f32.mrb[65].mxu0 }
 0x97a   : > { %v5219_v5 = vpop.f32.mrb[166].mxu1  ;;  %v5356_v12 = vpop.f32.mrb[66].mxu0 }
 0x97b   : > { %v5376_v60 = vmax.f32 %v5219_v5, %v5356_v12  ;;  %v5221_v29 = vpop.f32.mrb[167].mxu1  ;;  %v5358_v37 = vpop.f32.mrb[67].mxu0 }
 0x97d   : > { %v5380_v19 = vpack.c.bf16 %v5376_v60, %v5375_v41 }
 0x97f   : > { %v5405_v54 = vrot.slane %v5380_v19, 4  ;;  %6807 = vmatmul.mubr.msk.bf16.vlgmr.msra.gmra.mrb[76].mxu0 %vm5436_vm13, %v5380_v19 }
 0x980   : > { %6825 = vmatpush3.bf16.msra.mxu0 %v7589_v47  ;;  %v5224_v44 = vpop.f32.mrb[168].mxu1  ;;  %v5361_v53 = vpop.f32.mrb[68].mxu0  ;;  %6834 = vmatprep.mubr.msk.bf16.mxu0 %vm7698_vm12, %v7697_v1 }
 0x981   : > { %v5377_v48 = vmax.f32 %v5224_v44, %v5361_v53  ;;  %v5226_v56 = vpop.f32.mrb[169].mxu1  ;;  %v5363_v63 = vpop.f32.mrb[69].mxu0  ;;  %6793 = vmatmul.mubr.msk.bf16.vlgmr.msra.gmra.mrb[176].mxu1 %vm5436_vm13, %v5405_v54  ;;  %6826 = vmatprep.subr.bf16.mxu0 %v7697_v1 }
 0x982   : > { %6811 = vmatpush3.bf16.msra.mxu1 %v7590_v40  ;;  %v5227_v20 = vpop.f32.mrb[170].mxu1  ;;  %v5364_v26 = vpop.f32.mrb[70].mxu0  ;;  %6820 = vmatprep.mubr.msk.bf16.mxu1 %vm7698_vm12, %v7697_v1  ;;  %v6713_v63 = vld [vmem:[%s9793_s10] ss:$0 sm:$0xff] }
 0x983   : > { %v5378_v4 = vmax.f32 %v5227_v20, %v5364_v26  ;;  %v5229_v9 = vpop.f32.mrb[171].mxu1  ;;  %v5366_v11 = vpop.f32.mrb[71].mxu0  ;;  %6812 = vmatprep.subr.bf16.mxu1 %v7697_v1 }
 0x984   : > { %6827 = vmatpush3.bf16.msra.mxu0 %v7591_v57 }
 0x985   : > { %v5381_v23 = vpack.c.bf16 %v5378_v4, %v5377_v48  ;;  %6828 = vmatprep.subr.bf16.mxu0 %v7697_v1 }
 0x986   : > { %6813 = vmatpush3.bf16.msra.mxu1 %v7592_v2 }
 0x987   : > { %6814 = vmatprep.subr.bf16.mxu1 %v7697_v1  ;;  %v5650_v51 = vrot.slane %v5381_v23, 4 }
 0x988   : > { %6829 = vmatpush3.bf16.msra.mxu0 %v7593_v22  ;;  %v5232_v31 = vpop.f32.mrb[172].mxu1  ;;  %v5369_v16 = vpop.f32.mrb[72].mxu0 }
 0x989   : > { %v5379_v10 = vmax.f32 %v5232_v31, %v5369_v16  ;;  %v5234_v14 = vpop.f32.mrb[173].mxu1  ;;  %v5371_v27 = vpop.f32.mrb[73].mxu0  ;;  %6830 = vmatprep.subr.bf16.mxu0 %v7697_v1  ;;  %v6714_v16 = vld [vmem:[%s9795_s12] ss:$0 sm:$0xff] }
 0x98a   : > { %6815 = vmatpush3.bf16.msra.mxu1 %v7594_v21  ;;  %v5235_v55 = vpop.f32.mrb[174].mxu1  ;;  %v5372_v62 = vpop.f32.mrb[74].mxu0  ;;  %v7617_v21 = vld [vmem:[%s9796_s13 + $0x28] ss:$0 sps:$4 sm:$0x33]  }
 0x98b   : > { %v5236_v42 = vpop.f32.mrb[175].mxu1  ;;  %v5373_v24 = vpop.f32.mrb[75].mxu0  ;;  %6816 = vmatprep.subr.bf16.mxu1 %v7697_v1  ;;  %v5382_v32 = vpack.c.bf16 %v5379_v10, %v5379_v10  ;;  %v5991_v31 = vsel %vm3787_vm8, %v7617_v21, 0 }
 0x98c   : > { %6831 = vmatpush3.bf16.msra.mxu0 %v7595_v35 }
 0x98d   : > { %6832 = vmatprep.subr.bf16.mxu0 %v7697_v1 }
 0x98e   : > { %6817 = vmatpush3.bf16.msra.mxu1 %v7596_v0 }
 0x98f   : > { %6818 = vmatprep.subr.bf16.mxu1 %v7697_v1 }
 0x990   : > { %6833 = vmatpush3.bf16.msra.mxu0 %v7597_v15 }
 0x991   : > { %6852 = vmatprep.subr.bf16.mxu0 %v7697_v1 }
 0x992   : > { %6819 = vmatpush3.bf16.msra.mxu1 %v7598_v3 }
 0x993   : > { %6835 = vmatmul.mubr.msk.bf16.vlgmr.msra.gmra.mrb[80].mxu0 %vm5436_vm13, %v5650_v51  ;;  %6838 = vmatprep.subr.bf16.mxu1 %v7697_v1 }
 0x994   : > { %6868 = vmatprep.mubr.msk.bf16.mxu0 %vm7698_vm12, %v7697_v1  ;;  %6853 = vmatpush3.bf16.msra.mxu0 %v7604_v52 }
 0x995   : > { %6821 = vmatmul.mubr.msk.bf16.vlgmr.msra.gmra.mrb[180].mxu1 %vm5436_vm13, %v5381_v23  ;;  %6854 = vmatprep.subr.bf16.mxu0 %v7697_v1  ;;  %v7616_v23 = vld [vmem:[%s9796_s13 + $0x20] sm:$0xff]  }
 0x996   : > { %6839 = vmatpush3.bf16.msra.mxu1 %v7599_v46  ;;  %6848 = vmatprep.mubr.msk.bf16.mxu1 %vm7698_vm12, %v7697_v1 }
 0x997   : > { %6840 = vmatprep.subr.bf16.mxu1 %v7697_v1 }
 0x998   : > { %6855 = vmatpush3.bf16.msra.mxu0 %v7605_v43 }
 0x999   : > { %6856 = vmatprep.subr.bf16.mxu0 %v7697_v1 }
 0x99a   : > { %6841 = vmatpush3.bf16.msra.mxu1 %v7600_v34 }
 0x99b   : > { %6842 = vmatprep.subr.bf16.mxu1 %v7697_v1 }
 0x99c   : > { %6857 = vmatpush3.bf16.msra.mxu0 %v7606_v18 }
 0x99d   : > { %6858 = vmatprep.subr.bf16.mxu0 %v7697_v1 }
 0x99e   : > { %6843 = vmatpush3.bf16.msra.mxu1 %v7601_v49 }
 0x99f   : > { %6844 = vmatprep.subr.bf16.mxu1 %v7697_v1 }
 0x9a0   : > { %6859 = vmatpush3.bf16.msra.mxu0 %v7607_v39 }
 0x9a1   : > { %6860 = vmatprep.subr.bf16.mxu0 %v7697_v1 }
 0x9a2   : > { %6845 = vmatpush3.bf16.msra.mxu1 %v7602_v58 }
 0x9a3   : > { %6846 = vmatprep.subr.bf16.mxu1 %v7697_v1 }
 0x9a4   : > { %6861 = vmatpush3.bf16.msra.mxu0 %v7608_v25 }
 0x9a5   : > { %6862 = vmatprep.subr.bf16.mxu0 %v7697_v1 }
 0x9a6   : > { %6847 = vmatpush3.bf16.msra.mxu1 %v7603_v30 }
 0x9a7   : > { %6872 = vmatprep.subr.bf16.mxu1 %v7697_v1 }
 0x9a8   : > { %6863 = vmatpush3.bf16.msra.mxu0 %v7609_v6 }
 0x9a9   : > { %6849 = vmatmul.mubr.msk.bf16.vlgmr.msra.gmra.mrb[184].mxu1 %vm5436_vm13, %v5382_v32  ;;  %6864 = vmatprep.subr.bf16.mxu0 %v7697_v1 }
 0x9aa   : > { %6884 = vmatprep.mubr.msk.bf16.mxu1 %vm7698_vm12, %v7697_v1  ;;  %6873 = vmatpush3.bf16.msra.mxu1 %v7612_v61 }
 0x9ab   : > { %6874 = vmatprep.subr.bf16.mxu1 %v7697_v1 }
 0x9ac   : > { %6865 = vmatpush3.bf16.msra.mxu0 %v7610_v59 }
 0x9ad   : > { %6866 = vmatprep.subr.bf16.mxu0 %v7697_v1 }
 0x9ae   : > { %6875 = vmatpush3.bf16.msra.mxu1 %v7613_v8 }
 0x9af   : > { %6876 = vmatprep.subr.bf16.mxu1 %v7697_v1 }
 0x9b0   : > { %6867 = vmatpush3.bf16.msra.mxu0 %v5892_v33 }
 0x9b2   : > { %6877 = vmatpush3.bf16.msra.mxu1 %v7614_v7 }
 0x9b3   : > { %6878 = vmatprep.subr.bf16.mxu1 %v7697_v1 }
 0x9b6   : > { %6879 = vmatpush3.bf16.msra.mxu1 %v7615_v36 }
 0x9b7   : > { %6880 = vmatprep.subr.bf16.mxu1 %v7697_v1 }
 0x9ba   : > { %6881 = vmatpush3.bf16.msra.mxu1 %v7616_v23 }
 0x9bb   : > { %6882 = vmatprep.subr.bf16.mxu1 %v7697_v1  ;;  %v6724_v1 = vld [vmem:[%s9797_s14] ss:$0 sm:$0xff] }
 0x9be   : > { %6883 = vmatpush3.bf16.msra.mxu1 %v5991_v31 }
 0xa52   : > { %v5547_v50 = vpop.f32.mrb[76].mxu0 }
 0xa53   : > { %v6808_v17 = vpop.f32.mrb[77].mxu0 }
 0xa54   : > { %v5474_v38 = vpop.f32.mrb[176].mxu1  ;;  %v5550_v41 = vpop.f32.mrb[78].mxu0 }
 0xa55   : > { %v5548_v28 = vadd.f32 %v5547_v50, %v5474_v38  ;;  %v6794_v13 = vpop.f32.mrb[177].mxu1  ;;  %v6809_v5 = vpop.f32.mrb[79].mxu0 }
 0xa56   : > { %v5477_v12 = vpop.f32.mrb[178].mxu1 }
 0xa57   : > { %v6795_v60 = vpop.f32.mrb[179].mxu1 }
 0xa66   : > { %v5718_v29 = vpop.f32.mrb[80].mxu0 }
 0xa67   : > { %v6836_v37 = vpop.f32.mrb[81].mxu0 }
 0xa68   : > { %v5631_v47 = vpop.f32.mrb[180].mxu1  ;;  %v5721_v19 = vpop.f32.mrb[82].mxu0 }
 0xa69   : > { %v5637_v40 = vadd.f32 %v5631_v47, %v5548_v28  ;;  %v6822_v54 = vpop.f32.mrb[181].mxu1  ;;  %v6837_v44 = vpop.f32.mrb[83].mxu0 }
 0xa6a   : > { %v5634_v53 = vpop.f32.mrb[182].mxu1 }
 0xa6b   : > { %v6823_v57 = vpop.f32.mrb[183].mxu1  ;;  %v5724_v48 = vadd.f32 %v5718_v29, %v5637_v40 }
 0xa7c   : > { %v5803_v56 = vpop.f32.mrb[184].mxu1 }
 0xa7d   : > { %v5809_v20 = vadd.f32 %v5803_v56, %v5724_v48  ;;  %v6850_v26 = vpop.f32.mrb[185].mxu1 }
 0xa7e   : > { %v5806_v2 = vpop.f32.mrb[186].mxu1 }
 0xa7f   : > { %v5817_v4 = vadd.f32 %v6713_v63, %v5809_v20  ;;  %v6851_v9 = vpop.f32.mrb[187].mxu1 }
 0xa81   : > { %v5818_v11 = vmax.f32 %v5817_v4, 0.0 }
 0xa83   : > { %v5819_v22 = vpack.c.bf16 %v5818_v11, %v5818_v11 }
 0xa85   : > { %6869 = vmatmul.mubr.msk.bf16.vlgmr.msra.gmra.mrb[84].mxu0 %vm5887_vm14, %v5819_v22 }
 0xb58   : > { %v5928_v35 = vpop.f32.mrb[84].mxu0 }
 0xb59   : > { %v5929_v10 = vadd.f32 %v6714_v16, %v5928_v35  ;;  %v6870_v14 = vpop.f32.mrb[85].mxu0 }
 0xb5a   : > { %v5931_v27 = vpop.f32.mrb[86].mxu0 }
 0xb5b   : > { %v5934_v55 = vmax.f32 %v5929_v10, 0.0  ;;  %v6871_v62 = vpop.f32.mrb[87].mxu0 }
 0xb5d   : > { %v5935_v0 = vpack.c.bf16 %v5934_v55, %v5934_v55 }
 0xb5f   : > { %6885 = vmatmul.mubr.msk.bf16.vlgmr.msra.gmra.mrb[188].mxu1 %vm3765_vm9, %v5935_v0 }
 0xc32   : > { %v6027_v42 = vpop.f32.mrb[188].mxu1 }
 0xc33   : > { %v6028_v24 = vadd.f32 %v6724_v1, %v6027_v42  ;;  %v6886_v15 = vpop.f32.mrb[189].mxu1 }
 0xc34   : > { %v6030_v3 = vpop.f32.mrb[190].mxu1 }
 0xc35   : > { %v6887_v51 = vpop.f32.mrb[191].mxu1  ;;  %6034 = vst.msk [vmem:[%s488_s27] sm:$0xff] %vm6033_vm15, %v6028_v24 }
 0xc36   : > { %7645 = shalt.err (!%p7642_p3)
}
 0xc37   : > { %s7646_s29 = scalar_lea.hbm %s9741_s17, 128  ;;  %s7650_s20 = scalar_lea.hbm %s9798_s15, 256 }
 0xc38   : > { %p7647_p4 = scmp.ne.s32.totalorder %s9741_s17, %s7646_s29  ;;  %p7651_p9 = scmp.lt.u32.totalorder %s9741_s17, %s9798_s15 }
 0xc39   : > { %p7652_p10 = scmp.lt.u32.totalorder %s7650_s20, %s7646_s29  ;;  %p7654_p12 = scmp.lt.u32.totalorder %s7646_s29, %s9741_s17 }
 0xc3a   : > { %p7648_p7 = pnand %p7647_p4, %p7818_p5 }
 0xc3b   : > { %p7653_p11 = por %p7652_p10, %p7651_p9 }
 0xc3c   : > { %p7649_p8 = pneg %p7648_p7 }
 0xc3d   : > { %p7655_p13 = por %p7654_p12, %p7653_p11 }
 0xc3f   : > { %p7656_p0 = pnand %p7655_p13, %p7649_p8 }
 0xc41   : > { %7659 = shalt.err (!%p7656_p0)
}
 0xc42   : > { %7256 = dma.vmem_to_hbm [thread:$0]  (%p7818_p5), %s9743_s26, 128, %s9741_s17, %s6036_s22  }
 0xc43 PF: > { %s9811_s30 = sld [smem:[#allocation5_spill]]  ;;  %p7262_p1 = scmp.ge.s32.totalorder %s7694_s21, 2 }
 0xc45   : > { %p7259_p2 = pnand %p7262_p1, %p7822_p6 }
 0xc49   : > { %s6061_s25 = sand.u32 1, %s9811_s30  }
 0xc4a   : > { %s6062_s18 = scalar_lea.sflag [#allocation3], %s6061_s25 }
 0xc4b   : > { %7677 = dma.done.wait (!%p7259_p2), %s6062_s18, 128  }
 0xc4c   : > { %7679 = vsyncadd (!%p7259_p2), %s6062_s18, 4294967168  ;;  %s9813_s21 = sld [smem:[#allocation7_spill]]  ;;  %s9814_s29 = sld [smem:[#allocation6_spill]] }
 0xc4d   : > { %s9815_s20 = sld [smem:[#allocation8_spill]]  ;;  %s9816_s18 = smov %s7686_s19 }
 0xc52   : > { %p25_p3 = scmp.ge.s32.totalorder %s9813_s21, 4   ;;  %s9817_s19 = smov %s9814_s29 }
 0xc54   :  { %27 = sbr.rel (!%p25_p3) target bundleno = 3 (0x3), region = 131 }
 0xc5b   :  { %6067 = vsyncpa [#allocation3], 1 }
 0xc5c   :  { %6069 = vsyncpa [#allocation3 + $0x1], 1 }

</bundles_post_ra>
